<compile_context>
chip_gen: v7x
topology: tpu7x:2x2x1
jax: 0.10.0
libtpu: 0.0.40
codegen_flags: <defaults>
</compile_context>

<pallas_src>
import jax
import jax.numpy as jnp
from jax.experimental import pallas as pl
from jax.experimental.pallas import tpu as pltpu


def _round_up(x, m):
    return (x + m - 1) // m * m


# ----------------------------------------------------------------------------
# Fused DoubleConv kernel: (conv 3x3x3 + BN + ReLU) x 2 in one pallas_call
# ----------------------------------------------------------------------------
def _make_fused_doubleconv_kernel(cin, oc1, oc2, T, pad, hpwp, wp):
    # Constant lane offsets of the 27 taps, (kd, kh, kw)-major order; this must
    # match the host-side stacked-weight layout (cout, kd, kh, kw, cin).
    deltas = tuple((kd - 1) * hpwp + (kh - 1) * wp + (kw - 1)
                   for kd in range(3) for kh in range(3) for kw in range(3))

    def kernel(x_ref, w1_ref, s1_ref, b1_ref, w2_ref, s2_ref, b2_ref,
               mask_ref, o_ref, stk1_ref, y1_ref, stk2_ref):
        # x_ref:    (1, cin, L)   bf16, zero-padded flattened input (lanes)
        # w1_ref:   (oc1, 27*cin) bf16 stacked conv1 weights
        # w2_ref:   (oc2, 27*oc1) bf16 stacked conv2 weights
        # s*/b*:    (oc, 1)       f32 folded BN scale / bias
        # mask_ref: (1, T)        f32, 1.0 at interior voxels of the padded grid
        # o_ref:    (1, oc2, T)   f32 conv2 output over the padded grid
        # stk1_ref: (27*cin, T)   bf16 im2col stack for conv1
        # y1_ref:   (oc1, L)      bf16 zero-padded conv1 activation
        # stk2_ref: (27*oc1, T)   bf16 im2col stack for conv2
        xv = x_ref.at[0]                                   # (cin, L) ref view
        mask = mask_ref[...]                               # (1, T) f32

        # ---- conv1: build im2col stack (shift paid once per tap), one dot ---
        for idx, d in enumerate(deltas):
            stk1_ref[idx * cin:(idx + 1) * cin, :] = xv[:, pad + d:pad + d + T]
        acc1 = jnp.dot(w1_ref[...], stk1_ref[...],
                       preferred_element_type=jnp.float32)   # (oc1, T) f32
        y1 = jnp.maximum(acc1 * s1_ref[...] + b1_ref[...], 0.0) * mask

        # Zero-padded VMEM copy of y1 feeding conv2 (halo = implicit conv pad).
        y1_ref[:, 0:pad] = jnp.zeros((oc1, pad), jnp.bfloat16)
        y1_ref[:, pad + T:pad + T + pad] = jnp.zeros((oc1, pad), jnp.bfloat16)
        y1_ref[:, pad:pad + T] = y1.astype(jnp.bfloat16)

        # ---- conv2: same im2col + single dot, then BN + ReLU -----------------
        for idx, d in enumerate(deltas):
            stk2_ref[idx * oc1:(idx + 1) * oc1, :] = y1_ref[:, pad + d:pad + d + T]
        acc2 = jnp.dot(w2_ref[...], stk2_ref[...],
                       preferred_element_type=jnp.float32)   # (oc2, T) f32
        y2 = jnp.maximum(acc2 * s2_ref[...] + b2_ref[...], 0.0)
        o_ref[0] = y2.astype(o_ref.dtype)

    return kernel


def double_conv_fused(x, params):
    """x: (N, cin, D, H, W) NCDHW float32. Returns (N, oc2, D, H, W) float32."""
    w1s, s1, b1, w2s, s2, b2 = params
    N, cin, D, H, W = x.shape
    oc1, oc2 = w1s.shape[0], w2s.shape[0]
    Dp, Hp, Wp = D + 2, H + 2, W + 2
    T = Dp * Hp * Wp
    T_pad = _round_up(T, 128)                 # lane-dense grid extent
    pad = _round_up(Hp * Wp + Wp + 1, 128)    # lane-aligned halo for the taps
    L = T_pad + 2 * pad
    K1, K2 = 27 * cin, 27 * oc1

    # Host-side layout pass: zero-pad the volume, flatten (Dp,Hp,Wp) onto the
    # lane axis, add `pad` zeros on both ends (so every 3x3x3 tap is a constant
    # lane-offset window) and pad the grid to T_pad lanes; cast to bf16.
    # Under jit this whole chain (with the upsample/concat feeding it) is a
    # small number of fused XLA copy passes over a tiny activation.
    # TODO(synk): if HLO shows multiple HBM passes at real sizes, move the
    #   concat/flatten into the kernel prologue with manual DMAs.
    xp = jnp.pad(x, ((0, 0), (0, 0), (1, 1), (1, 1), (1, 1)))
    xflat = jnp.pad(xp.reshape(N, cin, T),
                    ((0, 0), (0, 0), (pad, pad + T_pad - T))).astype(jnp.bfloat16)

    # 1.0 at interior voxels of the padded grid; zeros on the grid halo and the
    # T..T_pad lane tail (kills conv1 garbage before it feeds conv2).
    mask = jnp.pad(
        jnp.pad(jnp.ones((D, H, W), jnp.float32),
                ((1, 1), (1, 1), (1, 1))).reshape(1, T),
        ((0, 0), (0, T_pad - T)))

    kernel = _make_fused_doubleconv_kernel(cin, oc1, oc2, T_pad, pad, Hp * Wp, Wp)

    out_flat = pl.pallas_call(
        kernel,
        out_shape=jax.ShapeDtypeStruct((N, oc2, T_pad), jnp.float32),
        grid=(N,),
        in_specs=[
            pl.BlockSpec((1, cin, L), lambda n: (n, 0, 0)),
            # Weights / BN params / mask: constant index_map -> fetched once,
            # VMEM-resident across the whole batch grid.
            pl.BlockSpec((oc1, K1), lambda n: (0, 0)),
            pl.BlockSpec((oc1, 1), lambda n: (0, 0)),
            pl.BlockSpec((oc1, 1), lambda n: (0, 0)),
            pl.BlockSpec((oc2, K2), lambda n: (0, 0)),
            pl.BlockSpec((oc2, 1), lambda n: (0, 0)),
            pl.BlockSpec((oc2, 1), lambda n: (0, 0)),
            pl.BlockSpec((1, T_pad), lambda n: (0, 0)),
        ],
        out_specs=pl.BlockSpec((1, oc2, T_pad), lambda n: (n, 0, 0)),
        scratch_shapes=[
            pltpu.VMEM((K1, T_pad), jnp.bfloat16),   # conv1 im2col stack
            pltpu.VMEM((oc1, L), jnp.bfloat16),      # zero-padded y1
            pltpu.VMEM((K2, T_pad), jnp.bfloat16),   # conv2 im2col stack
        ],
        compiler_params=pltpu.CompilerParams(
            dimension_semantics=("parallel",),       # 2x on v7x's two TCs
            # Small at toy sizes; with depth tiling raise toward ~96-112 MiB on
            # v5e/v6e and cap ~56 MiB on v7x (64 MiB physical VMEM).
            vmem_limit_bytes=32 * 1024 * 1024,
        ),
    )(xflat,
      w1s.astype(jnp.bfloat16), s1.reshape(oc1, 1), b1.reshape(oc1, 1),
      w2s.astype(jnp.bfloat16), s2.reshape(oc2, 1), b2.reshape(oc2, 1), mask)

    # Un-pad: (N, oc2, T_pad) -> interior (N, oc2, D, H, W). Tiny host slice.
    # TODO(synk): once depth tiling exists, emit interior voxels directly from
    #   the kernel and drop this slice.
    return (out_flat[:, :, :T]
            .reshape(N, oc2, Dp, Hp, Wp)[:, :, 1:D + 1, 1:H + 1, 1:W + 1])


# ----------------------------------------------------------------------------
# Plain-JAX glue: trilinear upsample x2 (align_corners=True) and the Up wiring
# ----------------------------------------------------------------------------
def upsample_trilinear_x2_align_corners(x):
    """x: (N, C, D, H, W) -> (N, C, 2D, 2H, 2W); matches nn.Upsample(2,'trilinear',align_corners=True)."""
    def interp(a, axis):
        in_size = a.shape[axis]
        out_size = in_size * 2
        if in_size == 1:
            coords = jnp.zeros((out_size,), jnp.float32)
        else:
            coords = (jnp.arange(out_size, dtype=jnp.float32)
                      * (in_size - 1) / (out_size - 1))
        i0 = jnp.floor(coords).astype(jnp.int32)
        i1 = jnp.minimum(i0 + 1, in_size - 1)
        frac = coords - i0.astype(jnp.float32)
        a0 = jnp.take(a, i0, axis=axis)
        a1 = jnp.take(a, i1, axis=axis)
        wshape = [1] * a.ndim
        wshape[axis] = out_size
        frac = frac.reshape(wshape)
        return a0 * (1.0 - frac) + a1 * frac

    x = interp(x, 2)
    x = interp(x, 3)
    x = interp(x, 4)
    return x


def _pad_and_concat(x1, x2):
    x1u = upsample_trilinear_x2_align_corners(x1)
    # Faithful reproduction of the module's (quirky) F.pad argument mapping:
    # diffY from dim2, diffX from dim3, diffZ from dim4; F.pad pads the last
    # dim first, so dim4 gets diffX, dim3 gets diffY, dim2 gets diffZ.
    diffY = x2.shape[2] - x1u.shape[2]
    diffX = x2.shape[3] - x1u.shape[3]
    diffZ = x2.shape[4] - x1u.shape[4]
    x1u = jnp.pad(
        x1u,
        ((0, 0), (0, 0),
         (diffZ // 2, diffZ - diffZ // 2),
         (diffY // 2, diffY - diffY // 2),
         (diffX // 2, diffX - diffX // 2)))
    # Channel concat in NCDHW; under jit this fuses with the padding /
    # flattening copy in double_conv_fused.
    return jnp.concatenate([x2, x1u], axis=1)


def up_forward(x1, x2, params):
    """Forward pass of `Up` (trilinear=True). x1, x2 are NCDHW float32."""
    return double_conv_fused(_pad_and_concat(x1, x2), params)


# ----------------------------------------------------------------------------
# Pure-XLA reference (same math, f32 HIGHEST precision) for a correctness check
# ----------------------------------------------------------------------------
def _reference_conv_bn_relu(x, w_stk, scale, bias):
    oc = w_stk.shape[0]
    ci = w_stk.shape[1] // 27
    # (oc, 27*ci) -> (oc, kd, kh, kw, ci) -> OIDHW
    w = jnp.transpose(w_stk.reshape(oc, 3, 3, 3, ci), (0, 4, 1, 2, 3))
    y = jax.lax.conv_general_dilated(
        x, w, window_strides=(1, 1, 1),
        padding=((1, 1), (1, 1), (1, 1)),
        dimension_numbers=("NCDHW", "OIDHW", "NCDHW"),
        precision=jax.lax.Precision.HIGHEST)
    y = y * scale.reshape(1, oc, 1, 1, 1) + bias.reshape(1, oc, 1, 1, 1)
    return jnp.maximum(y, 0.0)


def up_forward_reference(x1, x2, params):
    w1s, s1, b1, w2s, s2, b2 = params
    x = _pad_and_concat(x1, x2)
    y = _reference_conv_bn_relu(x, w1s, s1, b1)
    return _reference_conv_bn_relu(y, w2s, s2, b2)


# ----------------------------------------------------------------------------
# Deterministic parameter init (mimics PyTorch Conv3d default init; BN folded)
# ----------------------------------------------------------------------------
def _init_conv_bn(key, cin, cout):
    k_w, k_b = jax.random.split(key)
    fan_in = cin * 27
    bound = 1.0 / jnp.sqrt(jnp.float32(fan_in))
    w = jax.random.uniform(k_w, (cout, cin, 3, 3, 3), jnp.float32, -bound, bound)
    b = jax.random.uniform(k_b, (cout,), jnp.float32, -bound, bound)
    # BN eval-mode defaults: gamma=1, beta=0, running_mean=0, running_var=1.
    gamma = jnp.ones((cout,), jnp.float32)
    beta = jnp.zeros((cout,), jnp.float32)
    mean = jnp.zeros((cout,), jnp.float32)
    var = jnp.ones((cout,), jnp.float32)
    eps = 1e-5
    scale = gamma / jnp.sqrt(var + eps)
    bias = beta + (b - mean) * scale
    # K-stacked weight, (kd,kh,kw)-major then cin: (cout, cin, kd, kh, kw) ->
    # (cout, kd, kh, kw, cin) -> (cout, 27*cin). Row order matches the kernel's
    # im2col stack (tap-major, then input channel).
    w_stk = jnp.transpose(w, (0, 2, 3, 4, 1)).reshape(cout, 27 * cin)
    return w_stk, scale, bias


def init_up_params(key, in_channels, out_channels1, out_channels2):
    k1, k2 = jax.random.split(key)
    w1, s1, b1 = _init_conv_bn(k1, in_channels, out_channels1)
    w2, s2, b2 = _init_conv_bn(k2, out_channels1, out_channels2)
    return (w1, s1, b1, w2, s2, b2)


# ----------------------------------------------------------------------------
if __name__ == "__main__":
    key = jax.random.PRNGKey(0)
    k_x1, k_x2, k_p = jax.random.split(key, 3)

    # Up(in_channels=8, out_channels1=8, out_channels2=4, trilinear=True)
    in_channels, oc1, oc2 = 8, 8, 4
    N, c_half = 2, in_channels // 2
    D1 = H1 = W1 = 4                                   # x1 spatial (pre-upsample)

    x1 = jax.random.normal(k_x1, (N, c_half, D1, H1, W1), jnp.float32)
    x2 = jax.random.normal(k_x2, (N, c_half, 2 * D1, 2 * H1, 2 * W1), jnp.float32)

    params = init_up_params(k_p, in_channels, oc1, oc2)

    out = jax.jit(up_forward)(x1, x2, params)
    jax.block_until_ready(out)
    assert out.shape == (N, oc2, 2 * D1, 2 * H1, 2 * W1), out.shape

    # Correctness check against the pure-XLA (f32, HIGHEST precision) reference.
    # The kernel uses bf16 matmul operands with f32 accumulation, so a loose
    # 2e-2 tolerance is expected and documented.
    ref = jax.jit(up_forward_reference)(x1, x2, params)
    jax.block_until_ready(ref)
    max_err = float(jnp.max(jnp.abs(out - ref)))
    assert jnp.allclose(out, ref, rtol=2e-2, atol=2e-2), max_err

    print("KERNEL_OK")
</pallas_src>

<mosaic_0001>
module attributes {stable_mosaic.version = 11 : i64} {
  func.func @kernel(%arg0: i32, %arg1: memref<1x8x1280xbf16, #tpu.memory_space<vmem>>, %arg2: memref<8x216xbf16, #tpu.memory_space<vmem>>, %arg3: memref<8x1xf32, #tpu.memory_space<vmem>>, %arg4: memref<8x1xf32, #tpu.memory_space<vmem>>, %arg5: memref<4x216xbf16, #tpu.memory_space<vmem>>, %arg6: memref<4x1xf32, #tpu.memory_space<vmem>>, %arg7: memref<4x1xf32, #tpu.memory_space<vmem>>, %arg8: memref<1x1024xf32, #tpu.memory_space<vmem>>, %arg9: memref<1x4x1024xf32, #tpu.memory_space<vmem>>, %arg10: memref<216x1024xbf16, #tpu.memory_space<vmem>>, %arg11: memref<8x1280xbf16, #tpu.memory_space<vmem>>, %arg12: memref<216x1024xbf16, #tpu.memory_space<vmem>>) attributes {dimension_semantics = [#tpu.dimension_semantics<parallel>], iteration_bounds = array<i64: 2>, scalar_prefetch = 0 : i64, scratch_operands = 3 : i64, tpu.core_type = #tpu.core_type<tc>, window_params = [{transform_indices = @transform_0, window_bounds = array<i64: 1, 8, 1280>}, {pipeline_mode = #tpu.pipeline_mode<synchronous>, transform_indices = @transform_1, window_bounds = array<i64: 8, 216>}, {pipeline_mode = #tpu.pipeline_mode<synchronous>, transform_indices = @transform_2, window_bounds = array<i64: 8, 1>}, {pipeline_mode = #tpu.pipeline_mode<synchronous>, transform_indices = @transform_3, window_bounds = array<i64: 8, 1>}, {pipeline_mode = #tpu.pipeline_mode<synchronous>, transform_indices = @transform_4, window_bounds = array<i64: 4, 216>}, {pipeline_mode = #tpu.pipeline_mode<synchronous>, transform_indices = @transform_5, window_bounds = array<i64: 4, 1>}, {pipeline_mode = #tpu.pipeline_mode<synchronous>, transform_indices = @transform_6, window_bounds = array<i64: 4, 1>}, {pipeline_mode = #tpu.pipeline_mode<synchronous>, transform_indices = @transform_7, window_bounds = array<i64: 1, 1024>}, {transform_indices = @transform_8, window_bounds = array<i64: 1, 4, 1024>}]} {
    %c0 = arith.constant 0 : index
    %c0_0 = arith.constant 0 : index
    %0 = vector.load %arg8[%c0, %c0_0] : memref<1x1024xf32, #tpu.memory_space<vmem>>, vector<1x1024xf32>
    %c0_i32 = arith.constant 0 : i32
    %c0_i32_1 = arith.constant 0 : i32
    %c0_i32_2 = arith.constant 0 : i32
    %1 = tpu.memref_slice %arg1[%c0_i32, %c0_i32_1, %c0_i32_2] : memref<1x8x1280xbf16, #tpu.memory_space<vmem>> -> memref<1x8x1280xbf16, #tpu.memory_space<vmem>>
    %2 = tpu.memref_squeeze %1 : memref<1x8x1280xbf16, #tpu.memory_space<vmem>> -> memref<8x1280xbf16, #tpu.memory_space<vmem>>
    %c0_3 = arith.constant 0 : index
    %c17 = arith.constant 17 : index
    %3 = vector.load %2[%c0_3, %c17] : memref<8x1280xbf16, #tpu.memory_space<vmem>>, vector<8x1024xbf16>
    %c0_4 = arith.constant 0 : index
    %c0_5 = arith.constant 0 : index
    %4 = vector.load %arg10[%c0_4, %c0_5] : memref<216x1024xbf16, #tpu.memory_space<vmem>>, vector<8x1024xbf16>
    tpu.vector_store %arg10[%c0_4, %c0_5], %3 {strides = array<i32>} : memref<216x1024xbf16, #tpu.memory_space<vmem>>, vector<8x1024xbf16>,
    %c0_i32_6 = arith.constant 0 : i32
    %c0_i32_7 = arith.constant 0 : i32
    %c0_i32_8 = arith.constant 0 : i32
    %5 = tpu.memref_slice %arg1[%c0_i32_6, %c0_i32_7, %c0_i32_8] : memref<1x8x1280xbf16, #tpu.memory_space<vmem>> -> memref<1x8x1280xbf16, #tpu.memory_space<vmem>>
    %6 = tpu.memref_squeeze %5 : memref<1x8x1280xbf16, #tpu.memory_space<vmem>> -> memref<8x1280xbf16, #tpu.memory_space<vmem>>
    %c0_9 = arith.constant 0 : index
    %c18 = arith.constant 18 : index
    %7 = vector.load %6[%c0_9, %c18] : memref<8x1280xbf16, #tpu.memory_space<vmem>>, vector<8x1024xbf16>
    %c8 = arith.constant 8 : index
    %c0_10 = arith.constant 0 : index
    %8 = vector.load %arg10[%c8, %c0_10] : memref<216x1024xbf16, #tpu.memory_space<vmem>>, vector<8x1024xbf16>
    tpu.vector_store %arg10[%c8, %c0_10], %7 {strides = array<i32>} : memref<216x1024xbf16, #tpu.memory_space<vmem>>, vector<8x1024xbf16>,
    %c0_i32_11 = arith.constant 0 : i32
    %c0_i32_12 = arith.constant 0 : i32
    %c0_i32_13 = arith.constant 0 : i32
    %9 = tpu.memref_slice %arg1[%c0_i32_11, %c0_i32_12, %c0_i32_13] : memref<1x8x1280xbf16, #tpu.memory_space<vmem>> -> memref<1x8x1280xbf16, #tpu.memory_space<vmem>>
    %10 = tpu.memref_squeeze %9 : memref<1x8x1280xbf16, #tpu.memory_space<vmem>> -> memref<8x1280xbf16, #tpu.memory_space<vmem>>
    %c0_14 = arith.constant 0 : index
    %c19 = arith.constant 19 : index
    %11 = vector.load %10[%c0_14, %c19] : memref<8x1280xbf16, #tpu.memory_space<vmem>>, vector<8x1024xbf16>
    %c16 = arith.constant 16 : index
    %c0_15 = arith.constant 0 : index
    %12 = vector.load %arg10[%c16, %c0_15] : memref<216x1024xbf16, #tpu.memory_space<vmem>>, vector<8x1024xbf16>
    tpu.vector_store %arg10[%c16, %c0_15], %11 {strides = array<i32>} : memref<216x1024xbf16, #tpu.memory_space<vmem>>, vector<8x1024xbf16>,
    %c0_i32_16 = arith.constant 0 : i32
    %c0_i32_17 = arith.constant 0 : i32
    %c0_i32_18 = arith.constant 0 : i32
    %13 = tpu.memref_slice %arg1[%c0_i32_16, %c0_i32_17, %c0_i32_18] : memref<1x8x1280xbf16, #tpu.memory_space<vmem>> -> memref<1x8x1280xbf16, #tpu.memory_space<vmem>>
    %14 = tpu.memref_squeeze %13 : memref<1x8x1280xbf16, #tpu.memory_space<vmem>> -> memref<8x1280xbf16, #tpu.memory_space<vmem>>
    %c0_19 = arith.constant 0 : index
    %c27 = arith.constant 27 : index
    %15 = vector.load %14[%c0_19, %c27] : memref<8x1280xbf16, #tpu.memory_space<vmem>>, vector<8x1024xbf16>
    %c24 = arith.constant 24 : index
    %c0_20 = arith.constant 0 : index
    %16 = vector.load %arg10[%c24, %c0_20] : memref<216x1024xbf16, #tpu.memory_space<vmem>>, vector<8x1024xbf16>
    tpu.vector_store %arg10[%c24, %c0_20], %15 {strides = array<i32>} : memref<216x1024xbf16, #tpu.memory_space<vmem>>, vector<8x1024xbf16>,
    %c0_i32_21 = arith.constant 0 : i32
    %c0_i32_22 = arith.constant 0 : i32
    %c0_i32_23 = arith.constant 0 : i32
    %17 = tpu.memref_slice %arg1[%c0_i32_21, %c0_i32_22, %c0_i32_23] : memref<1x8x1280xbf16, #tpu.memory_space<vmem>> -> memref<1x8x1280xbf16, #tpu.memory_space<vmem>>
    %18 = tpu.memref_squeeze %17 : memref<1x8x1280xbf16, #tpu.memory_space<vmem>> -> memref<8x1280xbf16, #tpu.memory_space<vmem>>
    %c0_24 = arith.constant 0 : index
    %c28 = arith.constant 28 : index
    %19 = vector.load %18[%c0_24, %c28] : memref<8x1280xbf16, #tpu.memory_space<vmem>>, vector<8x1024xbf16>
    %c32 = arith.constant 32 : index
    %c0_25 = arith.constant 0 : index
    %20 = vector.load %arg10[%c32, %c0_25] : memref<216x1024xbf16, #tpu.memory_space<vmem>>, vector<8x1024xbf16>
    tpu.vector_store %arg10[%c32, %c0_25], %19 {strides = array<i32>} : memref<216x1024xbf16, #tpu.memory_space<vmem>>, vector<8x1024xbf16>,
    %c0_i32_26 = arith.constant 0 : i32
    %c0_i32_27 = arith.constant 0 : i32
    %c0_i32_28 = arith.constant 0 : i32
    %21 = tpu.memref_slice %arg1[%c0_i32_26, %c0_i32_27, %c0_i32_28] : memref<1x8x1280xbf16, #tpu.memory_space<vmem>> -> memref<1x8x1280xbf16, #tpu.memory_space<vmem>>
    %22 = tpu.memref_squeeze %21 : memref<1x8x1280xbf16, #tpu.memory_space<vmem>> -> memref<8x1280xbf16, #tpu.memory_space<vmem>>
    %c0_29 = arith.constant 0 : index
    %c29 = arith.constant 29 : index
    %23 = vector.load %22[%c0_29, %c29] : memref<8x1280xbf16, #tpu.memory_space<vmem>>, vector<8x1024xbf16>
    %c40 = arith.constant 40 : index
    %c0_30 = arith.constant 0 : index
    %24 = vector.load %arg10[%c40, %c0_30] : memref<216x1024xbf16, #tpu.memory_space<vmem>>, vector<8x1024xbf16>
    tpu.vector_store %arg10[%c40, %c0_30], %23 {strides = array<i32>} : memref<216x1024xbf16, #tpu.memory_space<vmem>>, vector<8x1024xbf16>,
    %c0_i32_31 = arith.constant 0 : i32
    %c0_i32_32 = arith.constant 0 : i32
    %c0_i32_33 = arith.constant 0 : i32
    %25 = tpu.memref_slice %arg1[%c0_i32_31, %c0_i32_32, %c0_i32_33] : memref<1x8x1280xbf16, #tpu.memory_space<vmem>> -> memref<1x8x1280xbf16, #tpu.memory_space<vmem>>
    %26 = tpu.memref_squeeze %25 : memref<1x8x1280xbf16, #tpu.memory_space<vmem>> -> memref<8x1280xbf16, #tpu.memory_space<vmem>>
    %c0_34 = arith.constant 0 : index
    %c37 = arith.constant 37 : index
    %27 = vector.load %26[%c0_34, %c37] : memref<8x1280xbf16, #tpu.memory_space<vmem>>, vector<8x1024xbf16>
    %c48 = arith.constant 48 : index
    %c0_35 = arith.constant 0 : index
    %28 = vector.load %arg10[%c48, %c0_35] : memref<216x1024xbf16, #tpu.memory_space<vmem>>, vector<8x1024xbf16>
    tpu.vector_store %arg10[%c48, %c0_35], %27 {strides = array<i32>} : memref<216x1024xbf16, #tpu.memory_space<vmem>>, vector<8x1024xbf16>,
    %c0_i32_36 = arith.constant 0 : i32
    %c0_i32_37 = arith.constant 0 : i32
    %c0_i32_38 = arith.constant 0 : i32
    %29 = tpu.memref_slice %arg1[%c0_i32_36, %c0_i32_37, %c0_i32_38] : memref<1x8x1280xbf16, #tpu.memory_space<vmem>> -> memref<1x8x1280xbf16, #tpu.memory_space<vmem>>
    %30 = tpu.memref_squeeze %29 : memref<1x8x1280xbf16, #tpu.memory_space<vmem>> -> memref<8x1280xbf16, #tpu.memory_space<vmem>>
    %c0_39 = arith.constant 0 : index
    %c38 = arith.constant 38 : index
    %31 = vector.load %30[%c0_39, %c38] : memref<8x1280xbf16, #tpu.memory_space<vmem>>, vector<8x1024xbf16>
    %c56 = arith.constant 56 : index
    %c0_40 = arith.constant 0 : index
    %32 = vector.load %arg10[%c56, %c0_40] : memref<216x1024xbf16, #tpu.memory_space<vmem>>, vector<8x1024xbf16>
    tpu.vector_store %arg10[%c56, %c0_40], %31 {strides = array<i32>} : memref<216x1024xbf16, #tpu.memory_space<vmem>>, vector<8x1024xbf16>,
    %c0_i32_41 = arith.constant 0 : i32
    %c0_i32_42 = arith.constant 0 : i32
    %c0_i32_43 = arith.constant 0 : i32
    %33 = tpu.memref_slice %arg1[%c0_i32_41, %c0_i32_42, %c0_i32_43] : memref<1x8x1280xbf16, #tpu.memory_space<vmem>> -> memref<1x8x1280xbf16, #tpu.memory_space<vmem>>
    %34 = tpu.memref_squeeze %33 : memref<1x8x1280xbf16, #tpu.memory_space<vmem>> -> memref<8x1280xbf16, #tpu.memory_space<vmem>>
    %c0_44 = arith.constant 0 : index
    %c39 = arith.constant 39 : index
    %35 = vector.load %34[%c0_44, %c39] : memref<8x1280xbf16, #tpu.memory_space<vmem>>, vector<8x1024xbf16>
    %c64 = arith.constant 64 : index
    %c0_45 = arith.constant 0 : index
    %36 = vector.load %arg10[%c64, %c0_45] : memref<216x1024xbf16, #tpu.memory_space<vmem>>, vector<8x1024xbf16>
    tpu.vector_store %arg10[%c64, %c0_45], %35 {strides = array<i32>} : memref<216x1024xbf16, #tpu.memory_space<vmem>>, vector<8x1024xbf16>,
    %c0_i32_46 = arith.constant 0 : i32
    %c0_i32_47 = arith.constant 0 : i32
    %c0_i32_48 = arith.constant 0 : i32
    %37 = tpu.memref_slice %arg1[%c0_i32_46, %c0_i32_47, %c0_i32_48] : memref<1x8x1280xbf16, #tpu.memory_space<vmem>> -> memref<1x8x1280xbf16, #tpu.memory_space<vmem>>
    %38 = tpu.memref_squeeze %37 : memref<1x8x1280xbf16, #tpu.memory_space<vmem>> -> memref<8x1280xbf16, #tpu.memory_space<vmem>>
    %c0_49 = arith.constant 0 : index
    %c117 = arith.constant 117 : index
    %39 = vector.load %38[%c0_49, %c117] : memref<8x1280xbf16, #tpu.memory_space<vmem>>, vector<8x1024xbf16>
    %c72 = arith.constant 72 : index
    %c0_50 = arith.constant 0 : index
    %40 = vector.load %arg10[%c72, %c0_50] : memref<216x1024xbf16, #tpu.memory_space<vmem>>, vector<8x1024xbf16>
    tpu.vector_store %arg10[%c72, %c0_50], %39 {strides = array<i32>} : memref<216x1024xbf16, #tpu.memory_space<vmem>>, vector<8x1024xbf16>,
    %c0_i32_51 = arith.constant 0 : i32
    %c0_i32_52 = arith.constant 0 : i32
    %c0_i32_53 = arith.constant 0 : i32
    %41 = tpu.memref_slice %arg1[%c0_i32_51, %c0_i32_52, %c0_i32_53] : memref<1x8x1280xbf16, #tpu.memory_space<vmem>> -> memref<1x8x1280xbf16, #tpu.memory_space<vmem>>
    %42 = tpu.memref_squeeze %41 : memref<1x8x1280xbf16, #tpu.memory_space<vmem>> -> memref<8x1280xbf16, #tpu.memory_space<vmem>>
    %c0_54 = arith.constant 0 : index
    %c118 = arith.constant 118 : index
    %43 = vector.load %42[%c0_54, %c118] : memref<8x1280xbf16, #tpu.memory_space<vmem>>, vector<8x1024xbf16>
    %c80 = arith.constant 80 : index
    %c0_55 = arith.constant 0 : index
    %44 = vector.load %arg10[%c80, %c0_55] : memref<216x1024xbf16, #tpu.memory_space<vmem>>, vector<8x1024xbf16>
    tpu.vector_store %arg10[%c80, %c0_55], %43 {strides = array<i32>} : memref<216x1024xbf16, #tpu.memory_space<vmem>>, vector<8x1024xbf16>,
    %c0_i32_56 = arith.constant 0 : i32
    %c0_i32_57 = arith.constant 0 : i32
    %c0_i32_58 = arith.constant 0 : i32
    %45 = tpu.memref_slice %arg1[%c0_i32_56, %c0_i32_57, %c0_i32_58] : memref<1x8x1280xbf16, #tpu.memory_space<vmem>> -> memref<1x8x1280xbf16, #tpu.memory_space<vmem>>
    %46 = tpu.memref_squeeze %45 : memref<1x8x1280xbf16, #tpu.memory_space<vmem>> -> memref<8x1280xbf16, #tpu.memory_space<vmem>>
    %c0_59 = arith.constant 0 : index
    %c119 = arith.constant 119 : index
    %47 = vector.load %46[%c0_59, %c119] : memref<8x1280xbf16, #tpu.memory_space<vmem>>, vector<8x1024xbf16>
    %c88 = arith.constant 88 : index
    %c0_60 = arith.constant 0 : index
    %48 = vector.load %arg10[%c88, %c0_60] : memref<216x1024xbf16, #tpu.memory_space<vmem>>, vector<8x1024xbf16>
    tpu.vector_store %arg10[%c88, %c0_60], %47 {strides = array<i32>} : memref<216x1024xbf16, #tpu.memory_space<vmem>>, vector<8x1024xbf16>,
    %c0_i32_61 = arith.constant 0 : i32
    %c0_i32_62 = arith.constant 0 : i32
    %c0_i32_63 = arith.constant 0 : i32
    %49 = tpu.memref_slice %arg1[%c0_i32_61, %c0_i32_62, %c0_i32_63] : memref<1x8x1280xbf16, #tpu.memory_space<vmem>> -> memref<1x8x1280xbf16, #tpu.memory_space<vmem>>
    %50 = tpu.memref_squeeze %49 : memref<1x8x1280xbf16, #tpu.memory_space<vmem>> -> memref<8x1280xbf16, #tpu.memory_space<vmem>>
    %c0_64 = arith.constant 0 : index
    %c127 = arith.constant 127 : index
    %51 = vector.load %50[%c0_64, %c127] : memref<8x1280xbf16, #tpu.memory_space<vmem>>, vector<8x1024xbf16>
    %c96 = arith.constant 96 : index
    %c0_65 = arith.constant 0 : index
    %52 = vector.load %arg10[%c96, %c0_65] : memref<216x1024xbf16, #tpu.memory_space<vmem>>, vector<8x1024xbf16>
    tpu.vector_store %arg10[%c96, %c0_65], %51 {strides = array<i32>} : memref<216x1024xbf16, #tpu.memory_space<vmem>>, vector<8x1024xbf16>,
    %c0_i32_66 = arith.constant 0 : i32
    %c0_i32_67 = arith.constant 0 : i32
    %c0_i32_68 = arith.constant 0 : i32
    %53 = tpu.memref_slice %arg1[%c0_i32_66, %c0_i32_67, %c0_i32_68] : memref<1x8x1280xbf16, #tpu.memory_space<vmem>> -> memref<1x8x1280xbf16, #tpu.memory_space<vmem>>
    %54 = tpu.memref_squeeze %53 : memref<1x8x1280xbf16, #tpu.memory_space<vmem>> -> memref<8x1280xbf16, #tpu.memory_space<vmem>>
    %c0_69 = arith.constant 0 : index
    %c128 = arith.constant 128 : index
    %55 = vector.load %54[%c0_69, %c128] : memref<8x1280xbf16, #tpu.memory_space<vmem>>, vector<8x1024xbf16>
    %c104 = arith.constant 104 : index
    %c0_70 = arith.constant 0 : index
    %56 = vector.load %arg10[%c104, %c0_70] : memref<216x1024xbf16, #tpu.memory_space<vmem>>, vector<8x1024xbf16>
    tpu.vector_store %arg10[%c104, %c0_70], %55 {strides = array<i32>} : memref<216x1024xbf16, #tpu.memory_space<vmem>>, vector<8x1024xbf16>,
    %c0_i32_71 = arith.constant 0 : i32
    %c0_i32_72 = arith.constant 0 : i32
    %c0_i32_73 = arith.constant 0 : i32
    %57 = tpu.memref_slice %arg1[%c0_i32_71, %c0_i32_72, %c0_i32_73] : memref<1x8x1280xbf16, #tpu.memory_space<vmem>> -> memref<1x8x1280xbf16, #tpu.memory_space<vmem>>
    %58 = tpu.memref_squeeze %57 : memref<1x8x1280xbf16, #tpu.memory_space<vmem>> -> memref<8x1280xbf16, #tpu.memory_space<vmem>>
    %c0_74 = arith.constant 0 : index
    %c129 = arith.constant 129 : index
    %59 = vector.load %58[%c0_74, %c129] : memref<8x1280xbf16, #tpu.memory_space<vmem>>, vector<8x1024xbf16>
    %c112 = arith.constant 112 : index
    %c0_75 = arith.constant 0 : index
    %60 = vector.load %arg10[%c112, %c0_75] : memref<216x1024xbf16, #tpu.memory_space<vmem>>, vector<8x1024xbf16>
    tpu.vector_store %arg10[%c112, %c0_75], %59 {strides = array<i32>} : memref<216x1024xbf16, #tpu.memory_space<vmem>>, vector<8x1024xbf16>,
    %c0_i32_76 = arith.constant 0 : i32
    %c0_i32_77 = arith.constant 0 : i32
    %c0_i32_78 = arith.constant 0 : i32
    %61 = tpu.memref_slice %arg1[%c0_i32_76, %c0_i32_77, %c0_i32_78] : memref<1x8x1280xbf16, #tpu.memory_space<vmem>> -> memref<1x8x1280xbf16, #tpu.memory_space<vmem>>
    %62 = tpu.memref_squeeze %61 : memref<1x8x1280xbf16, #tpu.memory_space<vmem>> -> memref<8x1280xbf16, #tpu.memory_space<vmem>>
    %c0_79 = arith.constant 0 : index
    %c137 = arith.constant 137 : index
    %63 = vector.load %62[%c0_79, %c137] : memref<8x1280xbf16, #tpu.memory_space<vmem>>, vector<8x1024xbf16>
    %c120 = arith.constant 120 : index
    %c0_80 = arith.constant 0 : index
    %64 = vector.load %arg10[%c120, %c0_80] : memref<216x1024xbf16, #tpu.memory_space<vmem>>, vector<8x1024xbf16>
    tpu.vector_store %arg10[%c120, %c0_80], %63 {strides = array<i32>} : memref<216x1024xbf16, #tpu.memory_space<vmem>>, vector<8x1024xbf16>,
    %c0_i32_81 = arith.constant 0 : i32
    %c0_i32_82 = arith.constant 0 : i32
    %c0_i32_83 = arith.constant 0 : i32
    %65 = tpu.memref_slice %arg1[%c0_i32_81, %c0_i32_82, %c0_i32_83] : memref<1x8x1280xbf16, #tpu.memory_space<vmem>> -> memref<1x8x1280xbf16, #tpu.memory_space<vmem>>
    %66 = tpu.memref_squeeze %65 : memref<1x8x1280xbf16, #tpu.memory_space<vmem>> -> memref<8x1280xbf16, #tpu.memory_space<vmem>>
    %c0_84 = arith.constant 0 : index
    %c138 = arith.constant 138 : index
    %67 = vector.load %66[%c0_84, %c138] : memref<8x1280xbf16, #tpu.memory_space<vmem>>, vector<8x1024xbf16>
    %c128_85 = arith.constant 128 : index
    %c0_86 = arith.constant 0 : index
    %68 = vector.load %arg10[%c128_85, %c0_86] : memref<216x1024xbf16, #tpu.memory_space<vmem>>, vector<8x1024xbf16>
    tpu.vector_store %arg10[%c128_85, %c0_86], %67 {strides = array<i32>} : memref<216x1024xbf16, #tpu.memory_space<vmem>>, vector<8x1024xbf16>,
    %c0_i32_87 = arith.constant 0 : i32
    %c0_i32_88 = arith.constant 0 : i32
    %c0_i32_89 = arith.constant 0 : i32
    %69 = tpu.memref_slice %arg1[%c0_i32_87, %c0_i32_88, %c0_i32_89] : memref<1x8x1280xbf16, #tpu.memory_space<vmem>> -> memref<1x8x1280xbf16, #tpu.memory_space<vmem>>
    %70 = tpu.memref_squeeze %69 : memref<1x8x1280xbf16, #tpu.memory_space<vmem>> -> memref<8x1280xbf16, #tpu.memory_space<vmem>>
    %c0_90 = arith.constant 0 : index
    %c139 = arith.constant 139 : index
    %71 = vector.load %70[%c0_90, %c139] : memref<8x1280xbf16, #tpu.memory_space<vmem>>, vector<8x1024xbf16>
    %c136 = arith.constant 136 : index
    %c0_91 = arith.constant 0 : index
    %72 = vector.load %arg10[%c136, %c0_91] : memref<216x1024xbf16, #tpu.memory_space<vmem>>, vector<8x1024xbf16>
    tpu.vector_store %arg10[%c136, %c0_91], %71 {strides = array<i32>} : memref<216x1024xbf16, #tpu.memory_space<vmem>>, vector<8x1024xbf16>,
    %c0_i32_92 = arith.constant 0 : i32
    %c0_i32_93 = arith.constant 0 : i32
    %c0_i32_94 = arith.constant 0 : i32
    %73 = tpu.memref_slice %arg1[%c0_i32_92, %c0_i32_93, %c0_i32_94] : memref<1x8x1280xbf16, #tpu.memory_space<vmem>> -> memref<1x8x1280xbf16, #tpu.memory_space<vmem>>
    %74 = tpu.memref_squeeze %73 : memref<1x8x1280xbf16, #tpu.memory_space<vmem>> -> memref<8x1280xbf16, #tpu.memory_space<vmem>>
    %c0_95 = arith.constant 0 : index
    %c217 = arith.constant 217 : index
    %75 = vector.load %74[%c0_95, %c217] : memref<8x1280xbf16, #tpu.memory_space<vmem>>, vector<8x1024xbf16>
    %c144 = arith.constant 144 : index
    %c0_96 = arith.constant 0 : index
    %76 = vector.load %arg10[%c144, %c0_96] : memref<216x1024xbf16, #tpu.memory_space<vmem>>, vector<8x1024xbf16>
    tpu.vector_store %arg10[%c144, %c0_96], %75 {strides = array<i32>} : memref<216x1024xbf16, #tpu.memory_space<vmem>>, vector<8x1024xbf16>,
    %c0_i32_97 = arith.constant 0 : i32
    %c0_i32_98 = arith.constant 0 : i32
    %c0_i32_99 = arith.constant 0 : i32
    %77 = tpu.memref_slice %arg1[%c0_i32_97, %c0_i32_98, %c0_i32_99] : memref<1x8x1280xbf16, #tpu.memory_space<vmem>> -> memref<1x8x1280xbf16, #tpu.memory_space<vmem>>
    %78 = tpu.memref_squeeze %77 : memref<1x8x1280xbf16, #tpu.memory_space<vmem>> -> memref<8x1280xbf16, #tpu.memory_space<vmem>>
    %c0_100 = arith.constant 0 : index
    %c218 = arith.constant 218 : index
    %79 = vector.load %78[%c0_100, %c218] : memref<8x1280xbf16, #tpu.memory_space<vmem>>, vector<8x1024xbf16>
    %c152 = arith.constant 152 : index
    %c0_101 = arith.constant 0 : index
    %80 = vector.load %arg10[%c152, %c0_101] : memref<216x1024xbf16, #tpu.memory_space<vmem>>, vector<8x1024xbf16>
    tpu.vector_store %arg10[%c152, %c0_101], %79 {strides = array<i32>} : memref<216x1024xbf16, #tpu.memory_space<vmem>>, vector<8x1024xbf16>,
    %c0_i32_102 = arith.constant 0 : i32
    %c0_i32_103 = arith.constant 0 : i32
    %c0_i32_104 = arith.constant 0 : i32
    %81 = tpu.memref_slice %arg1[%c0_i32_102, %c0_i32_103, %c0_i32_104] : memref<1x8x1280xbf16, #tpu.memory_space<vmem>> -> memref<1x8x1280xbf16, #tpu.memory_space<vmem>>
    %82 = tpu.memref_squeeze %81 : memref<1x8x1280xbf16, #tpu.memory_space<vmem>> -> memref<8x1280xbf16, #tpu.memory_space<vmem>>
    %c0_105 = arith.constant 0 : index
    %c219 = arith.constant 219 : index
    %83 = vector.load %82[%c0_105, %c219] : memref<8x1280xbf16, #tpu.memory_space<vmem>>, vector<8x1024xbf16>
    %c160 = arith.constant 160 : index
    %c0_106 = arith.constant 0 : index
    %84 = vector.load %arg10[%c160, %c0_106] : memref<216x1024xbf16, #tpu.memory_space<vmem>>, vector<8x1024xbf16>
    tpu.vector_store %arg10[%c160, %c0_106], %83 {strides = array<i32>} : memref<216x1024xbf16, #tpu.memory_space<vmem>>, vector<8x1024xbf16>,
    %c0_i32_107 = arith.constant 0 : i32
    %c0_i32_108 = arith.constant 0 : i32
    %c0_i32_109 = arith.constant 0 : i32
    %85 = tpu.memref_slice %arg1[%c0_i32_107, %c0_i32_108, %c0_i32_109] : memref<1x8x1280xbf16, #tpu.memory_space<vmem>> -> memref<1x8x1280xbf16, #tpu.memory_space<vmem>>
    %86 = tpu.memref_squeeze %85 : memref<1x8x1280xbf16, #tpu.memory_space<vmem>> -> memref<8x1280xbf16, #tpu.memory_space<vmem>>
    %c0_110 = arith.constant 0 : index
    %c227 = arith.constant 227 : index
    %87 = vector.load %86[%c0_110, %c227] : memref<8x1280xbf16, #tpu.memory_space<vmem>>, vector<8x1024xbf16>
    %c168 = arith.constant 168 : index
    %c0_111 = arith.constant 0 : index
    %88 = vector.load %arg10[%c168, %c0_111] : memref<216x1024xbf16, #tpu.memory_space<vmem>>, vector<8x1024xbf16>
    tpu.vector_store %arg10[%c168, %c0_111], %87 {strides = array<i32>} : memref<216x1024xbf16, #tpu.memory_space<vmem>>, vector<8x1024xbf16>,
    %c0_i32_112 = arith.constant 0 : i32
    %c0_i32_113 = arith.constant 0 : i32
    %c0_i32_114 = arith.constant 0 : i32
    %89 = tpu.memref_slice %arg1[%c0_i32_112, %c0_i32_113, %c0_i32_114] : memref<1x8x1280xbf16, #tpu.memory_space<vmem>> -> memref<1x8x1280xbf16, #tpu.memory_space<vmem>>
    %90 = tpu.memref_squeeze %89 : memref<1x8x1280xbf16, #tpu.memory_space<vmem>> -> memref<8x1280xbf16, #tpu.memory_space<vmem>>
    %c0_115 = arith.constant 0 : index
    %c228 = arith.constant 228 : index
    %91 = vector.load %90[%c0_115, %c228] : memref<8x1280xbf16, #tpu.memory_space<vmem>>, vector<8x1024xbf16>
    %c176 = arith.constant 176 : index
    %c0_116 = arith.constant 0 : index
    %92 = vector.load %arg10[%c176, %c0_116] : memref<216x1024xbf16, #tpu.memory_space<vmem>>, vector<8x1024xbf16>
    tpu.vector_store %arg10[%c176, %c0_116], %91 {strides = array<i32>} : memref<216x1024xbf16, #tpu.memory_space<vmem>>, vector<8x1024xbf16>,
    %c0_i32_117 = arith.constant 0 : i32
    %c0_i32_118 = arith.constant 0 : i32
    %c0_i32_119 = arith.constant 0 : i32
    %93 = tpu.memref_slice %arg1[%c0_i32_117, %c0_i32_118, %c0_i32_119] : memref<1x8x1280xbf16, #tpu.memory_space<vmem>> -> memref<1x8x1280xbf16, #tpu.memory_space<vmem>>
    %94 = tpu.memref_squeeze %93 : memref<1x8x1280xbf16, #tpu.memory_space<vmem>> -> memref<8x1280xbf16, #tpu.memory_space<vmem>>
    %c0_120 = arith.constant 0 : index
    %c229 = arith.constant 229 : index
    %95 = vector.load %94[%c0_120, %c229] : memref<8x1280xbf16, #tpu.memory_space<vmem>>, vector<8x1024xbf16>
    %c184 = arith.constant 184 : index
    %c0_121 = arith.constant 0 : index
    %96 = vector.load %arg10[%c184, %c0_121] : memref<216x1024xbf16, #tpu.memory_space<vmem>>, vector<8x1024xbf16>
    tpu.vector_store %arg10[%c184, %c0_121], %95 {strides = array<i32>} : memref<216x1024xbf16, #tpu.memory_space<vmem>>, vector<8x1024xbf16>,
    %c0_i32_122 = arith.constant 0 : i32
    %c0_i32_123 = arith.constant 0 : i32
    %c0_i32_124 = arith.constant 0 : i32
    %97 = tpu.memref_slice %arg1[%c0_i32_122, %c0_i32_123, %c0_i32_124] : memref<1x8x1280xbf16, #tpu.memory_space<vmem>> -> memref<1x8x1280xbf16, #tpu.memory_space<vmem>>
    %98 = tpu.memref_squeeze %97 : memref<1x8x1280xbf16, #tpu.memory_space<vmem>> -> memref<8x1280xbf16, #tpu.memory_space<vmem>>
    %c0_125 = arith.constant 0 : index
    %c237 = arith.constant 237 : index
    %99 = vector.load %98[%c0_125, %c237] : memref<8x1280xbf16, #tpu.memory_space<vmem>>, vector<8x1024xbf16>
    %c192 = arith.constant 192 : index
    %c0_126 = arith.constant 0 : index
    %100 = vector.load %arg10[%c192, %c0_126] : memref<216x1024xbf16, #tpu.memory_space<vmem>>, vector<8x1024xbf16>
    tpu.vector_store %arg10[%c192, %c0_126], %99 {strides = array<i32>} : memref<216x1024xbf16, #tpu.memory_space<vmem>>, vector<8x1024xbf16>,
    %c0_i32_127 = arith.constant 0 : i32
    %c0_i32_128 = arith.constant 0 : i32
    %c0_i32_129 = arith.constant 0 : i32
    %101 = tpu.memref_slice %arg1[%c0_i32_127, %c0_i32_128, %c0_i32_129] : memref<1x8x1280xbf16, #tpu.memory_space<vmem>> -> memref<1x8x1280xbf16, #tpu.memory_space<vmem>>
    %102 = tpu.memref_squeeze %101 : memref<1x8x1280xbf16, #tpu.memory_space<vmem>> -> memref<8x1280xbf16, #tpu.memory_space<vmem>>
    %c0_130 = arith.constant 0 : index
    %c238 = arith.constant 238 : index
    %103 = vector.load %102[%c0_130, %c238] : memref<8x1280xbf16, #tpu.memory_space<vmem>>, vector<8x1024xbf16>
    %c200 = arith.constant 200 : index
    %c0_131 = arith.constant 0 : index
    %104 = vector.load %arg10[%c200, %c0_131] : memref<216x1024xbf16, #tpu.memory_space<vmem>>, vector<8x1024xbf16>
    tpu.vector_store %arg10[%c200, %c0_131], %103 {strides = array<i32>} : memref<216x1024xbf16, #tpu.memory_space<vmem>>, vector<8x1024xbf16>,
    %c0_i32_132 = arith.constant 0 : i32
    %c0_i32_133 = arith.constant 0 : i32
    %c0_i32_134 = arith.constant 0 : i32
    %105 = tpu.memref_slice %arg1[%c0_i32_132, %c0_i32_133, %c0_i32_134] : memref<1x8x1280xbf16, #tpu.memory_space<vmem>> -> memref<1x8x1280xbf16, #tpu.memory_space<vmem>>
    %106 = tpu.memref_squeeze %105 : memref<1x8x1280xbf16, #tpu.memory_space<vmem>> -> memref<8x1280xbf16, #tpu.memory_space<vmem>>
    %c0_135 = arith.constant 0 : index
    %c239 = arith.constant 239 : index
    %107 = vector.load %106[%c0_135, %c239] : memref<8x1280xbf16, #tpu.memory_space<vmem>>, vector<8x1024xbf16>
    %c208 = arith.constant 208 : index
    %c0_136 = arith.constant 0 : index
    %108 = vector.load %arg10[%c208, %c0_136] : memref<216x1024xbf16, #tpu.memory_space<vmem>>, vector<8x1024xbf16>
    tpu.vector_store %arg10[%c208, %c0_136], %107 {strides = array<i32>} : memref<216x1024xbf16, #tpu.memory_space<vmem>>, vector<8x1024xbf16>,
    %c0_137 = arith.constant 0 : index
    %c0_138 = arith.constant 0 : index
    %109 = vector.load %arg2[%c0_137, %c0_138] : memref<8x216xbf16, #tpu.memory_space<vmem>>, vector<8x216xbf16>
    %c0_139 = arith.constant 0 : index
    %c0_140 = arith.constant 0 : index
    %110 = vector.load %arg10[%c0_139, %c0_140] : memref<216x1024xbf16, #tpu.memory_space<vmem>>, vector<216x1024xbf16>
    %cst = arith.constant dense<0.000000e+00> : vector<8x1024xf32>
    %111 = tpu.matmul %109, %110, %cst {dimension_numbers = #tpu.dot_dimension_numbers<[1], [0], [0], [1], [0, 0, 1, 1], [], []>} : vector<8x216xbf16>, vector<216x1024xbf16>, vector<8x1024xf32> -> vector<8x1024xf32>
    %c0_141 = arith.constant 0 : index
    %c0_142 = arith.constant 0 : index
    %112 = vector.load %arg3[%c0_141, %c0_142] : memref<8x1xf32, #tpu.memory_space<vmem>>, vector<8x1xf32>
    %113 = vector.broadcast %112 : vector<8x1xf32> to vector<8x1024xf32>
    %114 = arith.mulf %111, %113 : vector<8x1024xf32>
    %c0_143 = arith.constant 0 : index
    %c0_144 = arith.constant 0 : index
    %115 = vector.load %arg4[%c0_143, %c0_144] : memref<8x1xf32, #tpu.memory_space<vmem>>, vector<8x1xf32>
    %116 = vector.broadcast %115 : vector<8x1xf32> to vector<8x1024xf32>
    %117 = arith.addf %114, %116 : vector<8x1024xf32>
    %cst_145 = arith.constant 0.000000e+00 : f32
    %118 = vector.broadcast %cst_145 : f32 to vector<8x1024xf32>
    %119 = arith.maximumf %117, %118 : vector<8x1024xf32>
    %120 = vector.broadcast %0 : vector<1x1024xf32> to vector<8x1024xf32>
    %121 = arith.mulf %119, %120 : vector<8x1024xf32>
    %cst_146 = arith.constant 0.000000e+00 : bf16
    %122 = vector.broadcast %cst_146 : bf16 to vector<8x128xbf16>
    %c0_147 = arith.constant 0 : index
    %c0_148 = arith.constant 0 : index
    %123 = vector.load %arg11[%c0_147, %c0_148] : memref<8x1280xbf16, #tpu.memory_space<vmem>>, vector<8x128xbf16>
    tpu.vector_store %arg11[%c0_147, %c0_148], %122 {strides = array<i32>} : memref<8x1280xbf16, #tpu.memory_space<vmem>>, vector<8x128xbf16>,
    %cst_149 = arith.constant 0.000000e+00 : bf16
    %124 = vector.broadcast %cst_149 : bf16 to vector<8x128xbf16>
    %c0_150 = arith.constant 0 : index
    %c1152 = arith.constant 1152 : index
    %125 = vector.load %arg11[%c0_150, %c1152] : memref<8x1280xbf16, #tpu.memory_space<vmem>>, vector<8x128xbf16>
    tpu.vector_store %arg11[%c0_150, %c1152], %124 {strides = array<i32>} : memref<8x1280xbf16, #tpu.memory_space<vmem>>, vector<8x128xbf16>,
    %126 = arith.truncf %121 : vector<8x1024xf32> to vector<8x1024xbf16>
    %c0_151 = arith.constant 0 : index
    %c128_152 = arith.constant 128 : index
    %127 = vector.load %arg11[%c0_151, %c128_152] : memref<8x1280xbf16, #tpu.memory_space<vmem>>, vector<8x1024xbf16>
    tpu.vector_store %arg11[%c0_151, %c128_152], %126 {strides = array<i32>} : memref<8x1280xbf16, #tpu.memory_space<vmem>>, vector<8x1024xbf16>,
    %c0_153 = arith.constant 0 : index
    %c17_154 = arith.constant 17 : index
    %128 = vector.load %arg11[%c0_153, %c17_154] : memref<8x1280xbf16, #tpu.memory_space<vmem>>, vector<8x1024xbf16>
    %c0_155 = arith.constant 0 : index
    %c0_156 = arith.constant 0 : index
    %129 = vector.load %arg12[%c0_155, %c0_156] : memref<216x1024xbf16, #tpu.memory_space<vmem>>, vector<8x1024xbf16>
    tpu.vector_store %arg12[%c0_155, %c0_156], %128 {strides = array<i32>} : memref<216x1024xbf16, #tpu.memory_space<vmem>>, vector<8x1024xbf16>,
    %c0_157 = arith.constant 0 : index
    %c18_158 = arith.constant 18 : index
    %130 = vector.load %arg11[%c0_157, %c18_158] : memref<8x1280xbf16, #tpu.memory_space<vmem>>, vector<8x1024xbf16>
    %c8_159 = arith.constant 8 : index
    %c0_160 = arith.constant 0 : index
    %131 = vector.load %arg12[%c8_159, %c0_160] : memref<216x1024xbf16, #tpu.memory_space<vmem>>, vector<8x1024xbf16>
    tpu.vector_store %arg12[%c8_159, %c0_160], %130 {strides = array<i32>} : memref<216x1024xbf16, #tpu.memory_space<vmem>>, vector<8x1024xbf16>,
    %c0_161 = arith.constant 0 : index
    %c19_162 = arith.constant 19 : index
    %132 = vector.load %arg11[%c0_161, %c19_162] : memref<8x1280xbf16, #tpu.memory_space<vmem>>, vector<8x1024xbf16>
    %c16_163 = arith.constant 16 : index
    %c0_164 = arith.constant 0 : index
    %133 = vector.load %arg12[%c16_163, %c0_164] : memref<216x1024xbf16, #tpu.memory_space<vmem>>, vector<8x1024xbf16>
    tpu.vector_store %arg12[%c16_163, %c0_164], %132 {strides = array<i32>} : memref<216x1024xbf16, #tpu.memory_space<vmem>>, vector<8x1024xbf16>,
    %c0_165 = arith.constant 0 : index
    %c27_166 = arith.constant 27 : index
    %134 = vector.load %arg11[%c0_165, %c27_166] : memref<8x1280xbf16, #tpu.memory_space<vmem>>, vector<8x1024xbf16>
    %c24_167 = arith.constant 24 : index
    %c0_168 = arith.constant 0 : index
    %135 = vector.load %arg12[%c24_167, %c0_168] : memref<216x1024xbf16, #tpu.memory_space<vmem>>, vector<8x1024xbf16>
    tpu.vector_store %arg12[%c24_167, %c0_168], %134 {strides = array<i32>} : memref<216x1024xbf16, #tpu.memory_space<vmem>>, vector<8x1024xbf16>,
    %c0_169 = arith.constant 0 : index
    %c28_170 = arith.constant 28 : index
    %136 = vector.load %arg11[%c0_169, %c28_170] : memref<8x1280xbf16, #tpu.memory_space<vmem>>, vector<8x1024xbf16>
    %c32_171 = arith.constant 32 : index
    %c0_172 = arith.constant 0 : index
    %137 = vector.load %arg12[%c32_171, %c0_172] : memref<216x1024xbf16, #tpu.memory_space<vmem>>, vector<8x1024xbf16>
    tpu.vector_store %arg12[%c32_171, %c0_172], %136 {strides = array<i32>} : memref<216x1024xbf16, #tpu.memory_space<vmem>>, vector<8x1024xbf16>,
    %c0_173 = arith.constant 0 : index
    %c29_174 = arith.constant 29 : index
    %138 = vector.load %arg11[%c0_173, %c29_174] : memref<8x1280xbf16, #tpu.memory_space<vmem>>, vector<8x1024xbf16>
    %c40_175 = arith.constant 40 : index
    %c0_176 = arith.constant 0 : index
    %139 = vector.load %arg12[%c40_175, %c0_176] : memref<216x1024xbf16, #tpu.memory_space<vmem>>, vector<8x1024xbf16>
    tpu.vector_store %arg12[%c40_175, %c0_176], %138 {strides = array<i32>} : memref<216x1024xbf16, #tpu.memory_space<vmem>>, vector<8x1024xbf16>,
    %c0_177 = arith.constant 0 : index
    %c37_178 = arith.constant 37 : index
    %140 = vector.load %arg11[%c0_177, %c37_178] : memref<8x1280xbf16, #tpu.memory_space<vmem>>, vector<8x1024xbf16>
    %c48_179 = arith.constant 48 : index
    %c0_180 = arith.constant 0 : index
    %141 = vector.load %arg12[%c48_179, %c0_180] : memref<216x1024xbf16, #tpu.memory_space<vmem>>, vector<8x1024xbf16>
    tpu.vector_store %arg12[%c48_179, %c0_180], %140 {strides = array<i32>} : memref<216x1024xbf16, #tpu.memory_space<vmem>>, vector<8x1024xbf16>,
    %c0_181 = arith.constant 0 : index
    %c38_182 = arith.constant 38 : index
    %142 = vector.load %arg11[%c0_181, %c38_182] : memref<8x1280xbf16, #tpu.memory_space<vmem>>, vector<8x1024xbf16>
    %c56_183 = arith.constant 56 : index
    %c0_184 = arith.constant 0 : index
    %143 = vector.load %arg12[%c56_183, %c0_184] : memref<216x1024xbf16, #tpu.memory_space<vmem>>, vector<8x1024xbf16>
    tpu.vector_store %arg12[%c56_183, %c0_184], %142 {strides = array<i32>} : memref<216x1024xbf16, #tpu.memory_space<vmem>>, vector<8x1024xbf16>,
    %c0_185 = arith.constant 0 : index
    %c39_186 = arith.constant 39 : index
    %144 = vector.load %arg11[%c0_185, %c39_186] : memref<8x1280xbf16, #tpu.memory_space<vmem>>, vector<8x1024xbf16>
    %c64_187 = arith.constant 64 : index
    %c0_188 = arith.constant 0 : index
    %145 = vector.load %arg12[%c64_187, %c0_188] : memref<216x1024xbf16, #tpu.memory_space<vmem>>, vector<8x1024xbf16>
    tpu.vector_store %arg12[%c64_187, %c0_188], %144 {strides = array<i32>} : memref<216x1024xbf16, #tpu.memory_space<vmem>>, vector<8x1024xbf16>,
    %c0_189 = arith.constant 0 : index
    %c117_190 = arith.constant 117 : index
    %146 = vector.load %arg11[%c0_189, %c117_190] : memref<8x1280xbf16, #tpu.memory_space<vmem>>, vector<8x1024xbf16>
    %c72_191 = arith.constant 72 : index
    %c0_192 = arith.constant 0 : index
    %147 = vector.load %arg12[%c72_191, %c0_192] : memref<216x1024xbf16, #tpu.memory_space<vmem>>, vector<8x1024xbf16>
    tpu.vector_store %arg12[%c72_191, %c0_192], %146 {strides = array<i32>} : memref<216x1024xbf16, #tpu.memory_space<vmem>>, vector<8x1024xbf16>,
    %c0_193 = arith.constant 0 : index
    %c118_194 = arith.constant 118 : index
    %148 = vector.load %arg11[%c0_193, %c118_194] : memref<8x1280xbf16, #tpu.memory_space<vmem>>, vector<8x1024xbf16>
    %c80_195 = arith.constant 80 : index
    %c0_196 = arith.constant 0 : index
    %149 = vector.load %arg12[%c80_195, %c0_196] : memref<216x1024xbf16, #tpu.memory_space<vmem>>, vector<8x1024xbf16>
    tpu.vector_store %arg12[%c80_195, %c0_196], %148 {strides = array<i32>} : memref<216x1024xbf16, #tpu.memory_space<vmem>>, vector<8x1024xbf16>,
    %c0_197 = arith.constant 0 : index
    %c119_198 = arith.constant 119 : index
    %150 = vector.load %arg11[%c0_197, %c119_198] : memref<8x1280xbf16, #tpu.memory_space<vmem>>, vector<8x1024xbf16>
    %c88_199 = arith.constant 88 : index
    %c0_200 = arith.constant 0 : index
    %151 = vector.load %arg12[%c88_199, %c0_200] : memref<216x1024xbf16, #tpu.memory_space<vmem>>, vector<8x1024xbf16>
    tpu.vector_store %arg12[%c88_199, %c0_200], %150 {strides = array<i32>} : memref<216x1024xbf16, #tpu.memory_space<vmem>>, vector<8x1024xbf16>,
    %c0_201 = arith.constant 0 : index
    %c127_202 = arith.constant 127 : index
    %152 = vector.load %arg11[%c0_201, %c127_202] : memref<8x1280xbf16, #tpu.memory_space<vmem>>, vector<8x1024xbf16>
    %c96_203 = arith.constant 96 : index
    %c0_204 = arith.constant 0 : index
    %153 = vector.load %arg12[%c96_203, %c0_204] : memref<216x1024xbf16, #tpu.memory_space<vmem>>, vector<8x1024xbf16>
    tpu.vector_store %arg12[%c96_203, %c0_204], %152 {strides = array<i32>} : memref<216x1024xbf16, #tpu.memory_space<vmem>>, vector<8x1024xbf16>,
    %c0_205 = arith.constant 0 : index
    %c128_206 = arith.constant 128 : index
    %154 = vector.load %arg11[%c0_205, %c128_206] : memref<8x1280xbf16, #tpu.memory_space<vmem>>, vector<8x1024xbf16>
    %c104_207 = arith.constant 104 : index
    %c0_208 = arith.constant 0 : index
    %155 = vector.load %arg12[%c104_207, %c0_208] : memref<216x1024xbf16, #tpu.memory_space<vmem>>, vector<8x1024xbf16>
    tpu.vector_store %arg12[%c104_207, %c0_208], %154 {strides = array<i32>} : memref<216x1024xbf16, #tpu.memory_space<vmem>>, vector<8x1024xbf16>,
    %c0_209 = arith.constant 0 : index
    %c129_210 = arith.constant 129 : index
    %156 = vector.load %arg11[%c0_209, %c129_210] : memref<8x1280xbf16, #tpu.memory_space<vmem>>, vector<8x1024xbf16>
    %c112_211 = arith.constant 112 : index
    %c0_212 = arith.constant 0 : index
    %157 = vector.load %arg12[%c112_211, %c0_212] : memref<216x1024xbf16, #tpu.memory_space<vmem>>, vector<8x1024xbf16>
    tpu.vector_store %arg12[%c112_211, %c0_212], %156 {strides = array<i32>} : memref<216x1024xbf16, #tpu.memory_space<vmem>>, vector<8x1024xbf16>,
    %c0_213 = arith.constant 0 : index
    %c137_214 = arith.constant 137 : index
    %158 = vector.load %arg11[%c0_213, %c137_214] : memref<8x1280xbf16, #tpu.memory_space<vmem>>, vector<8x1024xbf16>
    %c120_215 = arith.constant 120 : index
    %c0_216 = arith.constant 0 : index
    %159 = vector.load %arg12[%c120_215, %c0_216] : memref<216x1024xbf16, #tpu.memory_space<vmem>>, vector<8x1024xbf16>
    tpu.vector_store %arg12[%c120_215, %c0_216], %158 {strides = array<i32>} : memref<216x1024xbf16, #tpu.memory_space<vmem>>, vector<8x1024xbf16>,
    %c0_217 = arith.constant 0 : index
    %c138_218 = arith.constant 138 : index
    %160 = vector.load %arg11[%c0_217, %c138_218] : memref<8x1280xbf16, #tpu.memory_space<vmem>>, vector<8x1024xbf16>
    %c128_219 = arith.constant 128 : index
    %c0_220 = arith.constant 0 : index
    %161 = vector.load %arg12[%c128_219, %c0_220] : memref<216x1024xbf16, #tpu.memory_space<vmem>>, vector<8x1024xbf16>
    tpu.vector_store %arg12[%c128_219, %c0_220], %160 {strides = array<i32>} : memref<216x1024xbf16, #tpu.memory_space<vmem>>, vector<8x1024xbf16>,
    %c0_221 = arith.constant 0 : index
    %c139_222 = arith.constant 139 : index
    %162 = vector.load %arg11[%c0_221, %c139_222] : memref<8x1280xbf16, #tpu.memory_space<vmem>>, vector<8x1024xbf16>
    %c136_223 = arith.constant 136 : index
    %c0_224 = arith.constant 0 : index
    %163 = vector.load %arg12[%c136_223, %c0_224] : memref<216x1024xbf16, #tpu.memory_space<vmem>>, vector<8x1024xbf16>
    tpu.vector_store %arg12[%c136_223, %c0_224], %162 {strides = array<i32>} : memref<216x1024xbf16, #tpu.memory_space<vmem>>, vector<8x1024xbf16>,
    %c0_225 = arith.constant 0 : index
    %c217_226 = arith.constant 217 : index
    %164 = vector.load %arg11[%c0_225, %c217_226] : memref<8x1280xbf16, #tpu.memory_space<vmem>>, vector<8x1024xbf16>
    %c144_227 = arith.constant 144 : index
    %c0_228 = arith.constant 0 : index
    %165 = vector.load %arg12[%c144_227, %c0_228] : memref<216x1024xbf16, #tpu.memory_space<vmem>>, vector<8x1024xbf16>
    tpu.vector_store %arg12[%c144_227, %c0_228], %164 {strides = array<i32>} : memref<216x1024xbf16, #tpu.memory_space<vmem>>, vector<8x1024xbf16>,
    %c0_229 = arith.constant 0 : index
    %c218_230 = arith.constant 218 : index
    %166 = vector.load %arg11[%c0_229, %c218_230] : memref<8x1280xbf16, #tpu.memory_space<vmem>>, vector<8x1024xbf16>
    %c152_231 = arith.constant 152 : index
    %c0_232 = arith.constant 0 : index
    %167 = vector.load %arg12[%c152_231, %c0_232] : memref<216x1024xbf16, #tpu.memory_space<vmem>>, vector<8x1024xbf16>
    tpu.vector_store %arg12[%c152_231, %c0_232], %166 {strides = array<i32>} : memref<216x1024xbf16, #tpu.memory_space<vmem>>, vector<8x1024xbf16>,
    %c0_233 = arith.constant 0 : index
    %c219_234 = arith.constant 219 : index
    %168 = vector.load %arg11[%c0_233, %c219_234] : memref<8x1280xbf16, #tpu.memory_space<vmem>>, vector<8x1024xbf16>
    %c160_235 = arith.constant 160 : index
    %c0_236 = arith.constant 0 : index
    %169 = vector.load %arg12[%c160_235, %c0_236] : memref<216x1024xbf16, #tpu.memory_space<vmem>>, vector<8x1024xbf16>
    tpu.vector_store %arg12[%c160_235, %c0_236], %168 {strides = array<i32>} : memref<216x1024xbf16, #tpu.memory_space<vmem>>, vector<8x1024xbf16>,
    %c0_237 = arith.constant 0 : index
    %c227_238 = arith.constant 227 : index
    %170 = vector.load %arg11[%c0_237, %c227_238] : memref<8x1280xbf16, #tpu.memory_space<vmem>>, vector<8x1024xbf16>
    %c168_239 = arith.constant 168 : index
    %c0_240 = arith.constant 0 : index
    %171 = vector.load %arg12[%c168_239, %c0_240] : memref<216x1024xbf16, #tpu.memory_space<vmem>>, vector<8x1024xbf16>
    tpu.vector_store %arg12[%c168_239, %c0_240], %170 {strides = array<i32>} : memref<216x1024xbf16, #tpu.memory_space<vmem>>, vector<8x1024xbf16>,
    %c0_241 = arith.constant 0 : index
    %c228_242 = arith.constant 228 : index
    %172 = vector.load %arg11[%c0_241, %c228_242] : memref<8x1280xbf16, #tpu.memory_space<vmem>>, vector<8x1024xbf16>
    %c176_243 = arith.constant 176 : index
    %c0_244 = arith.constant 0 : index
    %173 = vector.load %arg12[%c176_243, %c0_244] : memref<216x1024xbf16, #tpu.memory_space<vmem>>, vector<8x1024xbf16>
    tpu.vector_store %arg12[%c176_243, %c0_244], %172 {strides = array<i32>} : memref<216x1024xbf16, #tpu.memory_space<vmem>>, vector<8x1024xbf16>,
    %c0_245 = arith.constant 0 : index
    %c229_246 = arith.constant 229 : index
    %174 = vector.load %arg11[%c0_245, %c229_246] : memref<8x1280xbf16, #tpu.memory_space<vmem>>, vector<8x1024xbf16>
    %c184_247 = arith.constant 184 : index
    %c0_248 = arith.constant 0 : index
    %175 = vector.load %arg12[%c184_247, %c0_248] : memref<216x1024xbf16, #tpu.memory_space<vmem>>, vector<8x1024xbf16>
    tpu.vector_store %arg12[%c184_247, %c0_248], %174 {strides = array<i32>} : memref<216x1024xbf16, #tpu.memory_space<vmem>>, vector<8x1024xbf16>,
    %c0_249 = arith.constant 0 : index
    %c237_250 = arith.constant 237 : index
    %176 = vector.load %arg11[%c0_249, %c237_250] : memref<8x1280xbf16, #tpu.memory_space<vmem>>, vector<8x1024xbf16>
    %c192_251 = arith.constant 192 : index
    %c0_252 = arith.constant 0 : index
    %177 = vector.load %arg12[%c192_251, %c0_252] : memref<216x1024xbf16, #tpu.memory_space<vmem>>, vector<8x1024xbf16>
    tpu.vector_store %arg12[%c192_251, %c0_252], %176 {strides = array<i32>} : memref<216x1024xbf16, #tpu.memory_space<vmem>>, vector<8x1024xbf16>,
    %c0_253 = arith.constant 0 : index
    %c238_254 = arith.constant 238 : index
    %178 = vector.load %arg11[%c0_253, %c238_254] : memref<8x1280xbf16, #tpu.memory_space<vmem>>, vector<8x1024xbf16>
    %c200_255 = arith.constant 200 : index
    %c0_256 = arith.constant 0 : index
    %179 = vector.load %arg12[%c200_255, %c0_256] : memref<216x1024xbf16, #tpu.memory_space<vmem>>, vector<8x1024xbf16>
    tpu.vector_store %arg12[%c200_255, %c0_256], %178 {strides = array<i32>} : memref<216x1024xbf16, #tpu.memory_space<vmem>>, vector<8x1024xbf16>,
    %c0_257 = arith.constant 0 : index
    %c239_258 = arith.constant 239 : index
    %180 = vector.load %arg11[%c0_257, %c239_258] : memref<8x1280xbf16, #tpu.memory_space<vmem>>, vector<8x1024xbf16>
    %c208_259 = arith.constant 208 : index
    %c0_260 = arith.constant 0 : index
    %181 = vector.load %arg12[%c208_259, %c0_260] : memref<216x1024xbf16, #tpu.memory_space<vmem>>, vector<8x1024xbf16>
    tpu.vector_store %arg12[%c208_259, %c0_260], %180 {strides = array<i32>} : memref<216x1024xbf16, #tpu.memory_space<vmem>>, vector<8x1024xbf16>,
    %c0_261 = arith.constant 0 : index
    %c0_262 = arith.constant 0 : index
    %182 = vector.load %arg5[%c0_261, %c0_262] : memref<4x216xbf16, #tpu.memory_space<vmem>>, vector<4x216xbf16>
    %c0_263 = arith.constant 0 : index
    %c0_264 = arith.constant 0 : index
    %183 = vector.load %arg12[%c0_263, %c0_264] : memref<216x1024xbf16, #tpu.memory_space<vmem>>, vector<216x1024xbf16>
    %cst_265 = arith.constant dense<0.000000e+00> : vector<4x1024xf32>
    %184 = tpu.matmul %182, %183, %cst_265 {dimension_numbers = #tpu.dot_dimension_numbers<[1], [0], [0], [1], [0, 0, 1, 1], [], []>} : vector<4x216xbf16>, vector<216x1024xbf16>, vector<4x1024xf32> -> vector<4x1024xf32>
    %c0_266 = arith.constant 0 : index
    %c0_267 = arith.constant 0 : index
    %185 = vector.load %arg6[%c0_266, %c0_267] : memref<4x1xf32, #tpu.memory_space<vmem>>, vector<4x1xf32>
    %186 = vector.broadcast %185 : vector<4x1xf32> to vector<4x1024xf32>
    %187 = arith.mulf %184, %186 : vector<4x1024xf32>
    %c0_268 = arith.constant 0 : index
    %c0_269 = arith.constant 0 : index
    %188 = vector.load %arg7[%c0_268, %c0_269] : memref<4x1xf32, #tpu.memory_space<vmem>>, vector<4x1xf32>
    %189 = vector.broadcast %188 : vector<4x1xf32> to vector<4x1024xf32>
    %190 = arith.addf %187, %189 : vector<4x1024xf32>
    %cst_270 = arith.constant 0.000000e+00 : f32
    %191 = vector.broadcast %cst_270 : f32 to vector<4x1024xf32>
    %192 = arith.maximumf %190, %191 : vector<4x1024xf32>
    %c0_271 = arith.constant 0 : index
    %c0_272 = arith.constant 0 : index
    %c0_273 = arith.constant 0 : index
    %193 = vector.load %arg9[%c0_271, %c0_272, %c0_273] : memref<1x4x1024xf32, #tpu.memory_space<vmem>>, vector<1x4x1024xf32>
    %194 = vector.shape_cast %193 : vector<1x4x1024xf32> to vector<4x1024xf32>
    %195 = vector.shape_cast %192 : vector<4x1024xf32> to vector<1x4x1024xf32>
    tpu.vector_store %arg9[%c0_271, %c0_272, %c0_273], %195 {strides = array<i32>} : memref<1x4x1024xf32, #tpu.memory_space<vmem>>, vector<1x4x1024xf32>,
    return
  }
  func.func @transform_0(%arg0: i32) -> (i32, i32, i32) {
    %c0_i32 = arith.constant 0 : i32
    %c0_i32_0 = arith.constant 0 : i32
    %c0_i32_1 = arith.constant 0 : i32
    return %arg0, %c0_i32, %c0_i32_0 : i32, i32, i32
  }
  func.func @transform_1(%arg0: i32) -> (i32, i32) {
    %c0_i32 = arith.constant 0 : i32
    %c0_i32_0 = arith.constant 0 : i32
    %c0_i32_1 = arith.constant 0 : i32
    return %c0_i32, %c0_i32_0 : i32, i32
  }
  func.func @transform_2(%arg0: i32) -> (i32, i32) {
    %c0_i32 = arith.constant 0 : i32
    %c0_i32_0 = arith.constant 0 : i32
    %c0_i32_1 = arith.constant 0 : i32
    return %c0_i32, %c0_i32_0 : i32, i32
  }
  func.func @transform_3(%arg0: i32) -> (i32, i32) {
    %c0_i32 = arith.constant 0 : i32
    %c0_i32_0 = arith.constant 0 : i32
    %c0_i32_1 = arith.constant 0 : i32
    return %c0_i32, %c0_i32_0 : i32, i32
  }
  func.func @transform_4(%arg0: i32) -> (i32, i32) {
    %c0_i32 = arith.constant 0 : i32
    %c0_i32_0 = arith.constant 0 : i32
    %c0_i32_1 = arith.constant 0 : i32
    return %c0_i32, %c0_i32_0 : i32, i32
  }
  func.func @transform_5(%arg0: i32) -> (i32, i32) {
    %c0_i32 = arith.constant 0 : i32
    %c0_i32_0 = arith.constant 0 : i32
    %c0_i32_1 = arith.constant 0 : i32
    return %c0_i32, %c0_i32_0 : i32, i32
  }
  func.func @transform_6(%arg0: i32) -> (i32, i32) {
    %c0_i32 = arith.constant 0 : i32
    %c0_i32_0 = arith.constant 0 : i32
    %c0_i32_1 = arith.constant 0 : i32
    return %c0_i32, %c0_i32_0 : i32, i32
  }
  func.func @transform_7(%arg0: i32) -> (i32, i32) {
    %c0_i32 = arith.constant 0 : i32
    %c0_i32_0 = arith.constant 0 : i32
    %c0_i32_1 = arith.constant 0 : i32
    return %c0_i32, %c0_i32_0 : i32, i32
  }
  func.func @transform_8(%arg0: i32) -> (i32, i32, i32) {
    %c0_i32 = arith.constant 0 : i32
    %c0_i32_0 = arith.constant 0 : i32
    %c0_i32_1 = arith.constant 0 : i32
    return %arg0, %c0_i32, %c0_i32_0 : i32, i32, i32
  }
}

</mosaic_0001>

<bundles_post_ra>
// kernel: up_forward.1
= control target key start
LH: loop header
LB: loop body
LE: loop exit
PB: predicated region body
PF: predicated region fallthrough
CT: control target
= control target key end

     0   :  { %s4798_s27 = smov 0   ;;  %s6658_s0 = inlined_call_operand.vmem [shape: bf16[2,8,1280], index: 0, kind: input, shape index: {}]   ;;  %s6659_s1 = inlined_call_operand.vmem [shape: bf16[8,216], index: 1, kind: input, shape index: {}]   ;;  %s6660_s2 = inlined_call_operand.vmem [shape: f32[8,1], index: 2, kind: input, shape index: {}]   ;;  %s6661_s3 = inlined_call_operand.vmem [shape: f32[8,1], index: 3, kind: input, shape index: {}]   ;;  %s6662_s4 = inlined_call_operand.vmem [shape: bf16[4,216], index: 4, kind: input, shape index: {}]   ;;  %s6663_s5 = inlined_call_operand.vmem [shape: f32[4,1], index: 5, kind: input, shape index: {}]   ;;  %s6664_s6 = inlined_call_operand.vmem [shape: f32[4,1], index: 6, kind: input, shape index: {}]   ;;  %s6665_s7 = inlined_call_operand.vmem [shape: f32[1,1024], index: 7, kind: input, shape index: {}]   ;;  %s6666_s8 = inlined_call_operand.vmem [shape: f32[2,4,1024], index: 8, kind: output, shape index: {}]  }
   0x1   :  { %6773 = sst [smem:[#allocation7_spill]] %s6658_s0 }
   0x2   :  { %6774 = sst [smem:[#allocation8_spill]] %s6659_s1 }
   0x3   :  { %6775 = sst [smem:[#allocation9_spill]] %s6660_s2 }
   0x4   :  { %6776 = sst [smem:[#allocation10_spill]] %s6661_s3 }
   0x5   :  { %6777 = sst [smem:[#allocation11_spill]] %s6665_s7 }
   0x6   :  { %6778 = sst [smem:[#allocation12_spill]] %s6666_s8 }
   0x7 LB: > { %6779 = sst [smem:[#allocation5_spill]] %s4724_s27  ;;  %s4415_s28 = sadd.s32 4294967295, %s4724_s27   ;;  %s4724_s27 = sphi %s4798_s27, %s18_s27  }
   0x8   : > { %p4419_p0 = scmp.ge.s32.totalorder %s4724_s27, 1  ;;  %p262_p1 = scmp.lt.s32.totalorder %s4724_s27, 3 }
   0xa   : > { %p263_p2 = pnand %p4419_p0, %p262_p1 }
   0xc   : > { %266 = sbr.rel (%p263_p2) target bundleno = 1191 (0x4a7), region = 52 }
  0x13   : > { %p296_p3 = scmp.lt.s32.totalorder %s4415_s28, 1  ;;  %s6781_s0 = sld [smem:[#allocation7_spill]]  ;;  %vm2064_vm0 = vcmask 719872   ;;  %vm333_vm1 = vcmask 1043456   ;;  %vm335_vm2 = vcmask 908288   ;;  %vm377_vm3 = vcmask 900096  }
  0x14   : > { %s6731_s11 = smov 110   ;;  %s6733_s12 = smov 111   ;;  %vm419_vm4 = vcmask 891904   ;;  %vm461_vm5 = vcmask 826368   ;;  %vm503_vm6 = vcmask 818176   ;;  %vm545_vm7 = vcmask 809984  }
  0x15   : > { %s6956_s28 = smov (!%p296_p3, %s4415_s28), 1  ;;  %s6728_s13 = smov 109   ;;  %vm587_vm8 = vcmask 744448   ;;  %vm6746_vm9 = vcmask 736256   ;;  %vm6743_vm10 = vcmask 728064   ;;  %vm6742_vm11 = vcmask 89088  }
  0x16   : > { %6780 = sst [smem:[#allocation6_spill]] %s6956_s28  ;;  %s4677_s29 = smul.u32 40, %s6956_s28  ;;  %vm6745_vm12 = vcmask 80896   ;;  %vm6692_vm13 = vcmask 72704   ;;  %vm6687_vm14 = vcmask 7168   ;;  %vm6698_vm15 = vcmask 1039360  }
  0x17   : > { %s6726_s14 = smov 101   ;;  %s6720_s15 = smov 100  }
  0x18   : > { %s6716_s16 = smov 99   ;;  %s6702_s17 = smov 91  }
  0x19   : > { %s4812_s10 = scalar_lea.vmem %s6781_s0, %s4677_s29  ;;  %s6718_s18 = smov 90  }
  0x1a   : > { %v351_v0 = vld [vmem:[%s4812_s10] sm:$0xff]  ;;  %v352_v1 = vld [vmem:[%s4812_s10 + $0x8] sm:$0xff]  ;;  %s6696_s19 = smov 89   ;;  %s6700_s20 = smov 11   ;;  %v4895_v6 = vld [vmem:[%s4812_s10 + $0x18] sm:$0xff] }
  0x1b   : > { %361 = vrot.lane.b32.xlu1 %v351_v0, %s6731_s11  ;;  %318 = vrot.lane.b32.xlu0 %v351_v0, %s6733_s12  ;;  %s6690_s21 = smov 10   ;;  %s6694_s22 = smov 9   ;;  %v864_v2 = vld [vmem:[%s4812_s10 + $0xc] sm:$0xff]  ;;  %v4844_v3 = vld [vmem:[%s4812_s10 + $0x4] sm:$0xff] }
  0x1c   : > { %s6688_s23 = smov 1   ;;  %s6685_s24 = smov 127   ;;  %v4898_v7 = vld [vmem:[%s4812_s10 + $0x10] sm:$0xff] }
  0x1d   : > { %s6667_s25 = smov 119   ;;  %s6669_s26 = smov 118  }
  0x1e   : > { %s6671_s29 = smov 117   ;;  %s6681_s30 = smov 39  }
  0x1f   : > { %363 = vrot.lane.b32.xlu1 %v352_v1, %s6731_s11  ;;  %320 = vrot.lane.b32.xlu0 %v352_v1, %s6733_s12  ;;  %s6673_s9 = smov 38   ;;  %s6782_s1 = sld [smem:[#allocation8_spill]] }
  0x20   : > { %s6799_s2 = sld [smem:[#allocation9_spill]]  ;;  %s6800_s3 = sld [smem:[#allocation10_spill]] }
  0x21   : > { %s6859_s7 = sld [smem:[#allocation11_spill]]  ;;  %s6863_s0 = smov 101  }
  0x22   : > { %s6869_s27 = smov 17   ;;  %s6952_s28 = sld [smem:[#allocation6_spill]] }
  0x23   : > { %405 = vrot.lane.b32.xlu1 %v352_v1, %s6728_s13  ;;  %403 = vrot.lane.b32.xlu0 %v351_v0, %s6728_s13 }
  0x25   : > { %v4885_v4 = vld [vmem:[%s6782_s1] sm:$0xff]  ;;  %s6865_s1 = smov 99  }
  0x26   : > { %v4889_v5 = vcombine.high %v4885_v4, %v4885_v4 }
  0x27   : > { %447 = vrot.lane.b32.xlu1 %v352_v1, %s6726_s14  ;;  %445 = vrot.lane.b32.xlu0 %v351_v0, %s6726_s14 }
  0x28   : > { %4538 = vmatprep.mubr.msk.bf16.mxu0 %vm2064_vm0, %v4889_v5  ;;  %4540 = vmatprep.mubr.msk.bf16.mxu1 %vm2064_vm0, %v4889_v5 }
  0x2b   : > { %489 = vrot.lane.b32.xlu1 %v352_v1, %s6720_s15  ;;  %487 = vrot.lane.b32.xlu0 %v351_v0, %s6720_s15 }
  0x2f   : > { %531 = vrot.lane.b32.xlu1 %v352_v1, %s6716_s16  ;;  %529 = vrot.lane.b32.xlu0 %v351_v0, %s6716_s16 }
  0x33   : > { %573 = vrot.lane.b32.xlu1 %v352_v1, %s6702_s17  ;;  %571 = vrot.lane.b32.xlu0 %v351_v0, %s6702_s17 }
  0x37   : > { %615 = vrot.lane.b32.xlu1 %v352_v1, %s6718_s18  ;;  %613 = vrot.lane.b32.xlu0 %v351_v0, %s6718_s18 }
  0x3b   : > { %657 = vrot.lane.b32.xlu1 %v352_v1, %s6696_s19  ;;  %655 = vrot.lane.b32.xlu0 %v351_v0, %s6696_s19 }
  0x3f   : > { %699 = vrot.lane.b32.xlu1 %v352_v1, %s6700_s20  ;;  %697 = vrot.lane.b32.xlu0 %v351_v0, %s6700_s20 }
  0x43   : > { %741 = vrot.lane.b32.xlu1 %v352_v1, %s6690_s21  ;;  %739 = vrot.lane.b32.xlu0 %v351_v0, %s6690_s21 }
  0x47   : > { %783 = vrot.lane.b32.xlu1 %v352_v1, %s6694_s22  ;;  %781 = vrot.lane.b32.xlu0 %v351_v0, %s6694_s22 }
  0x4b   : > { %825 = vrot.lane.b32.xlu1 %v352_v1, %s6688_s23  ;;  %823 = vrot.lane.b32.xlu0 %v351_v0, %s6688_s23 }
  0x4f   : > { %875 = vrot.lane.b32.xlu1 %v864_v2, %s6685_s24  ;;  %873 = vrot.lane.b32.xlu0 %v4844_v3, %s6685_s24 }
  0x53   : > { %917 = vrot.lane.b32.xlu1 %v864_v2, %s6667_s25  ;;  %915 = vrot.lane.b32.xlu0 %v4844_v3, %s6667_s25  ;;  %s6675_s25 = smov 37  }
  0x57   : > { %959 = vrot.lane.b32.xlu1 %v864_v2, %s6669_s26  ;;  %957 = vrot.lane.b32.xlu0 %v4844_v3, %s6669_s26  ;;  %s6677_s26 = smov 29  }
  0x5b   : > { %1001 = vrot.lane.b32.xlu1 %v864_v2, %s6671_s29  ;;  %999 = vrot.lane.b32.xlu0 %v4844_v3, %s6671_s29  ;;  %s6679_s29 = smov 28  }
  0x5f   : > { %1043 = vrot.lane.b32.xlu1 %v864_v2, %s6681_s30  ;;  %1041 = vrot.lane.b32.xlu0 %v4844_v3, %s6681_s30  ;;  %s6784_s30 = smov 118  }
  0x63   : > { %1085 = vrot.lane.b32.xlu1 %v864_v2, %s6673_s9  ;;  %1083 = vrot.lane.b32.xlu0 %v4844_v3, %s6673_s9  ;;  %s6683_s9 = smov 27  }
  0x67   : > { %1127 = vrot.lane.b32.xlu1 %v864_v2, %s6675_s25  ;;  %1125 = vrot.lane.b32.xlu0 %v4844_v3, %s6675_s25  ;;  %s6740_s25 = smov 19  }
  0x6b   : > { %1169 = vrot.lane.b32.xlu1 %v864_v2, %s6677_s26  ;;  %1167 = vrot.lane.b32.xlu0 %v4844_v3, %s6677_s26  ;;  %s6738_s26 = smov 18  }
  0x6f   : > { %1211 = vrot.lane.b32.xlu1 %v864_v2, %s6679_s29  ;;  %1209 = vrot.lane.b32.xlu0 %v4844_v3, %s6679_s29  ;;  %s6783_s29 = smov 119  }
  0x73   : > { %1253 = vrot.lane.b32.xlu1 %v864_v2, %s6683_s9  ;;  %1251 = vrot.lane.b32.xlu0 %v4844_v3, %s6683_s9  ;;  %s6736_s9 = smov 17  }
  0x77   : > { %1295 = vrot.lane.b32.xlu1 %v864_v2, %s6740_s25  ;;  %1293 = vrot.lane.b32.xlu0 %v4844_v3, %s6740_s25 }
  0x7b   : > { %1337 = vrot.lane.b32.xlu1 %v864_v2, %s6738_s26  ;;  %1335 = vrot.lane.b32.xlu0 %v4844_v3, %s6738_s26 }
  0x7f   : > { %1379 = vrot.lane.b32.xlu1 %v864_v2, %s6736_s9  ;;  %1377 = vrot.lane.b32.xlu0 %v4844_v3, %s6736_s9 }
  0x83   : > { %324 = vrot.lane.b32.xlu1 %v4895_v6, %s6733_s12  ;;  %322 = vrot.lane.b32.xlu0 %v4898_v7, %s6733_s12 }
  0x87   : > { %367 = vrot.lane.b32.xlu1 %v4895_v6, %s6731_s11  ;;  %365 = vrot.lane.b32.xlu0 %v4898_v7, %s6731_s11 }
  0x8b   : > { %409 = vrot.lane.b32.xlu1 %v4895_v6, %s6728_s13  ;;  %407 = vrot.lane.b32.xlu0 %v4898_v7, %s6728_s13 }
  0x8d   : > { %v362_v8 = vpop.permute.xlu1 %361  ;;  %v319_v9 = vpop.permute.xlu0 %318 }
  0x8e   : > { %v371_v10 = vrot.slane %v362_v8, 4  ;;  %v328_v13 = vrot.slane %v319_v9, 4 }
  0x8f   : > { %451 = vrot.lane.b32.xlu1 %v4895_v6, %s6726_s14  ;;  %449 = vrot.lane.b32.xlu0 %v4898_v7, %s6726_s14 }
  0x91   : > { %v4920_v11 = vpop.permute.xlu1 %363  ;;  %v4922_v12 = vpop.permute.xlu0 %320 }
  0x92   : > { %v372_v14 = vrot.slane %v4920_v11, 4  ;;  %v329_v15 = vrot.slane %v4922_v12, 4 }
  0x93   : > { %493 = vrot.lane.b32.xlu1 %v4895_v6, %s6720_s15  ;;  %491 = vrot.lane.b32.xlu0 %v4898_v7, %s6720_s15 }
  0x94   : > { %v334_v16 = vsel %vm333_vm1, %v328_v13, %v329_v15  ;;  %v376_v17 = vsel %vm333_vm1, %v371_v10, %v372_v14 }
  0x95   : > { %v4936_v18 = vpop.permute.xlu1 %405  ;;  %v404_v19 = vpop.permute.xlu0 %403  ;;  %v336_v20 = vsel %vm335_vm2, %v319_v9, %v334_v16  ;;  %v378_v21 = vsel %vm377_vm3, %v362_v8, %v376_v17 }
  0x96   : > { %v414_v22 = vrot.slane %v4936_v18, 4  ;;  %v413_v23 = vrot.slane %v404_v19, 4  ;;  %v4426_v24 = vcombine.high %v336_v20, %v378_v21  ;;  %v4425_v25 = vcombine.low %v336_v20, %v378_v21  ;;  %v5025_v20 = vld [vmem:[%s4812_s10 + $0x1c] sm:$0xff]  ;;  %v5028_v21 = vld [vmem:[%s4812_s10 + $0x14] sm:$0xff] }
  0x97   : > { %535 = vrot.lane.b32.xlu1 %v4895_v6, %s6716_s16  ;;  %533 = vrot.lane.b32.xlu0 %v4898_v7, %s6716_s16 }
  0x98   : > { %2093 = vmatprep.subr.bf16.mxu0 %v4426_v24  ;;  %v418_v28 = vsel %vm333_vm1, %v413_v23, %v414_v22 }
  0x99   : > { %v4945_v26 = vpop.permute.xlu1 %447  ;;  %2094 = vmatpush1.bf16.msra.mxu0 %v4425_v25  ;;  %v446_v27 = vpop.permute.xlu0 %445  ;;  %v420_v32 = vsel %vm419_vm4, %v404_v19, %v418_v28 }
  0x9a   : > { %v456_v29 = vrot.slane %v4945_v26, 4  ;;  %v455_v30 = vrot.slane %v446_v27, 4 }
  0x9b   : > { %577 = vrot.lane.b32.xlu1 %v4895_v6, %s6702_s17  ;;  %575 = vrot.lane.b32.xlu0 %v4898_v7, %s6702_s17  ;;  %s6791_s17 = smov 27  }
  0x9c   : > { %v460_v31 = vsel %vm333_vm1, %v455_v30, %v456_v29 }
  0x9d   : > { %v462_v33 = vsel %vm461_vm5, %v446_v27, %v460_v31  ;;  %v4960_v34 = vpop.permute.xlu1 %489  ;;  %v488_v35 = vpop.permute.xlu0 %487 }
  0x9e   : > { %v498_v36 = vrot.slane %v4960_v34, 4  ;;  %v497_v37 = vrot.slane %v488_v35, 4  ;;  %v4434_v38 = vcombine.high %v420_v32, %v462_v33  ;;  %v4433_v39 = vcombine.low %v420_v32, %v462_v33 }
  0x9f   : > { %619 = vrot.lane.b32.xlu1 %v4895_v6, %s6718_s18  ;;  %617 = vrot.lane.b32.xlu0 %v4898_v7, %s6718_s18 }
  0xa0   : > { %2095 = vmatprep.subr.bf16.mxu0 %v4434_v38  ;;  %v502_v42 = vsel %vm333_vm1, %v497_v37, %v498_v36 }
  0xa1   : > { %v4967_v40 = vpop.permute.xlu1 %531  ;;  %2096 = vmatpush1.bf16.msra.mxu0 %v4433_v39  ;;  %v530_v41 = vpop.permute.xlu0 %529  ;;  %v504_v46 = vsel %vm503_vm6, %v488_v35, %v502_v42 }
  0xa2   : > { %v540_v43 = vrot.slane %v4967_v40, 4  ;;  %v539_v44 = vrot.slane %v530_v41, 4 }
  0xa3   : > { %661 = vrot.lane.b32.xlu1 %v4895_v6, %s6696_s19  ;;  %659 = vrot.lane.b32.xlu0 %v4898_v7, %s6696_s19  ;;  %s6789_s19 = smov 29  }
  0xa4   : > { %v544_v45 = vsel %vm333_vm1, %v539_v44, %v540_v43 }
  0xa5   : > { %v546_v47 = vsel %vm545_vm7, %v530_v41, %v544_v45  ;;  %v4982_v48 = vpop.permute.xlu1 %573  ;;  %v572_v49 = vpop.permute.xlu0 %571 }
  0xa6   : > { %v582_v50 = vrot.slane %v4982_v48, 4  ;;  %v581_v51 = vrot.slane %v572_v49, 4  ;;  %v4442_v52 = vcombine.high %v504_v46, %v546_v47  ;;  %v4441_v53 = vcombine.low %v504_v46, %v546_v47 }
  0xa7   : > { %703 = vrot.lane.b32.xlu1 %v4895_v6, %s6700_s20  ;;  %701 = vrot.lane.b32.xlu0 %v4898_v7, %s6700_s20  ;;  %s6790_s20 = smov 28  }
  0xa8   : > { %2097 = vmatprep.subr.bf16.mxu0 %v4442_v52  ;;  %v586_v56 = vsel %vm333_vm1, %v581_v51, %v582_v50 }
  0xa9   : > { %v4989_v54 = vpop.permute.xlu1 %615  ;;  %2098 = vmatpush1.bf16.msra.mxu0 %v4441_v53  ;;  %v614_v55 = vpop.permute.xlu0 %613  ;;  %v588_v60 = vsel %vm587_vm8, %v572_v49, %v586_v56 }
  0xaa   : > { %v624_v57 = vrot.slane %v4989_v54, 4  ;;  %v623_v58 = vrot.slane %v614_v55, 4 }
  0xab   : > { %745 = vrot.lane.b32.xlu1 %v4895_v6, %s6690_s21  ;;  %743 = vrot.lane.b32.xlu0 %v4898_v7, %s6690_s21  ;;  %s6787_s21 = smov 38  }
  0xac   : > { %v628_v59 = vsel %vm333_vm1, %v623_v58, %v624_v57 }
  0xad   : > { %v630_v61 = vsel %vm6746_vm9, %v614_v55, %v628_v59  ;;  %v5004_v62 = vpop.permute.xlu1 %657  ;;  %v656_v63 = vpop.permute.xlu0 %655 }
  0xae   : > { %v666_v0 = vrot.slane %v5004_v62, 4  ;;  %v665_v1 = vrot.slane %v656_v63, 4  ;;  %v4450_v2 = vcombine.high %v588_v60, %v630_v61  ;;  %v4449_v8 = vcombine.low %v588_v60, %v630_v61 }
  0xaf   : > { %787 = vrot.lane.b32.xlu1 %v4895_v6, %s6694_s22  ;;  %785 = vrot.lane.b32.xlu0 %v4898_v7, %s6694_s22  ;;  %s6788_s22 = smov 37  }
  0xb0   : > { %2099 = vmatprep.subr.bf16.mxu0 %v4450_v2  ;;  %v670_v13 = vsel %vm333_vm1, %v665_v1, %v666_v0 }
  0xb1   : > { %v5011_v9 = vpop.permute.xlu1 %699  ;;  %2100 = vmatpush1.bf16.msra.mxu0 %v4449_v8  ;;  %v698_v10 = vpop.permute.xlu0 %697  ;;  %v672_v23 = vsel %vm6743_vm10, %v656_v63, %v670_v13 }
  0xb2   : > { %v708_v16 = vrot.slane %v5011_v9, 4  ;;  %v707_v17 = vrot.slane %v698_v10, 4 }
  0xb3   : > { %829 = vrot.lane.b32.xlu1 %v4895_v6, %s6688_s23  ;;  %827 = vrot.lane.b32.xlu0 %v4898_v7, %s6688_s23  ;;  %s6786_s23 = smov 39  }
  0xb4   : > { %v712_v19 = vsel %vm333_vm1, %v707_v17, %v708_v16 }
  0xb5   : > { %v714_v24 = vsel %vm6742_vm11, %v698_v10, %v712_v19  ;;  %v5032_v25 = vpop.permute.xlu1 %741  ;;  %v740_v27 = vpop.permute.xlu0 %739 }
  0xb6   : > { %v750_v6 = vrot.slane %v5032_v25, 4  ;;  %v749_v28 = vrot.slane %v740_v27, 4  ;;  %v4458_v30 = vcombine.high %v672_v23, %v714_v24  ;;  %v4457_v7 = vcombine.low %v672_v23, %v714_v24 }
  0xb7   : > { %879 = vrot.lane.b32.xlu1 %v5025_v20, %s6685_s24  ;;  %877 = vrot.lane.b32.xlu0 %v5028_v21, %s6685_s24  ;;  %s6785_s24 = smov 117  }
  0xb8   : > { %2101 = vmatprep.subr.bf16.mxu0 %v4458_v30  ;;  %v754_v33 = vsel %vm333_vm1, %v749_v28, %v750_v6 }
  0xb9   : > { %v5039_v31 = vpop.permute.xlu1 %783  ;;  %2102 = vmatpush1.bf16.msra.mxu0 %v4457_v7  ;;  %v782_v32 = vpop.permute.xlu0 %781  ;;  %v756_v39 = vsel %vm6745_vm12, %v740_v27, %v754_v33 }
  0xba   : > { %v792_v35 = vrot.slane %v5039_v31, 4  ;;  %v791_v37 = vrot.slane %v782_v32, 4 }
  0xbb   : > { %921 = vrot.lane.b32.xlu1 %v5025_v20, %s6783_s29  ;;  %919 = vrot.lane.b32.xlu0 %v5028_v21, %s6783_s29 }
  0xbc   : > { %v796_v38 = vsel %vm333_vm1, %v791_v37, %v792_v35 }
  0xbd   : > { %v798_v41 = vsel %vm6692_vm13, %v782_v32, %v796_v38  ;;  %v5054_v42 = vpop.permute.xlu1 %825  ;;  %v824_v44 = vpop.permute.xlu0 %823  ;;  %vm6704_vm13 = vcmask 965632  }
  0xbe   : > { %v834_v45 = vrot.slane %v5054_v42, 4  ;;  %v833_v46 = vrot.slane %v824_v44, 4  ;;  %v4466_v47 = vcombine.high %v756_v39, %v798_v41  ;;  %v4465_v49 = vcombine.low %v756_v39, %v798_v41 }
  0xbf   : > { %963 = vrot.lane.b32.xlu1 %v5025_v20, %s6784_s30  ;;  %961 = vrot.lane.b32.xlu0 %v5028_v21, %s6784_s30 }
  0xc0   : > { %v838_v51 = vsel %vm333_vm1, %v833_v46, %v834_v45  ;;  %2103 = vmatprep.subr.bf16.mxu0 %v4466_v47 }
  0xc1   : > { %v840_v52 = vsel %vm6687_vm14, %v824_v44, %v838_v51  ;;  %v5065_v53 = vpop.permute.xlu1 %875  ;;  %2104 = vmatpush1.bf16.msra.mxu0 %v4465_v49  ;;  %v874_v55 = vpop.permute.xlu0 %873  ;;  %vm6693_vm14 = vcmask 973824  }
  0xc2   : > { %v884_v56 = vrot.slane %v5065_v53, 4  ;;  %v883_v58 = vrot.slane %v874_v55, 4  ;;  %v4474_v59 = vcombine.high %v840_v52, %v4844_v3  ;;  %v4473_v60 = vcombine.low %v840_v52, %v4844_v3 }
  0xc3   : > { %1005 = vrot.lane.b32.xlu1 %v5025_v20, %s6785_s24  ;;  %1003 = vrot.lane.b32.xlu0 %v5028_v21, %s6785_s24 }
  0xc4   : > { %2105 = vmatprep.subr.bf16.mxu0 %v4474_v59  ;;  %v888_v1 = vsel %vm333_vm1, %v883_v58, %v884_v56 }
  0xc5   : > { %v5074_v61 = vpop.permute.xlu1 %917  ;;  %2106 = vmatpush1.bf16.msra.mxu0 %v4473_v60  ;;  %v916_v63 = vpop.permute.xlu0 %915  ;;  %v890_v10 = vsel %vm6698_vm15, %v874_v55, %v888_v1  ;;  %vm6711_vm15 = vcmask 318464  }
  0xc6   : > { %v926_v2 = vrot.slane %v5074_v61, 4  ;;  %v925_v3 = vrot.slane %v916_v63, 4 }
  0xc7   : > { %1047 = vrot.lane.b32.xlu1 %v5025_v20, %s6786_s23  ;;  %1045 = vrot.lane.b32.xlu0 %v5028_v21, %s6786_s23 }
  0xc8   : > { %v930_v8 = vsel %vm333_vm1, %v925_v3, %v926_v2 }
  0xc9   : > { %v932_v13 = vsel %vm6693_vm14, %v916_v63, %v930_v8  ;;  %v5089_v17 = vpop.permute.xlu1 %959  ;;  %v958_v19 = vpop.permute.xlu0 %957  ;;  %vm6699_vm14 = vcmask 957440  }
  0xca   : > { %v968_v23 = vrot.slane %v5089_v17, 4  ;;  %v967_v24 = vrot.slane %v958_v19, 4  ;;  %v4482_v27 = vcombine.high %v890_v10, %v932_v13  ;;  %v4481_v28 = vcombine.low %v890_v10, %v932_v13 }
  0xcb   : > { %1089 = vrot.lane.b32.xlu1 %v5025_v20, %s6787_s21  ;;  %1087 = vrot.lane.b32.xlu0 %v5028_v21, %s6787_s21 }
  0xcc   : > { %2107 = vmatprep.subr.bf16.mxu0 %v4482_v27  ;;  %v972_v32 = vsel %vm333_vm1, %v967_v24, %v968_v23 }
  0xcd   : > { %v5096_v30 = vpop.permute.xlu1 %1001  ;;  %2108 = vmatpush1.bf16.msra.mxu0 %v4481_v28  ;;  %v1000_v7 = vpop.permute.xlu0 %999  ;;  %v974_v39 = vsel %vm6704_vm13, %v958_v19, %v972_v32  ;;  %vm6706_vm13 = vcmask 302080  }
  0xce   : > { %v1010_v33 = vrot.slane %v5096_v30, 4  ;;  %v1009_v37 = vrot.slane %v1000_v7, 4 }
  0xcf   : > { %1131 = vrot.lane.b32.xlu1 %v5025_v20, %s6788_s22  ;;  %1129 = vrot.lane.b32.xlu0 %v5028_v21, %s6788_s22 }
  0xd0   : > { %v1014_v38 = vsel %vm333_vm1, %v1009_v37, %v1010_v33 }
  0xd1   : > { %v1016_v41 = vsel %vm6699_vm14, %v1000_v7, %v1014_v38  ;;  %v5111_v44 = vpop.permute.xlu1 %1043  ;;  %v1042_v46 = vpop.permute.xlu0 %1041  ;;  %vm6705_vm14 = vcmask 310272  }
  0xd2   : > { %v1052_v47 = vrot.slane %v5111_v44, 4  ;;  %v1051_v49 = vrot.slane %v1042_v46, 4  ;;  %v4490_v51 = vcombine.high %v974_v39, %v1016_v41  ;;  %v4489_v52 = vcombine.low %v974_v39, %v1016_v41 }
  0xd3   : > { %1173 = vrot.lane.b32.xlu1 %v5025_v20, %s6789_s19  ;;  %1171 = vrot.lane.b32.xlu0 %v5028_v21, %s6789_s19 }
  0xd4   : > { %2109 = vmatprep.subr.bf16.mxu0 %v4490_v51  ;;  %v1056_v59 = vsel %vm333_vm1, %v1051_v49, %v1052_v47 }
  0xd5   : > { %v5118_v55 = vpop.permute.xlu1 %1085  ;;  %2110 = vmatpush1.bf16.msra.mxu0 %v4489_v52  ;;  %v1084_v58 = vpop.permute.xlu0 %1083  ;;  %v1058_v3 = vsel %vm6711_vm15, %v1042_v46, %v1056_v59  ;;  %vm1393_vm15 = vcmask 138240  }
  0xd6   : > { %v6730_v60 = vrot.slane %v5118_v55, 4  ;;  %v1093_v63 = vrot.slane %v1084_v58, 4 }
  0xd7   : > { %1215 = vrot.lane.b32.xlu1 %v5025_v20, %s6790_s20  ;;  %1213 = vrot.lane.b32.xlu0 %v5028_v21, %s6790_s20 }
  0xd8   : > { %v1098_v1 = vsel %vm333_vm1, %v1093_v63, %v6730_v60 }
  0xd9   : > { %v1100_v8 = vsel %vm6705_vm14, %v1084_v58, %v1098_v1  ;;  %v5133_v10 = vpop.permute.xlu1 %1127  ;;  %v1126_v13 = vpop.permute.xlu0 %1125  ;;  %vm6707_vm14 = vcmask 236544  }
  0xda   : > { %v6724_v19 = vrot.slane %v5133_v10, 4  ;;  %v1135_v24 = vrot.slane %v1126_v13, 4  ;;  %v4498_v27 = vcombine.high %v1058_v3, %v1100_v8  ;;  %v4497_v28 = vcombine.low %v1058_v3, %v1100_v8 }
  0xdb   : > { %1257 = vrot.lane.b32.xlu1 %v5025_v20, %s6791_s17  ;;  %1255 = vrot.lane.b32.xlu0 %v5028_v21, %s6791_s17 }
  0xdc   : > { %2111 = vmatprep.subr.bf16.mxu0 %v4498_v27  ;;  %v1140_v37 = vsel %vm333_vm1, %v1135_v24, %v6724_v19 }
  0xdd   : > { %v5140_v7 = vpop.permute.xlu1 %1169  ;;  %2112 = vmatpush1.bf16.msra.mxu0 %v4497_v28  ;;  %v1168_v32 = vpop.permute.xlu0 %1167  ;;  %v1142_v46 = vsel %vm6706_vm13, %v1126_v13, %v1140_v37  ;;  %vm6709_vm13 = vcmask 228352   ;;  %v312_v37 = vld [vmem:[%s4812_s10 + $0x20] sm:$0xf] }
  0xde   : > { %v6714_v38 = vrot.slane %v5140_v7, 4  ;;  %v1177_v39 = vrot.slane %v1168_v32, 4 }
  0xdf   : > { %1299 = vrot.lane.b32.xlu1 %v5025_v20, %s6740_s25  ;;  %1297 = vrot.lane.b32.xlu0 %v5028_v21, %s6740_s25 }
  0xe0   : > { %v1182_v41 = vsel %vm333_vm1, %v1177_v39, %v6714_v38 }
  0xe1   : > { %v1184_v49 = vsel %vm6707_vm14, %v1168_v32, %v1182_v41  ;;  %v5155_v51 = vpop.permute.xlu1 %1211  ;;  %v1210_v52 = vpop.permute.xlu0 %1209  ;;  %vm6710_vm14 = vcmask 220160   ;;  %v355_v32 = vld [vmem:[%s4812_s10 + $0x20] sm:$0xf] }
  0xe2   : > { %v6713_v58 = vrot.slane %v5155_v51, 4  ;;  %v1219_v59 = vrot.slane %v1210_v52, 4  ;;  %v4506_v63 = vcombine.high %v1142_v46, %v1184_v49  ;;  %v4505_v1 = vcombine.low %v1142_v46, %v1184_v49 }
  0xe3   : > { %1341 = vrot.lane.b32.xlu1 %v5025_v20, %s6738_s26  ;;  %1339 = vrot.lane.b32.xlu0 %v5028_v21, %s6738_s26 }
  0xe4   : > { %2113 = vmatprep.subr.bf16.mxu0 %v4506_v63  ;;  %v1224_v13 = vsel %vm333_vm1, %v1219_v59, %v6713_v58 }
  0xe5   : > { %v5162_v3 = vpop.permute.xlu1 %1253  ;;  %2114 = vmatpush1.bf16.msra.mxu0 %v4505_v1  ;;  %v1252_v8 = vpop.permute.xlu0 %1251  ;;  %v1226_v39 = vsel %vm6709_vm13, %v1210_v52, %v1224_v13  ;;  %vm1309_vm13 = vcmask 154624  }
  0xe6   : > { %v6708_v24 = vrot.slane %v5162_v3, 4  ;;  %v1261_v27 = vrot.slane %v1252_v8, 4 }
  0xe7   : > { %1383 = vrot.lane.b32.xlu1 %v5025_v20, %s6736_s9  ;;  %1381 = vrot.lane.b32.xlu0 %v5028_v21, %s6736_s9 }
  0xe8   : > { %v1266_v28 = vsel %vm333_vm1, %v1261_v27, %v6708_v24  ;;  %v439_v27 = vld [vmem:[%s4812_s10 + $0x20] sm:$0xf] }
  0xe9   : > { %v1268_v41 = vsel %vm6710_vm14, %v1252_v8, %v1266_v28  ;;  %v5179_v46 = vpop.permute.xlu1 %1295  ;;  %v1294_v49 = vpop.permute.xlu0 %1293  ;;  %v397_v24 = vld [vmem:[%s4812_s10 + $0x20] sm:$0xf]  ;;  %vm1351_vm14 = vcmask 146432  }
  0xea   : > { %v6712_v20 = vrot.slane %v5179_v46, 4  ;;  %v1303_v59 = vrot.slane %v1294_v49, 4  ;;  %v4514_v63 = vcombine.high %v1226_v39, %v1268_v41  ;;  %v4513_v1 = vcombine.low %v1226_v39, %v1268_v41  ;;  %v523_v39 = vld [vmem:[%s4812_s10 + $0x20] sm:$0xf] }
  0xeb   : > { %369 = vrot.lane.b32.xlu1 %v355_v32, %s6731_s11  ;;  %326 = vrot.lane.b32.xlu0 %v312_v37, %s6733_s12  ;;  %v481_v41 = vld [vmem:[%s4812_s10 + $0x20] sm:$0xf]  ;;  %s6797_s11 = smov 1   ;;  %s6798_s12 = smov 127  }
  0xec   : > { %2115 = vmatprep.subr.bf16.mxu0 %v4514_v63  ;;  %v1308_v13 = vsel %vm333_vm1, %v1303_v59, %v6712_v20 }
  0xed   : > { %v5186_v52 = vpop.permute.xlu1 %1337  ;;  %2116 = vmatpush1.bf16.msra.mxu0 %v4513_v1  ;;  %v1336_v8 = vpop.permute.xlu0 %1335  ;;  %v1310_v63 = vsel %vm1309_vm13, %v1294_v49, %v1308_v13  ;;  %v607_v49 = vld [vmem:[%s4812_s10 + $0x20] sm:$0xf] }
  0xee   : > { %v6715_v28 = vrot.slane %v5186_v52, 4  ;;  %v1345_v32 = vrot.slane %v1336_v8, 4 }
  0xef   : > { %453 = vrot.lane.b32.xlu1 %v439_v27, %s6726_s14  ;;  %411 = vrot.lane.b32.xlu0 %v397_v24, %s6728_s13  ;;  %s6795_s14 = smov 9   ;;  %s6796_s13 = smov 10  }
  0xf0   : > { %v1350_v37 = vsel %vm333_vm1, %v1345_v32, %v6715_v28 }
  0xf1   : > { %v1352_v59 = vsel %vm1351_vm14, %v1336_v8, %v1350_v37  ;;  %v5201_v1 = vpop.permute.xlu1 %1379  ;;  %v1378_v20 = vpop.permute.xlu0 %1377  ;;  %v565_v8 = vld [vmem:[%s4812_s10 + $0x20] sm:$0xf] }
  0xf2   : > { %v6722_v27 = vrot.slane %v5201_v1, 4  ;;  %v1387_v58 = vrot.slane %v1378_v20, 4  ;;  %v4522_v24 = vcombine.high %v1310_v63, %v1352_v59  ;;  %v4521_v38 = vcombine.low %v1310_v63, %v1352_v59 }
  0xf3   : > { %537 = vrot.lane.b32.xlu1 %v523_v39, %s6716_s16  ;;  %495 = vrot.lane.b32.xlu0 %v481_v41, %s6720_s15  ;;  %s6792_s16 = smov 91   ;;  %s6794_s15 = smov 89  }
  0xf4   : > { %v1392_v32 = vsel %vm333_vm1, %v1387_v58, %v6722_v27  ;;  %2117 = vmatprep.subr.bf16.mxu0 %v4522_v24  ;;  %v649_v24 = vld [vmem:[%s4812_s10 + $0x20] sm:$0xf] }
  0xf5   : > { %v1394_v13 = vsel %vm1393_vm15, %v1378_v20, %v1392_v32  ;;  %v5212_v37 = vpop.permute.xlu1 %324  ;;  %2118 = vmatpush1.bf16.msra.mxu0 %v4521_v38  ;;  %v323_v28 = vpop.permute.xlu0 %322  ;;  %v691_v20 = vld [vmem:[%s4812_s10 + $0x20] sm:$0xf]  ;;  %v5223_v38 = vcombine.low %v4885_v4, %v4885_v4 }
  0xf6   : > { %v4530_v63 = vcombine.high %v1394_v13, %v1394_v13  ;;  %v6723_v39 = vrot.slane %v5212_v37, 4  ;;  %v330_v59 = vrot.slane %v323_v28, 4  ;;  %v4529_v41 = vcombine.low %v1394_v13, %v1394_v13  ;;  %v733_v27 = vld [vmem:[%s4812_s10 + $0x20] sm:$0xf] }
  0xf7   : > { %621 = vrot.lane.b32.xlu1 %v607_v49, %s6718_s18  ;;  %579 = vrot.lane.b32.xlu0 %v565_v8, %s6792_s16  ;;  %s6793_s18 = smov 11  }
  0xf8   : > { %4537 = vmatprep.subr.msk.bf16.mxu0 %vm333_vm1, %v4530_v63  ;;  %v2070_v58 = vsel %vm333_vm1, %v4529_v41, 0  ;;  %v339_v49 = vsel %vm333_vm1, %v330_v59, %v6723_v39  ;;  %v337_v41 = vsel %vm333_vm1, %v329_v15, %v330_v59 }
  0xf9   : > { %v5225_v32 = vpop.permute.xlu1 %367  ;;  %2120 = vmatpush1.bf16.msra.mxu0 %v2070_v58  ;;  %v366_v13 = vpop.permute.xlu0 %365  ;;  %v775_v58 = vld [vmem:[%s4812_s10 + $0x20] sm:$0xf]  ;;  %v340_v19 = vsel %vm335_vm2, %v323_v28, %v339_v49 }
  0xfa   : > { %v6725_v8 = vrot.slane %v5225_v32, 4  ;;  %v373_v63 = vrot.slane %v366_v13, 4 }
  0xfb   : > { %705 = vrot.lane.b32.xlu1 %v691_v20, %s6793_s18  ;;  %663 = vrot.lane.b32.xlu0 %v649_v24, %s6794_s15  ;;  %v338_v24 = vsel %vm335_vm2, %v4922_v12, %v337_v41  ;;  %v817_v12 = vld [vmem:[%s4812_s10 + $0x20] sm:$0xf]  ;;  %v867_v41 = vld [vmem:[%s4812_s10 + $0x24] sm:$0xf] }
  0xfc   : > { %v381_v4 = vsel %vm333_vm1, %v373_v63, %v6725_v8  ;;  %v379_v39 = vsel %vm333_vm1, %v372_v14, %v373_v63  ;;  %2126 = vmatmul.mubr.bf16.vlgmr.msra.gmra.mrb[0].mxu0 %v5223_v38 }
  0xfd   : > { %v382_v15 = vsel %vm377_vm3, %v366_v13, %v381_v4  ;;  %v5247_v59 = vpop.permute.xlu1 %409  ;;  %v408_v20 = vpop.permute.xlu0 %407  ;;  %v380_v8 = vsel %vm377_vm3, %v4920_v11, %v379_v39  ;;  %4542 = vmatprep.mubr.msk.bf16.mxu0 %vm2064_vm0, %v4889_v5 }
  0xfe   : > { %v4429_v14 = vcombine.low %v340_v19, %v382_v15  ;;  %v6735_v63 = vrot.slane %v5247_v59, 4  ;;  %v415_v28 = vrot.slane %v408_v20, 4  ;;  %v4428_v49 = vcombine.high %v338_v24, %v380_v8 }
  0xff   : > { %789 = vrot.lane.b32.xlu1 %v775_v58, %s6795_s14  ;;  %747 = vrot.lane.b32.xlu0 %v733_v27, %s6796_s13  ;;  %v4430_v13 = vcombine.high %v340_v19, %v382_v15  ;;  %v4427_v4 = vcombine.low %v338_v24, %v380_v8  ;;  %v909_v15 = vld [vmem:[%s4812_s10 + $0x24] sm:$0xf] }
 0x100   : > { %2134 = vmatprep.subr.bf16.mxu1 %v4428_v49  ;;  %v423_v60 = vsel %vm333_vm1, %v415_v28, %v6735_v63  ;;  %v421_v19 = vsel %vm333_vm1, %v414_v22, %v415_v28  ;;  %v951_v49 = vld [vmem:[%s4812_s10 + $0x24] sm:$0xf] }
 0x101   : > { %2175 = vmatprep.subr.bf16.mxu0 %v4430_v13  ;;  %v5260_v11 = vpop.permute.xlu1 %451  ;;  %2135 = vmatpush1.bf16.msra.mxu1 %v4427_v4  ;;  %v450_v39 = vpop.permute.xlu0 %449  ;;  %v422_v4 = vsel %vm419_vm4, %v4936_v18, %v421_v19 }
 0x102   : > { %v458_v58 = vrot.slane %v5260_v11, 4  ;;  %2176 = vmatpush1.bf16.msra.mxu0 %v4429_v14  ;;  %v457_v27 = vrot.slane %v450_v39, 4  ;;  %v424_v14 = vsel %vm419_vm4, %v408_v20, %v423_v60 }
 0x103   : > { %831 = vrot.lane.b32.xlu0 %v817_v12, %s6797_s11  ;;  %881 = vrot.lane.b32.xlu1 %v867_v41, %s6798_s12 }
 0x104   : > { %v465_v8 = vsel %vm333_vm1, %v457_v27, %v458_v58  ;;  %v463_v24 = vsel %vm333_vm1, %v456_v29, %v457_v27 }
 0x105   : > { %v466_v22 = vsel %vm461_vm5, %v450_v39, %v465_v8  ;;  %v5281_v28 = vpop.permute.xlu1 %493  ;;  %v492_v13 = vpop.permute.xlu0 %491  ;;  %v464_v12 = vsel %vm461_vm5, %v4945_v26, %v463_v24  ;;  %v993_v39 = vld [vmem:[%s4812_s10 + $0x24] sm:$0xf] }
 0x106   : > { %v4437_v41 = vcombine.low %v424_v14, %v466_v22  ;;  %v500_v63 = vrot.slane %v5281_v28, 4  ;;  %v499_v29 = vrot.slane %v492_v13, 4  ;;  %v4436_v27 = vcombine.high %v422_v4, %v464_v12  ;;  %v1035_v8 = vld [vmem:[%s4812_s10 + $0x24] sm:$0xf] }
 0x107   : > { %923 = vrot.lane.b32.xlu0 %v909_v15, %s6783_s29  ;;  %v4438_v60 = vcombine.high %v424_v14, %v466_v22  ;;  %v4435_v20 = vcombine.low %v422_v4, %v464_v12  ;;  %965 = vrot.lane.b32.xlu1 %v951_v49, %s6784_s30  ;;  %v1077_v22 = vld [vmem:[%s4812_s10 + $0x24] sm:$0xf] }
 0x108   : > { %2136 = vmatprep.subr.bf16.mxu1 %v4436_v27  ;;  %v507_v19 = vsel %vm333_vm1, %v499_v29, %v500_v63  ;;  %v505_v49 = vsel %vm333_vm1, %v498_v36, %v499_v29  ;;  %v1119_v12 = vld [vmem:[%s4812_s10 + $0x24] sm:$0xf] }
 0x109   : > { %2177 = vmatprep.subr.bf16.mxu0 %v4438_v60  ;;  %v5292_v18 = vpop.permute.xlu1 %535  ;;  %2137 = vmatpush1.bf16.msra.mxu1 %v4435_v20  ;;  %v534_v26 = vpop.permute.xlu0 %533  ;;  %v506_v60 = vsel %vm503_vm6, %v4960_v34, %v505_v49 }
 0x10a   : > { %v542_v15 = vrot.slane %v5292_v18, 4  ;;  %2178 = vmatpush1.bf16.msra.mxu0 %v4437_v41  ;;  %v541_v24 = vrot.slane %v534_v26, 4  ;;  %v508_v41 = vsel %vm503_vm6, %v492_v13, %v507_v19 }
 0x10b   : > { %1007 = vrot.lane.b32.xlu0 %v993_v39, %s6785_s24  ;;  %1049 = vrot.lane.b32.xlu1 %v1035_v8, %s6786_s23 }
 0x10c   : > { %v549_v14 = vsel %vm333_vm1, %v541_v24, %v542_v15  ;;  %v547_v4 = vsel %vm333_vm1, %v540_v43, %v541_v24 }
 0x10d   : > { %v550_v36 = vsel %vm545_vm7, %v534_v26, %v549_v14  ;;  %v5313_v29 = vpop.permute.xlu1 %577  ;;  %v576_v27 = vpop.permute.xlu0 %575  ;;  %v548_v20 = vsel %vm545_vm7, %v4967_v40, %v547_v4  ;;  %v1161_v26 = vld [vmem:[%s4812_s10 + $0x24] sm:$0xf] }
 0x10e   : > { %v4445_v39 = vcombine.low %v508_v41, %v550_v36  ;;  %v584_v8 = vrot.slane %v5313_v29, 4  ;;  %v583_v43 = vrot.slane %v576_v27, 4  ;;  %v4444_v24 = vcombine.high %v506_v60, %v548_v20  ;;  %v1203_v14 = vld [vmem:[%s4812_s10 + $0x24] sm:$0xf] }
 0x10f   : > { %1091 = vrot.lane.b32.xlu0 %v1077_v22, %s6787_s21  ;;  %v4446_v13 = vcombine.high %v508_v41, %v550_v36  ;;  %v4443_v19 = vcombine.low %v506_v60, %v548_v20  ;;  %1133 = vrot.lane.b32.xlu1 %v1119_v12, %s6788_s22  ;;  %v1245_v36 = vld [vmem:[%s4812_s10 + $0x24] sm:$0xf] }
 0x110   : > { %2138 = vmatprep.subr.bf16.mxu1 %v4444_v24  ;;  %v591_v49 = vsel %vm333_vm1, %v583_v43, %v584_v8  ;;  %v589_v12 = vsel %vm333_vm1, %v582_v50, %v583_v43  ;;  %v1287_v20 = vld [vmem:[%s4812_s10 + $0x24] sm:$0xf] }
 0x111   : > { %2179 = vmatprep.subr.bf16.mxu0 %v4446_v13  ;;  %v5324_v34 = vpop.permute.xlu1 %619  ;;  %2139 = vmatpush1.bf16.msra.mxu1 %v4443_v19  ;;  %v618_v40 = vpop.permute.xlu0 %617  ;;  %v590_v13 = vsel %vm587_vm8, %v4982_v48, %v589_v12 }
 0x112   : > { %v626_v22 = vrot.slane %v5324_v34, 4  ;;  %2180 = vmatpush1.bf16.msra.mxu0 %v4445_v39  ;;  %v625_v4 = vrot.slane %v618_v40, 4  ;;  %v592_v39 = vsel %vm587_vm8, %v576_v27, %v591_v49 }
 0x113   : > { %1175 = vrot.lane.b32.xlu0 %v1161_v26, %s6789_s19  ;;  %1217 = vrot.lane.b32.xlu1 %v1203_v14, %s6790_s20 }
 0x114   : > { %v633_v41 = vsel %vm333_vm1, %v625_v4, %v626_v22  ;;  %v631_v60 = vsel %vm333_vm1, %v624_v57, %v625_v4 }
 0x115   : > { %v634_v50 = vsel %vm6746_vm9, %v618_v40, %v633_v41  ;;  %v5345_v43 = vpop.permute.xlu1 %661  ;;  %v660_v24 = vpop.permute.xlu0 %659  ;;  %v632_v19 = vsel %vm6746_vm9, %v4989_v54, %v631_v60  ;;  %v1329_v40 = vld [vmem:[%s4812_s10 + $0x24] sm:$0xf] }
 0x116   : > { %v4453_v26 = vcombine.low %v592_v39, %v634_v50  ;;  %v668_v14 = vrot.slane %v5345_v43, 4  ;;  %v667_v57 = vrot.slane %v660_v24, 4  ;;  %v4452_v4 = vcombine.high %v590_v13, %v632_v19  ;;  %v1371_v41 = vld [vmem:[%s4812_s10 + $0x24] sm:$0xf] }
 0x117   : > { %1259 = vrot.lane.b32.xlu0 %v1245_v36, %s6791_s17  ;;  %v4454_v27 = vcombine.high %v592_v39, %v634_v50  ;;  %v4451_v49 = vcombine.low %v590_v13, %v632_v19  ;;  %1301 = vrot.lane.b32.xlu1 %v1287_v20, %s6740_s25  ;;  %s6860_s25 = smov 111  }
 0x118   : > { %2140 = vmatprep.subr.bf16.mxu1 %v4452_v4  ;;  %v675_v48 = vsel %vm333_vm1, %v667_v57, %v668_v14  ;;  %v673_v20 = vsel %vm333_vm1, %v666_v0, %v667_v57 }
 0x119   : > { %2181 = vmatprep.subr.bf16.mxu0 %v4454_v27  ;;  %v5359_v54 = vpop.permute.xlu1 %703  ;;  %2141 = vmatpush1.bf16.msra.mxu1 %v4451_v49  ;;  %v702_v12 = vpop.permute.xlu0 %701  ;;  %v676_v39 = vsel %vm6743_vm10, %v660_v24, %v675_v48  ;;  %v674_v0 = vsel %vm6743_vm10, %v5004_v62, %v673_v20  ;;  %v2257_v24 = vld [vmem:[%s6799_s2] sm:$0xff]  ;;  %v4752_v48 = vmov 0   ;;  %s6866_s2 = smov 90  }
 0x11a   : > { %v710_v60 = vrot.slane %v5359_v54, 4  ;;  %2182 = vmatpush1.bf16.msra.mxu0 %v4453_v26  ;;  %v709_v36 = vrot.slane %v702_v12, 4  ;;  %v2271_v27 = vld [vmem:[%s6800_s3] sm:$0xff]  ;;  %4713 = vset.pattern.permute.xlu0 %v4752_v48  ;;  %2342 = vst [vmem:[#allocation3] sm:$0xf] %v4752_v48  ;;  %s6867_s3 = smov 19  }
 0x11b   : > { %1343 = vrot.lane.b32.xlu0 %v1329_v40, %s6738_s26  ;;  %1385 = vrot.lane.b32.xlu1 %v1371_v41, %s6736_s9  ;;  %2343 = vst [vmem:[#allocation3 + $0x24] sm:$0xf] %v4752_v48  ;;  %s6861_s26 = smov 110   ;;  %s6862_s9 = smov 109  }
 0x11c   : > { %v717_v50 = vsel %vm333_vm1, %v709_v36, %v710_v60  ;;  %v715_v13 = vsel %vm333_vm1, %v708_v16, %v709_v36  ;;  %4714 = vset.pattern.permute.xlu1 %v4752_v48 }
 0x11d   : > { %v718_v19 = vsel %vm6742_vm11, %v702_v12, %v717_v50  ;;  %v5375_v26 = vpop.permute.xlu1 %745  ;;  %v744_v4 = vpop.permute.xlu0 %743  ;;  %v716_v57 = vsel %vm6742_vm11, %v5011_v9, %v715_v13  ;;  %vm6801_vm11 = vcmask 72704  }
 0x11e   : > { %v4461_v16 = vcombine.low %v676_v39, %v718_v19  ;;  %v6744_v49 = vrot.slane %v5375_v26, 4  ;;  %v751_v40 = vrot.slane %v744_v4, 4  ;;  %v4460_v41 = vcombine.high %v674_v0, %v716_v57  ;;  %vm6802_vm10 = vmmov %vm6801_vm11 }
 0x11f   : > { %v4462_v62 = vcombine.high %v676_v39, %v718_v19  ;;  %v4459_v9 = vcombine.low %v674_v0, %v716_v57  ;;  %2260 = vperm.xlu0 %4713, %v2257_v24   ;;  %2274 = vperm.xlu1 %4714, %v2271_v27  }
 0x120   : > { %2142 = vmatprep.subr.bf16.mxu1 %v4460_v41  ;;  %v759_v20 = vsel %vm333_vm1, %v751_v40, %v6744_v49  ;;  %v757_v39 = vsel %vm333_vm1, %v750_v6, %v751_v40 }
 0x121   : > { %2183 = vmatprep.subr.bf16.mxu0 %v4462_v62  ;;  %v5388_v12 = vpop.permute.xlu1 %787  ;;  %2143 = vmatpush1.bf16.msra.mxu1 %v4459_v9  ;;  %v786_v36 = vpop.permute.xlu0 %785  ;;  %v760_v57 = vsel %vm6745_vm12, %v744_v4, %v759_v20  ;;  %v758_v41 = vsel %vm6745_vm12, %v5032_v25, %v757_v39 }
 0x122   : > { %v794_v50 = vrot.slane %v5388_v12, 4  ;;  %2184 = vmatpush1.bf16.msra.mxu0 %v4461_v16  ;;  %v793_v13 = vrot.slane %v786_v36, 4 }
 0x124   : > { %v801_v19 = vsel %vm333_vm1, %v793_v13, %v794_v50  ;;  %v799_v0 = vsel %vm333_vm1, %v792_v35, %v793_v13  ;;  %v856_v13 = vld [vmem:[%s4812_s10 + $0xc] sm:$0xff] }
 0x125   : > { %v802_v24 = vsel %vm6801_vm11, %v786_v36, %v801_v19  ;;  %v5405_v27 = vpop.permute.xlu1 %829  ;;  %v828_v16 = vpop.permute.xlu0 %827  ;;  %v800_v6 = vsel %vm6802_vm10, %v5039_v31, %v799_v0  ;;  %vm6803_vm11 = vcmask 7168  }
 0x126   : > { %v4469_v40 = vcombine.low %v760_v57, %v802_v24  ;;  %v836_v48 = vrot.slane %v5405_v27, 4  ;;  %v835_v62 = vrot.slane %v828_v16, 4  ;;  %v4468_v9 = vcombine.high %v758_v41, %v800_v6  ;;  %vm6804_vm10 = vmmov %vm6803_vm11 }
 0x127   : > { %v4470_v49 = vcombine.high %v760_v57, %v802_v24  ;;  %v4467_v35 = vcombine.low %v758_v41, %v800_v6 }
 0x128   : > { %v843_v4 = vsel %vm333_vm1, %v835_v62, %v836_v48  ;;  %2144 = vmatprep.subr.bf16.mxu1 %v4468_v9  ;;  %v841_v25 = vsel %vm333_vm1, %v834_v45, %v835_v62 }
 0x129   : > { %v844_v36 = vsel %vm6803_vm11, %v828_v16, %v843_v4  ;;  %2185 = vmatprep.subr.bf16.mxu0 %v4470_v49  ;;  %v5420_v31 = vpop.permute.xlu1 %879  ;;  %2145 = vmatpush1.bf16.msra.mxu1 %v4467_v35  ;;  %v878_v20 = vpop.permute.xlu0 %877  ;;  %v842_v39 = vsel %vm6804_vm10, %v5054_v42, %v841_v25  ;;  %vm6805_vm11 = vcmask 1039360   ;;  %vm6806_vm10 = vcmask 973824  }
 0x12a   : > { %v4477_v19 = vcombine.low %v844_v36, %v5028_v21  ;;  %v886_v0 = vrot.slane %v5420_v31, 4  ;;  %2186 = vmatpush1.bf16.msra.mxu0 %v4469_v40  ;;  %v885_v57 = vrot.slane %v878_v20, 4  ;;  %v4476_v24 = vcombine.high %v842_v39, %v856_v13  ;;  %vm6807_vm12 = vmmov %vm6805_vm11 }
 0x12b   : > { %v4478_v41 = vcombine.high %v844_v36, %v5028_v21  ;;  %v4475_v45 = vcombine.low %v842_v39, %v856_v13  ;;  %vm6808_vm9 = vmmov %vm6806_vm10 }
 0x12c   : > { %2146 = vmatprep.subr.bf16.mxu1 %v4476_v24  ;;  %v893_v42 = vsel %vm333_vm1, %v885_v57, %v886_v0  ;;  %v891_v40 = vsel %vm333_vm1, %v884_v56, %v885_v57 }
 0x12d   : > { %2187 = vmatprep.subr.bf16.mxu0 %v4478_v41  ;;  %v5427_v49 = vpop.permute.xlu1 %921  ;;  %2147 = vmatpush1.bf16.msra.mxu1 %v4475_v45  ;;  %v920_v16 = vpop.permute.xlu0 %919  ;;  %v894_v35 = vsel %vm6805_vm11, %v878_v20, %v893_v42  ;;  %v892_v36 = vsel %vm6807_vm12, %v5065_v53, %v891_v40  ;;  %vm6810_vm12 = vcmask 957440  }
 0x12e   : > { %v928_v6 = vrot.slane %v5427_v49, 4  ;;  %2188 = vmatpush1.bf16.msra.mxu0 %v4477_v19  ;;  %v927_v62 = vrot.slane %v920_v16, 4 }
 0x130   : > { %v935_v21 = vsel %vm333_vm1, %v927_v62, %v928_v6  ;;  %v933_v9 = vsel %vm333_vm1, %v926_v2, %v927_v62 }
 0x131   : > { %v936_v13 = vsel %vm6806_vm10, %v920_v16, %v935_v21  ;;  %v5444_v4 = vpop.permute.xlu1 %963  ;;  %v962_v25 = vpop.permute.xlu0 %961  ;;  %v934_v56 = vsel %vm6808_vm9, %v5074_v61, %v933_v9  ;;  %vm6809_vm9 = vcmask 965632   ;;  %vm6812_vm10 = vmmov %vm6810_vm12 }
 0x132   : > { %v4485_v39 = vcombine.low %v894_v35, %v936_v13  ;;  %v970_v19 = vrot.slane %v5444_v4, 4  ;;  %v969_v57 = vrot.slane %v962_v25, 4  ;;  %v4484_v24 = vcombine.high %v892_v36, %v934_v56  ;;  %vm6811_vm11 = vmmov %vm6809_vm9 }
 0x133   : > { %v4486_v41 = vcombine.high %v894_v35, %v936_v13  ;;  %v4483_v2 = vcombine.low %v892_v36, %v934_v56 }
 0x134   : > { %2148 = vmatprep.subr.bf16.mxu1 %v4484_v24  ;;  %v977_v53 = vsel %vm333_vm1, %v969_v57, %v970_v19  ;;  %v975_v42 = vsel %vm333_vm1, %v968_v23, %v969_v57 }
 0x135   : > { %2189 = vmatprep.subr.bf16.mxu0 %v4486_v41  ;;  %v5451_v20 = vpop.permute.xlu1 %1005  ;;  %2149 = vmatpush1.bf16.msra.mxu1 %v4483_v2  ;;  %v1004_v45 = vpop.permute.xlu0 %1003  ;;  %v978_v21 = vsel %vm6809_vm9, %v962_v25, %v977_v53  ;;  %v976_v36 = vsel %vm6811_vm11, %v5089_v17, %v975_v42  ;;  %v6813_v42 = vrot.slane %v5118_v55, 4  ;;  %vm6814_vm9 = vcmask 318464  }
 0x136   : > { %v1012_v16 = vrot.slane %v5451_v20, 4  ;;  %2190 = vmatpush1.bf16.msra.mxu0 %v4485_v39  ;;  %v1011_v61 = vrot.slane %v1004_v45, 4  ;;  %vm6816_vm11 = vmmov %vm6814_vm9 }
 0x138   : > { %v1019_v62 = vsel %vm333_vm1, %v1011_v61, %v1012_v16  ;;  %v1017_v40 = vsel %vm333_vm1, %v1010_v33, %v1011_v61 }
 0x139   : > { %v1020_v9 = vsel %vm6810_vm12, %v1004_v45, %v1019_v62  ;;  %v5468_v35 = vpop.permute.xlu1 %1047  ;;  %v1046_v13 = vpop.permute.xlu0 %1045  ;;  %v1018_v23 = vsel %vm6812_vm10, %v5096_v30, %v1017_v40  ;;  %vm6815_vm12 = vcmask 310272  }
 0x13a   : > { %v4493_v56 = vcombine.low %v978_v21, %v1020_v9  ;;  %v1054_v39 = vrot.slane %v5468_v35, 4  ;;  %v1053_v57 = vrot.slane %v1046_v13, 4  ;;  %v4492_v24 = vcombine.high %v976_v36, %v1018_v23  ;;  %vm6817_vm10 = vmmov %vm6815_vm12 }
 0x13b   : > { %v4494_v41 = vcombine.high %v978_v21, %v1020_v9  ;;  %v4491_v33 = vcombine.low %v976_v36, %v1018_v23 }
 0x13c   : > { %2150 = vmatprep.subr.bf16.mxu1 %v4492_v24  ;;  %v1061_v17 = vsel %vm333_vm1, %v1053_v57, %v1054_v39  ;;  %v1059_v53 = vsel %vm333_vm1, %v1052_v47, %v1053_v57 }
 0x13d   : > { %2191 = vmatprep.subr.bf16.mxu0 %v4494_v41  ;;  %v5475_v25 = vpop.permute.xlu1 %1089  ;;  %2151 = vmatpush1.bf16.msra.mxu1 %v4491_v33  ;;  %v1088_v2 = vpop.permute.xlu0 %1087  ;;  %v1062_v40 = vsel %vm6814_vm9, %v1046_v13, %v1061_v17  ;;  %v1060_v23 = vsel %vm6816_vm11, %v5111_v44, %v1059_v53  ;;  %v6818_v53 = vrot.slane %v5133_v10, 4  ;;  %vm6820_vm9 = vcmask 302080  }
 0x13e   : > { %v1096_v45 = vrot.slane %v5475_v25, 4  ;;  %2192 = vmatpush1.bf16.msra.mxu0 %v4493_v56  ;;  %v1095_v30 = vrot.slane %v1088_v2, 4  ;;  %vm6822_vm11 = vmmov %vm6820_vm9 }
 0x140   : > { %v1103_v61 = vsel %vm333_vm1, %v1095_v30, %v1096_v45  ;;  %v1101_v62 = vsel %vm333_vm1, %v6813_v42, %v1095_v30 }
 0x141   : > { %v1104_v21 = vsel %vm6815_vm12, %v1088_v2, %v1103_v61  ;;  %v5492_v9 = vpop.permute.xlu1 %1131  ;;  %v1130_v36 = vpop.permute.xlu0 %1129  ;;  %v1102_v47 = vsel %vm6817_vm10, %v5118_v55, %v1101_v62  ;;  %v6819_v62 = vrot.slane %v5140_v7, 4  ;;  %vm6821_vm12 = vcmask 236544  }
 0x142   : > { %v4501_v56 = vcombine.low %v1062_v40, %v1104_v21  ;;  %v6748_v57 = vrot.slane %v5492_v9, 4  ;;  %v1137_v24 = vrot.slane %v1130_v36, 4  ;;  %v4500_v41 = vcombine.high %v1060_v23, %v1102_v47  ;;  %vm6823_vm10 = vmmov %vm6821_vm12 }
 0x143   : > { %v4502_v33 = vcombine.high %v1062_v40, %v1104_v21  ;;  %v4499_v30 = vcombine.low %v1060_v23, %v1102_v47 }
 0x144   : > { %2152 = vmatprep.subr.bf16.mxu1 %v4500_v41  ;;  %v1145_v44 = vsel %vm333_vm1, %v1137_v24, %v6748_v57  ;;  %v1143_v61 = vsel %vm333_vm1, %v6818_v53, %v1137_v24 }
 0x145   : > { %2193 = vmatprep.subr.bf16.mxu0 %v4502_v33  ;;  %v5499_v13 = vpop.permute.xlu1 %1173  ;;  %2153 = vmatpush1.bf16.msra.mxu1 %v4499_v30  ;;  %v1172_v2 = vpop.permute.xlu0 %1171  ;;  %v1146_v21 = vsel %vm6820_vm9, %v1130_v36, %v1145_v44  ;;  %v1144_v41 = vsel %vm6822_vm11, %v5133_v10, %v1143_v61  ;;  %v6824_v61 = vrot.slane %v5155_v51, 4  ;;  %vm6826_vm9 = vcmask 228352  }
 0x146   : > { %v6747_v17 = vrot.slane %v5499_v13, 4  ;;  %2194 = vmatpush1.bf16.msra.mxu0 %v4501_v56  ;;  %v1179_v55 = vrot.slane %v1172_v2, 4  ;;  %vm6828_vm11 = vmmov %vm6826_vm9 }
 0x148   : > { %v1187_v42 = vsel %vm333_vm1, %v1179_v55, %v6747_v17  ;;  %v1185_v40 = vsel %vm333_vm1, %v6819_v62, %v1179_v55 }
 0x149   : > { %v1188_v23 = vsel %vm6821_vm12, %v1172_v2, %v1187_v42  ;;  %v5516_v47 = vpop.permute.xlu1 %1215  ;;  %v1214_v56 = vpop.permute.xlu0 %1213  ;;  %v1186_v24 = vsel %vm6823_vm10, %v5140_v7, %v1185_v40  ;;  %vm6827_vm12 = vcmask 220160  }
 0x14a   : > { %v4509_v33 = vcombine.low %v1146_v21, %v1188_v23  ;;  %v6750_v30 = vrot.slane %v5516_v47, 4  ;;  %v1221_v53 = vrot.slane %v1214_v56, 4  ;;  %v4508_v17 = vcombine.high %v1144_v41, %v1186_v24  ;;  %vm6829_vm10 = vmmov %vm6827_vm12 }
 0x14b   : > { %v4510_v57 = vcombine.high %v1146_v21, %v1188_v23  ;;  %v4507_v55 = vcombine.low %v1144_v41, %v1186_v24 }
 0x14c   : > { %2154 = vmatprep.subr.bf16.mxu1 %v4508_v17  ;;  %v1229_v10 = vsel %vm333_vm1, %v1221_v53, %v6750_v30  ;;  %v1227_v42 = vsel %vm333_vm1, %v6824_v61, %v1221_v53  ;;  %v6825_v17 = vrot.slane %v5162_v3, 4 }
 0x14d   : > { %2195 = vmatprep.subr.bf16.mxu0 %v4510_v57  ;;  %v5523_v36 = vpop.permute.xlu1 %1257  ;;  %2155 = vmatpush1.bf16.msra.mxu1 %v4507_v55  ;;  %v1256_v2 = vpop.permute.xlu0 %1255  ;;  %v1230_v40 = vsel %vm6826_vm9, %v1214_v56, %v1229_v10  ;;  %v1228_v24 = vsel %vm6828_vm11, %v5155_v51, %v1227_v42  ;;  %v6830_v42 = vrot.slane %v5179_v46, 4  ;;  %vm6836_vm9 = vcmask 736256  }
 0x14e   : > { %v6749_v44 = vrot.slane %v5523_v36, 4  ;;  %2196 = vmatpush1.bf16.msra.mxu0 %v4509_v33  ;;  %v1263_v7 = vrot.slane %v1256_v2, 4  ;;  %vm6838_vm11 = vcmask 89088  }
 0x150   : > { %v1271_v57 = vsel %vm333_vm1, %v1263_v7, %v6749_v44  ;;  %v1269_v62 = vsel %vm333_vm1, %v6825_v17, %v1263_v7 }
 0x151   : > { %v1272_v21 = vsel %vm6827_vm12, %v1256_v2, %v1271_v57  ;;  %v5540_v23 = vpop.permute.xlu1 %1299  ;;  %v1298_v41 = vpop.permute.xlu0 %1297  ;;  %v1270_v33 = vsel %vm6829_vm10, %v5162_v3, %v1269_v62  ;;  %vm6837_vm12 = vcmask 728064   ;;  %vm6840_vm10 = vcmask 80896  }
 0x152   : > { %v4517_v53 = vcombine.low %v1230_v40, %v1272_v21  ;;  %v6752_v55 = vrot.slane %v5540_v23, 4  ;;  %v1305_v61 = vrot.slane %v1298_v41, 4  ;;  %v4516_v44 = vcombine.high %v1228_v24, %v1270_v33 }
 0x153   : > { %v4518_v30 = vcombine.high %v1230_v40, %v1272_v21  ;;  %v4515_v7 = vcombine.low %v1228_v24, %v1270_v33 }
 0x154   : > { %2156 = vmatprep.subr.bf16.mxu1 %v4516_v44  ;;  %v1313_v51 = vsel %vm333_vm1, %v1305_v61, %v6752_v55  ;;  %v1311_v57 = vsel %vm333_vm1, %v6830_v42, %v1305_v61  ;;  %v6831_v44 = vrot.slane %v5186_v52, 4 }
 0x155   : > { %2197 = vmatprep.subr.bf16.mxu0 %v4518_v30  ;;  %v5547_v56 = vpop.permute.xlu1 %1341  ;;  %2157 = vmatpush1.bf16.msra.mxu1 %v4515_v7  ;;  %v1340_v2 = vpop.permute.xlu0 %1339  ;;  %v1314_v62 = vsel %vm1309_vm13, %v1298_v41, %v1313_v51  ;;  %v1312_v33 = vsel %vm1309_vm13, %v5179_v46, %v1311_v57  ;;  %v6832_v41 = vrot.slane %v5201_v1, 4 }
 0x156   : > { %v6751_v10 = vrot.slane %v5547_v56, 4  ;;  %2198 = vmatpush1.bf16.msra.mxu0 %v4517_v53  ;;  %v1347_v3 = vrot.slane %v1340_v2, 4 }
 0x158   : > { %v1355_v30 = vsel %vm333_vm1, %v1347_v3, %v6751_v10  ;;  %v1353_v17 = vsel %vm333_vm1, %v6831_v44, %v1347_v3 }
 0x159   : > { %v1356_v40 = vsel %vm1351_vm14, %v1340_v2, %v1355_v30  ;;  %v5564_v21 = vpop.permute.xlu1 %1383  ;;  %v1382_v24 = vpop.permute.xlu0 %1381  ;;  %v1354_v53 = vsel %vm1351_vm14, %v5186_v52, %v1353_v17 }
 0x15a   : > { %v4525_v61 = vcombine.low %v1314_v62, %v1356_v40  ;;  %v1390_v7 = vrot.slane %v5564_v21, 4  ;;  %v1389_v42 = vrot.slane %v1382_v24, 4  ;;  %v4524_v10 = vcombine.high %v1312_v33, %v1354_v53 }
 0x15b   : > { %v4526_v55 = vcombine.high %v1314_v62, %v1356_v40  ;;  %v4523_v3 = vcombine.low %v1312_v33, %v1354_v53 }
 0x15c   : > { %v1395_v2 = vsel %vm333_vm1, %v6832_v41, %v1389_v42  ;;  %v1397_v51 = vsel %vm333_vm1, %v1389_v42, %v1390_v7  ;;  %2158 = vmatprep.subr.bf16.mxu1 %v4524_v10  ;;  %v6833_v41 = vrot.slane %v5225_v32, 4 }
 0x15d   : > { %v1398_v46 = vsel %vm1393_vm15, %v1382_v24, %v1397_v51  ;;  %2199 = vmatprep.subr.bf16.mxu0 %v4526_v55  ;;  %v370_v52 = vpop.permute.xlu1 %369  ;;  %2159 = vmatpush1.bf16.msra.mxu1 %v4523_v3  ;;  %v327_v57 = vpop.permute.xlu0 %326  ;;  %v1396_v30 = vsel %vm1393_vm15, %v5201_v1, %v1395_v2  ;;  %v6834_v24 = vrot.slane %v5212_v37, 4 }
 0x15e   : > { %v4533_v44 = vcombine.low %v1398_v46, %v1398_v46  ;;  %v4534_v17 = vcombine.high %v1398_v46, %v1398_v46  ;;  %v375_v62 = vrot.slane %v370_v52, 4  ;;  %2200 = vmatpush1.bf16.msra.mxu0 %v4525_v61  ;;  %v332_v40 = vrot.slane %v327_v57, 4 }
 0x15f   : > { %v4532_v33 = vcombine.high %v1396_v30, %v1396_v30  ;;  %v4531_v53 = vcombine.low %v1396_v30, %v1396_v30 }
 0x160   : > { %v383_v10 = vsel %vm333_vm1, %v6833_v41, %v375_v62  ;;  %v341_v55 = vsel %vm333_vm1, %v6834_v24, %v332_v40  ;;  %4541 = vmatprep.subr.msk.bf16.mxu0 %vm333_vm1, %v4534_v17  ;;  %v2082_v42 = vsel %vm333_vm1, %v4533_v44, 0  ;;  %v6835_v17 = vrot.slane %v5247_v59, 4 }
 0x161   : > { %4539 = vmatprep.subr.msk.bf16.mxu1 %vm333_vm1, %v4532_v33  ;;  %v454_v1 = vpop.permute.xlu1 %453  ;;  %v2076_v61 = vsel %vm333_vm1, %v4531_v53, 0  ;;  %v412_v3 = vpop.permute.xlu0 %411  ;;  %v342_v2 = vsel %vm335_vm2, %v5212_v37, %v341_v55  ;;  %v384_v51 = vsel %vm377_vm3, %v5225_v32, %v383_v10 }
 0x162   : > { %v459_v46 = vrot.slane %v454_v1, 4  ;;  %2161 = vmatpush1.bf16.msra.mxu1 %v2076_v61  ;;  %2202 = vmatpush1.bf16.msra.mxu0 %v2082_v42  ;;  %v417_v52 = vrot.slane %v412_v3, 4  ;;  %v4431_v57 = vcombine.low %v342_v2, %v384_v51  ;;  %v4432_v30 = vcombine.high %v342_v2, %v384_v51 }
 0x164   : > { %v467_v44 = vsel %vm333_vm1, %v458_v58, %v459_v46  ;;  %v425_v62 = vsel %vm333_vm1, %v6835_v17, %v417_v52  ;;  %2216 = vmatprep.subr.bf16.mxu1 %v4432_v30 }
 0x165   : > { %2167 = vmatmul.mubr.bf16.vlgmr.msra.gmra.mrb[0].mxu1 %v5223_v38  ;;  %2208 = vmatmul.mubr.bf16.vlgmr.msra.gmra.mrb[4].mxu0 %v5223_v38  ;;  %v538_v37 = vpop.permute.xlu1 %537  ;;  %v496_v32 = vpop.permute.xlu0 %495  ;;  %v426_v40 = vsel %vm419_vm4, %v5247_v59, %v425_v62  ;;  %v468_v33 = vsel %vm461_vm5, %v5260_v11, %v467_v44 }
 0x166   : > { %v543_v53 = vrot.slane %v538_v37, 4  ;;  %2217 = vmatpush1.bf16.msra.mxu1 %v4431_v57  ;;  %v501_v58 = vrot.slane %v496_v32, 4  ;;  %v4439_v41 = vcombine.low %v426_v40, %v468_v33  ;;  %v4440_v10 = vcombine.high %v426_v40, %v468_v33  ;;  %4544 = vmatprep.mubr.msk.bf16.mxu1 %vm2064_vm0, %v4889_v5 }
 0x168   : > { %v551_v24 = vsel %vm333_vm1, %v542_v15, %v543_v53  ;;  %v509_v55 = vsel %vm333_vm1, %v500_v63, %v501_v58  ;;  %2218 = vmatprep.subr.bf16.mxu1 %v4440_v10 }
 0x169   : > { %v622_v59 = vpop.permute.xlu1 %621  ;;  %v580_v42 = vpop.permute.xlu0 %579  ;;  %v510_v11 = vsel %vm503_vm6, %v5281_v28, %v509_v55  ;;  %v552_v1 = vsel %vm545_vm7, %v5292_v18, %v551_v24 }
 0x16a   : > { %v627_v61 = vrot.slane %v622_v59, 4  ;;  %2219 = vmatpush1.bf16.msra.mxu1 %v4439_v41  ;;  %v585_v5 = vrot.slane %v580_v42, 4  ;;  %v4447_v3 = vcombine.low %v510_v11, %v552_v1  ;;  %v4448_v2 = vcombine.high %v510_v11, %v552_v1  ;;  %v858_v42 = vld [vmem:[%s4812_s10 + $0x1c] sm:$0xff]  ;;  %s6864_s10 = smov 100  }
 0x16c   : > { %v635_v15 = vsel %vm333_vm1, %v626_v22, %v627_v61  ;;  %v593_v63 = vsel %vm333_vm1, %v584_v8, %v585_v5  ;;  %2220 = vmatprep.subr.bf16.mxu1 %v4448_v2 }
 0x16d   : > { %v706_v51 = vpop.permute.xlu1 %705  ;;  %v664_v46 = vpop.permute.xlu0 %663  ;;  %v594_v28 = vsel %vm587_vm8, %v5313_v29, %v593_v63  ;;  %v636_v18 = vsel %vm6836_vm9, %v5324_v34, %v635_v15  ;;  %vm6841_vm9 = vcmask 72704  }
 0x16e   : > { %v711_v52 = vrot.slane %v706_v51, 4  ;;  %2221 = vmatpush1.bf16.msra.mxu1 %v4447_v3  ;;  %v669_v57 = vrot.slane %v664_v46, 4  ;;  %v4455_v30 = vcombine.low %v594_v28, %v636_v18  ;;  %v4456_v44 = vcombine.high %v594_v28, %v636_v18 }
 0x170   : > { %v719_v22 = vsel %vm333_vm1, %v710_v60, %v711_v52  ;;  %v677_v8 = vsel %vm333_vm1, %v668_v14, %v669_v57  ;;  %2222 = vmatprep.subr.bf16.mxu1 %v4456_v44  ;;  %v6839_v14 = vrot.slane %v5375_v26, 4 }
 0x171   : > { %v790_v17 = vpop.permute.xlu1 %789  ;;  %v748_v62 = vpop.permute.xlu0 %747  ;;  %v678_v29 = vsel %vm6837_vm12, %v5345_v43, %v677_v8  ;;  %v720_v34 = vsel %vm6838_vm11, %v5359_v54, %v719_v22  ;;  %vm6842_vm12 = vcmask 7168   ;;  %vm6843_vm11 = vcmask 1039360  }
 0x172   : > { %v795_v37 = vrot.slane %v790_v17, 4  ;;  %2223 = vmatpush1.bf16.msra.mxu1 %v4455_v30  ;;  %v753_v32 = vrot.slane %v748_v62, 4  ;;  %v4463_v40 = vcombine.low %v678_v29, %v720_v34  ;;  %v4464_v33 = vcombine.high %v678_v29, %v720_v34 }
 0x174   : > { %v803_v60 = vsel %vm333_vm1, %v794_v50, %v795_v37  ;;  %v761_v53 = vsel %vm333_vm1, %v6839_v14, %v753_v32  ;;  %2224 = vmatprep.subr.bf16.mxu1 %v4464_v33  ;;  %v6852_v14 = vrot.slane %v5516_v47, 4 }
 0x175   : > { %v832_v58 = vpop.permute.xlu0 %831  ;;  %v762_v43 = vsel %vm6840_vm10, %v5375_v26, %v761_v53  ;;  %v804_v54 = vsel %vm6841_vm9, %v5388_v12, %v803_v60  ;;  %v882_v41 = vpop.permute.xlu1 %881  ;;  %vm6844_vm10 = vcmask 973824   ;;  %vm6845_vm9 = vcmask 965632  }
 0x176   : > { %2225 = vmatpush1.bf16.msra.mxu1 %v4463_v40  ;;  %v837_v10 = vrot.slane %v832_v58, 4  ;;  %v4471_v24 = vcombine.low %v762_v43, %v804_v54  ;;  %v4472_v55 = vcombine.high %v762_v43, %v804_v54  ;;  %v887_v59 = vrot.slane %v882_v41, 4 }
 0x178   : > { %v845_v50 = vsel %vm333_vm1, %v836_v48, %v837_v10  ;;  %2226 = vmatprep.subr.bf16.mxu1 %v4472_v55  ;;  %v895_v11 = vsel %vm333_vm1, %v886_v0, %v887_v59  ;;  %v6855_v55 = vrot.slane %v5523_v36, 4 }
 0x179   : > { %v924_v26 = vpop.permute.xlu0 %923  ;;  %v846_v12 = vsel %vm6842_vm12, %v5405_v27, %v845_v50  ;;  %v966_v1 = vpop.permute.xlu1 %965  ;;  %v896_v15 = vsel %vm6843_vm11, %v5420_v31, %v895_v11  ;;  %vm6846_vm12 = vcmask 957440   ;;  %vm6847_vm11 = vcmask 318464  }
 0x17a   : > { %2227 = vmatpush1.bf16.msra.mxu1 %v4471_v24  ;;  %v929_v61 = vrot.slane %v924_v26, 4  ;;  %v4479_v5 = vcombine.low %v846_v12, %v858_v42  ;;  %v4480_v3 = vcombine.high %v846_v12, %v858_v42  ;;  %v971_v2 = vrot.slane %v966_v1, 4 }
 0x17b   : > { %v6856_v42 = vrot.slane %v5540_v23, 4 }
 0x17c   : > { %v937_v48 = vsel %vm333_vm1, %v928_v6, %v929_v61  ;;  %2228 = vmatprep.subr.bf16.mxu1 %v4480_v3  ;;  %v979_v0 = vsel %vm333_vm1, %v970_v19, %v971_v2  ;;  %v6858_v3 = vrot.slane %v5547_v56, 4 }
 0x17d   : > { %v1008_v63 = vpop.permute.xlu0 %1007  ;;  %v938_v27 = vsel %vm6844_vm10, %v5427_v49, %v937_v48  ;;  %v1050_v51 = vpop.permute.xlu1 %1049  ;;  %v980_v31 = vsel %vm6845_vm9, %v5444_v4, %v979_v0  ;;  %vm6849_vm10 = vcmask 310272   ;;  %vm6850_vm9 = vcmask 302080  }
 0x17e   : > { %2229 = vmatpush1.bf16.msra.mxu1 %v4479_v5  ;;  %v1013_v46 = vrot.slane %v1008_v63, 4  ;;  %v4487_v28 = vcombine.low %v896_v15, %v938_v27  ;;  %v4488_v18 = vcombine.high %v896_v15, %v938_v27  ;;  %v1055_v52 = vrot.slane %v1050_v51, 4 }
 0x180   : > { %v1021_v6 = vsel %vm333_vm1, %v1012_v16, %v1013_v46  ;;  %2230 = vmatprep.subr.bf16.mxu1 %v4488_v18  ;;  %v1063_v19 = vsel %vm333_vm1, %v1054_v39, %v1055_v52  ;;  %v6848_v39 = vrot.slane %v5492_v9, 4 }
 0x181   : > { %v1092_v57 = vpop.permute.xlu0 %1091  ;;  %v1022_v49 = vsel %vm6846_vm12, %v5451_v20, %v1021_v6  ;;  %v1134_v30 = vpop.permute.xlu1 %1133  ;;  %v1064_v4 = vsel %vm6847_vm11, %v5468_v35, %v1063_v19  ;;  %vm6853_vm12 = vcmask 236544   ;;  %vm6854_vm11 = vcmask 228352  }
 0x182   : > { %2231 = vmatpush1.bf16.msra.mxu1 %v4487_v28  ;;  %v1097_v44 = vrot.slane %v1092_v57, 4  ;;  %v4495_v22 = vcombine.low %v980_v31, %v1022_v49  ;;  %v4496_v8 = vcombine.high %v980_v31, %v1022_v49  ;;  %v1139_v17 = vrot.slane %v1134_v30, 4 }
 0x184   : > { %v1105_v16 = vsel %vm333_vm1, %v1096_v45, %v1097_v44  ;;  %2232 = vmatprep.subr.bf16.mxu1 %v4496_v8  ;;  %v1147_v62 = vsel %vm333_vm1, %v6848_v39, %v1139_v17  ;;  %v6851_v45 = vrot.slane %v5499_v13, 4 }
 0x185   : > { %v1176_v29 = vpop.permute.xlu0 %1175  ;;  %v1106_v20 = vsel %vm6849_vm10, %v5475_v25, %v1105_v16  ;;  %v1218_v34 = vpop.permute.xlu1 %1217  ;;  %v1148_v35 = vsel %vm6850_vm9, %v5492_v9, %v1147_v62  ;;  %vm6857_vm10 = vcmask 220160   ;;  %vm6870_vm9 = vcmask 736256  }
 0x186   : > { %2233 = vmatpush1.bf16.msra.mxu1 %v4495_v22  ;;  %v1181_v37 = vrot.slane %v1176_v29, 4  ;;  %v4503_v32 = vcombine.low %v1064_v4, %v1106_v20  ;;  %v4504_v40 = vcombine.high %v1064_v4, %v1106_v20  ;;  %v1223_v33 = vrot.slane %v1218_v34, 4 }
 0x188   : > { %v1189_v60 = vsel %vm333_vm1, %v6851_v45, %v1181_v37  ;;  %2234 = vmatprep.subr.bf16.mxu1 %v4504_v40  ;;  %v1231_v53 = vsel %vm333_vm1, %v6852_v14, %v1223_v33 }
 0x189   : > { %v1260_v58 = vpop.permute.xlu0 %1259  ;;  %v1190_v25 = vsel %vm6853_vm12, %v5499_v13, %v1189_v60  ;;  %v1302_v43 = vpop.permute.xlu1 %1301  ;;  %v1232_v9 = vsel %vm6854_vm11, %v5516_v47, %v1231_v53  ;;  %vm6871_vm12 = vcmask 728064   ;;  %vm6872_vm11 = vcmask 89088  }
 0x18a   : > { %2235 = vmatpush1.bf16.msra.mxu1 %v4503_v32  ;;  %v1265_v54 = vrot.slane %v1260_v58, 4  ;;  %v4511_v41 = vcombine.low %v1148_v35, %v1190_v25  ;;  %v4512_v10 = vcombine.high %v1148_v35, %v1190_v25  ;;  %v1307_v24 = vrot.slane %v1302_v43, 4 }
 0x18c   : > { %v1273_v59 = vsel %vm333_vm1, %v6855_v55, %v1265_v54  ;;  %2236 = vmatprep.subr.bf16.mxu1 %v4512_v10  ;;  %v1315_v50 = vsel %vm333_vm1, %v6856_v42, %v1307_v24 }
 0x18d   : > { %v1344_v11 = vpop.permute.xlu0 %1343  ;;  %v1274_v13 = vsel %vm6857_vm10, %v5523_v36, %v1273_v59  ;;  %v1386_v26 = vpop.permute.xlu1 %1385  ;;  %v1316_v47 = vsel %vm1309_vm13, %v5540_v23, %v1315_v50  ;;  %vm6873_vm10 = vcmask 80896  }
 0x18e   : > { %2237 = vmatpush1.bf16.msra.mxu1 %v4511_v41  ;;  %v1349_v12 = vrot.slane %v1344_v11, 4  ;;  %v4519_v1 = vcombine.low %v1232_v9, %v1274_v13  ;;  %v4520_v61 = vcombine.high %v1232_v9, %v1274_v13  ;;  %v1391_v5 = vrot.slane %v1386_v26, 4 }
 0x190   : > { %v1357_v2 = vsel %vm333_vm1, %v6858_v3, %v1349_v12  ;;  %2238 = vmatprep.subr.bf16.mxu1 %v4520_v61  ;;  %v1399_v15 = vsel %vm333_vm1, %v1390_v7, %v1391_v5  ;;  %v2294_v7 = vlaneseq }
 0x191   : > { %v1358_v36 = vsel %vm1351_vm14, %v5547_v56, %v1357_v2  ;;  %v1400_v48 = vsel %vm1393_vm15, %v5564_v21, %v1399_v15  ;;  %v307_v21 = vld [vmem:[%s6859_s7] sm:$0xff]  ;;  %s6868_s7 = smov 18  }
 0x192   : > { %2239 = vmatpush1.bf16.msra.mxu1 %v4519_v1  ;;  %v4527_v0 = vcombine.low %v1316_v47, %v1358_v36  ;;  %v4528_v63 = vcombine.high %v1316_v47, %v1358_v36  ;;  %v4536_v27 = vcombine.high %v1400_v48, %v1400_v48  ;;  %v4535_v23 = vcombine.low %v1400_v48, %v1400_v48 }
 0x193   : > { %v2295_v46 = vshrl.u32 %v2294_v7, 7 }
 0x194   : > { %2240 = vmatprep.subr.bf16.mxu1 %v4528_v63  ;;  %v2088_v51 = vsel %vm333_vm1, %v4535_v23, 0 }
 0x195   : > { %v2304_v56 = vsub.s32 2, %v2295_v46  ;;  %v2312_v28 = vsub.s32 4, %v2295_v46  ;;  %v2308_v18 = vsub.s32 3, %v2295_v46  ;;  %v2316_v52 = vsub.s32 5, %v2295_v46 }
 0x196   : > { %2241 = vmatpush1.bf16.msra.mxu1 %v4527_v0  ;;  %v2296_v30 = vsub.s32 0, %v2295_v46  ;;  %v2320_v60 = vsub.s32 6, %v2295_v46  ;;  %v2324_v14 = vsub.s32 7, %v2295_v46 }
 0x197   : > { %4543 = vmatprep.subr.msk.bf16.mxu1 %vm333_vm1, %v4536_v27  ;;  %v2305_v31 = vrot.slane %v307_v21, %v2304_v56  ;;  %v2313_v6 = vrot.slane %v307_v21, %v2312_v28  ;;  %v2309_v19 = vrot.slane %v307_v21, %v2308_v18  ;;  %v2317_v57 = vrot.slane %v307_v21, %v2316_v52 }
 0x198   : > { %v2297_v29 = vrot.slane %v307_v21, %v2296_v30  ;;  %v5740_v53 = vrot.slane %v307_v21, %v2320_v60  ;;  %v5742_v58 = vrot.slane %v307_v21, %v2324_v14 }
 0x19a   : > { %2243 = vmatpush1.bf16.msra.mxu1 %v2088_v51 }
 0x19d   : > { %2249 = vmatmul.mubr.bf16.vlgmr.msra.gmra.mrb[4].mxu1 %v5223_v38  ;;  %v2300_v38 = vsub.s32 1, %v2295_v46 }
 0x19e   : > { %v5725_v49 = vpop.permute.xlu0 %2260  ;;  %v5727_v22 = vpop.permute.xlu1 %2274 }
 0x19f   : > { %v2301_v34 = vrot.slane %v307_v21, %v2300_v38 }
 0x1cf   : > { %v2127_v44 = vpop.f32.mrb[0].mxu0 }
 0x1d0   : > { %v2129_v8 = vpop.f32.mrb[1].mxu0  ;;  %v2263_v17 = vmul.f32 %v5725_v49, %v2127_v44 }
 0x1d1   : > { %v2264_v4 = vmul.f32 %v5725_v49, %v2129_v8  ;;  %v2131_v16 = vpop.f32.mrb[2].mxu0 }
 0x1d2   : > { %v2277_v39 = vadd.f32 %v5727_v22, %v2263_v17  ;;  %v2132_v62 = vpop.f32.mrb[3].mxu0 }
 0x1d3   : > { %v2278_v20 = vadd.f32 %v5727_v22, %v2264_v4 }
 0x1d4   : > { %v2285_v37 = vmax.f32 %v2277_v39, 0.0 }
 0x1d5   : > { %v2286_v32 = vmax.f32 %v2278_v20, 0.0 }
 0x1d6   : > { %v2334_v40 = vmul.f32 %v2297_v29, %v2285_v37 }
 0x1d7   : > { %v2335_v33 = vmul.f32 %v2301_v34, %v2286_v32 }
 0x1d9   : > { %v5733_v35 = vpack.c.bf16 %v2335_v33, %v2334_v40 }
 0x1db   : > { %2376 = vst [vmem:[#allocation3 + $0x4] sm:$0xff] %v5733_v35 }
 0x1e2   : > { %v5736_v45 = vld [vmem:[#allocation3] sm:$0xff] }
 0x1e3   : > { %2390 = vrot.lane.b32.xlu1 %v5736_v45, %s6860_s25 }
 0x238   : > { %v2168_v25 = vpop.f32.mrb[0].mxu1  ;;  %v2209_v43 = vpop.f32.mrb[4].mxu0 }
 0x239   : > { %v2265_v54 = vmul.f32 %v5725_v49, %v2168_v25  ;;  %v2267_v41 = vmul.f32 %v5725_v49, %v2209_v43  ;;  %v2170_v10 = vpop.f32.mrb[1].mxu1  ;;  %v2211_v24 = vpop.f32.mrb[5].mxu0 }
 0x23a   : > { %v2266_v9 = vmul.f32 %v5725_v49, %v2170_v10  ;;  %v2268_v55 = vmul.f32 %v5725_v49, %v2211_v24  ;;  %v2172_v59 = vpop.f32.mrb[2].mxu1  ;;  %v2213_v42 = vpop.f32.mrb[6].mxu0 }
 0x23b   : > { %v2279_v50 = vadd.f32 %v5727_v22, %v2265_v54  ;;  %v2281_v11 = vadd.f32 %v5727_v22, %v2267_v41  ;;  %v2173_v13 = vpop.f32.mrb[3].mxu1  ;;  %v2214_v26 = vpop.f32.mrb[7].mxu0 }
 0x23c   : > { %v2280_v12 = vadd.f32 %v5727_v22, %v2266_v9  ;;  %v2282_v1 = vadd.f32 %v5727_v22, %v2268_v55 }
 0x23d   : > { %v2287_v61 = vmax.f32 %v2279_v50, 0.0  ;;  %v2289_v5 = vmax.f32 %v2281_v11, 0.0 }
 0x23e   : > { %v2288_v47 = vmax.f32 %v2280_v12, 0.0  ;;  %v2290_v3 = vmax.f32 %v2282_v1, 0.0 }
 0x23f   : > { %v2336_v2 = vmul.f32 %v2305_v31, %v2287_v61  ;;  %v2338_v15 = vmul.f32 %v2313_v6, %v2289_v5 }
 0x240   : > { %v2337_v36 = vmul.f32 %v2309_v19, %v2288_v47  ;;  %v2339_v48 = vmul.f32 %v2317_v57, %v2290_v3 }
 0x242   : > { %v5752_v0 = vpack.c.bf16 %v2337_v36, %v2336_v2  ;;  %v5754_v63 = vpack.c.bf16 %v2339_v48, %v2338_v15 }
 0x244   : > { %2377 = vst [vmem:[#allocation3 + $0xc] sm:$0xff] %v5752_v0  ;;  %2378 = vst [vmem:[#allocation3 + $0x14] sm:$0xff] %v5754_v63 }
 0x24b   : > { %v2381_v27 = vld [vmem:[#allocation3 + $0x8] sm:$0xff]  ;;  %v2382_v44 = vld [vmem:[#allocation3 + $0x10] sm:$0xff] }
 0x24c   : > { %2392 = vrot.lane.b32.xlu0 %v2381_v27, %s6860_s25  ;;  %2433 = vrot.lane.b32.xlu1 %v2381_v27, %s6861_s26 }
 0x250   : > { %2431 = vrot.lane.b32.xlu0 %v5736_v45, %s6861_s26  ;;  %2472 = vrot.lane.b32.xlu1 %v5736_v45, %s6862_s9 }
 0x254   : > { %2474 = vrot.lane.b32.xlu0 %v2381_v27, %s6862_s9  ;;  %2515 = vrot.lane.b32.xlu1 %v2381_v27, %s6863_s0 }
 0x258   : > { %2513 = vrot.lane.b32.xlu0 %v5736_v45, %s6863_s0  ;;  %2554 = vrot.lane.b32.xlu1 %v5736_v45, %s6864_s10 }
 0x25c   : > { %2556 = vrot.lane.b32.xlu0 %v2381_v27, %s6864_s10  ;;  %2597 = vrot.lane.b32.xlu1 %v2381_v27, %s6865_s1 }
 0x260   : > { %2595 = vrot.lane.b32.xlu0 %v5736_v45, %s6865_s1  ;;  %2636 = vrot.lane.b32.xlu1 %v5736_v45, %s6792_s16 }
 0x264   : > { %2638 = vrot.lane.b32.xlu0 %v2381_v27, %s6792_s16  ;;  %2679 = vrot.lane.b32.xlu1 %v2381_v27, %s6866_s2 }
 0x268   : > { %2677 = vrot.lane.b32.xlu0 %v5736_v45, %s6866_s2  ;;  %2718 = vrot.lane.b32.xlu1 %v5736_v45, %s6794_s15 }
 0x26c   : > { %2720 = vrot.lane.b32.xlu0 %v2381_v27, %s6794_s15  ;;  %2761 = vrot.lane.b32.xlu1 %v2381_v27, %s6793_s18 }
 0x270   : > { %v2250_v23 = vpop.f32.mrb[4].mxu1  ;;  %2759 = vrot.lane.b32.xlu0 %v5736_v45, %s6793_s18  ;;  %2800 = vrot.lane.b32.xlu1 %v5736_v45, %s6796_s13 }
 0x271   : > { %v2269_v51 = vmul.f32 %v5725_v49, %v2250_v23  ;;  %v2252_v7 = vpop.f32.mrb[5].mxu1 }
 0x272   : > { %v2270_v46 = vmul.f32 %v5725_v49, %v2252_v7  ;;  %v2254_v56 = vpop.f32.mrb[6].mxu1  ;;  %v5857_v49 = vld.sshfl [vmem:[%s6662_s4] sm:$0x33 pattern:$0x76325410] }
 0x273   : > { %v2283_v21 = vadd.f32 %v5727_v22, %v2269_v51  ;;  %v2255_v28 = vpop.f32.mrb[7].mxu1  ;;  %v5861_v30 = vcombine.high %v5857_v49, %v5857_v49 }
 0x274   : > { %v2284_v18 = vadd.f32 %v5727_v22, %v2270_v46  ;;  %2802 = vrot.lane.b32.xlu0 %v2381_v27, %s6796_s13  ;;  %2843 = vrot.lane.b32.xlu1 %v2381_v27, %s6795_s14  ;;  %v2391_v22 = vpop.permute.xlu1 %2390 }
 0x275   : > { %v2291_v52 = vmax.f32 %v2283_v21, 0.0  ;;  %4663 = vmatprep.mubr.msk.bf16.mxu0 %vm2064_vm0, %v5861_v30  ;;  %4665 = vmatprep.mubr.msk.bf16.mxu1 %vm2064_vm0, %v5861_v30  ;;  %v2400_v17 = vrot.slane %v2391_v22, 4 }
 0x276   : > { %v2292_v31 = vmax.f32 %v2284_v18, 0.0 }
 0x277   : > { %v2340_v6 = vmul.f32 %v5740_v53, %v2291_v52 }
 0x278   : > { %v2341_v19 = vmul.f32 %v5742_v58, %v2292_v31  ;;  %2841 = vrot.lane.b32.xlu0 %v5736_v45, %s6795_s14  ;;  %2882 = vrot.lane.b32.xlu1 %v5736_v45, %s6797_s11 }
 0x27a   : > { %v5800_v57 = vpack.c.bf16 %v2341_v19, %v2340_v6 }
 0x27c   : > { %2379 = vst [vmem:[#allocation3 + $0x1c] sm:$0xff] %v5800_v57  ;;  %2884 = vrot.lane.b32.xlu0 %v2381_v27, %s6797_s11  ;;  %2933 = vrot.lane.b32.xlu1 %v5752_v0, %s6798_s12 }
 0x280   : > { %2931 = vrot.lane.b32.xlu0 %v5733_v35, %s6798_s12  ;;  %2972 = vrot.lane.b32.xlu1 %v5733_v35, %s6783_s29 }
 0x284   : > { %2974 = vrot.lane.b32.xlu0 %v5752_v0, %s6783_s29  ;;  %3015 = vrot.lane.b32.xlu1 %v5752_v0, %s6784_s30 }
 0x288   : > { %3013 = vrot.lane.b32.xlu0 %v5733_v35, %s6784_s30  ;;  %3054 = vrot.lane.b32.xlu1 %v5733_v35, %s6785_s24 }
 0x28c   : > { %3056 = vrot.lane.b32.xlu0 %v5752_v0, %s6785_s24  ;;  %3097 = vrot.lane.b32.xlu1 %v5752_v0, %s6786_s23 }
 0x290   : > { %3095 = vrot.lane.b32.xlu0 %v5733_v35, %s6786_s23  ;;  %3136 = vrot.lane.b32.xlu1 %v5733_v35, %s6787_s21 }
 0x294   : > { %3138 = vrot.lane.b32.xlu0 %v5752_v0, %s6787_s21  ;;  %3179 = vrot.lane.b32.xlu1 %v5752_v0, %s6788_s22 }
 0x298   : > { %3177 = vrot.lane.b32.xlu0 %v5733_v35, %s6788_s22  ;;  %3218 = vrot.lane.b32.xlu1 %v5733_v35, %s6789_s19 }
 0x29c   : > { %3220 = vrot.lane.b32.xlu0 %v5752_v0, %s6789_s19  ;;  %3261 = vrot.lane.b32.xlu1 %v5752_v0, %s6790_s20 }
 0x2a0   : > { %3259 = vrot.lane.b32.xlu0 %v5733_v35, %s6790_s20  ;;  %3300 = vrot.lane.b32.xlu1 %v5733_v35, %s6791_s17 }
 0x2a4   : > { %3302 = vrot.lane.b32.xlu0 %v5752_v0, %s6791_s17  ;;  %3343 = vrot.lane.b32.xlu1 %v5752_v0, %s6867_s3 }
 0x2a8   : > { %3341 = vrot.lane.b32.xlu0 %v5733_v35, %s6867_s3  ;;  %3382 = vrot.lane.b32.xlu1 %v5733_v35, %s6868_s7 }
 0x2ac   : > { %3384 = vrot.lane.b32.xlu0 %v5752_v0, %s6868_s7  ;;  %3425 = vrot.lane.b32.xlu1 %v5752_v0, %s6869_s27 }
 0x2b0   : > { %3423 = vrot.lane.b32.xlu0 %v5733_v35, %s6869_s27  ;;  %2394 = vrot.lane.b32.xlu1 %v2382_v44, %s6860_s25 }
 0x2b4   : > { %2435 = vrot.lane.b32.xlu0 %v2382_v44, %s6861_s26  ;;  %2476 = vrot.lane.b32.xlu1 %v2382_v44, %s6862_s9 }
 0x2b8   : > { %2517 = vrot.lane.b32.xlu0 %v2382_v44, %s6863_s0  ;;  %2558 = vrot.lane.b32.xlu1 %v2382_v44, %s6864_s10 }
 0x2bc   : > { %2599 = vrot.lane.b32.xlu0 %v2382_v44, %s6865_s1  ;;  %2640 = vrot.lane.b32.xlu1 %v2382_v44, %s6792_s16 }
 0x2be   : > { %v5876_v38 = vpop.permute.xlu0 %2392  ;;  %v5878_v8 = vpop.permute.xlu1 %2433 }
 0x2bf   : > { %v2401_v4 = vrot.slane %v5876_v38, 4  ;;  %v2442_v62 = vrot.slane %v5878_v8, 4 }
 0x2c0   : > { %2681 = vrot.lane.b32.xlu0 %v2382_v44, %s6866_s2  ;;  %2722 = vrot.lane.b32.xlu1 %v2382_v44, %s6794_s15 }
 0x2c1   : > { %v2405_v29 = vsel %vm333_vm1, %v2400_v17, %v2401_v4 }
 0x2c2   : > { %v2432_v16 = vpop.permute.xlu0 %2431  ;;  %v2473_v39 = vpop.permute.xlu1 %2472  ;;  %v2406_v37 = vsel %vm335_vm2, %v2391_v22, %v2405_v29 }
 0x2c3   : > { %v2441_v20 = vrot.slane %v2432_v16, 4  ;;  %v2482_v53 = vrot.slane %v2473_v39, 4 }
 0x2c4   : > { %2763 = vrot.lane.b32.xlu0 %v2382_v44, %s6793_s18  ;;  %2804 = vrot.lane.b32.xlu1 %v2382_v44, %s6796_s13 }
 0x2c5   : > { %v2446_v34 = vsel %vm333_vm1, %v2441_v20, %v2442_v62 }
 0x2c6   : > { %v2447_v32 = vsel %vm377_vm3, %v2432_v16, %v2446_v34  ;;  %v5894_v40 = vpop.permute.xlu0 %2474  ;;  %v5896_v33 = vpop.permute.xlu1 %2515 }
 0x2c7   : > { %v4550_v45 = vcombine.low %v2406_v37, %v2447_v32  ;;  %v2483_v60 = vrot.slane %v5894_v40, 4  ;;  %v4551_v14 = vcombine.high %v2406_v37, %v2447_v32  ;;  %v2524_v43 = vrot.slane %v5896_v33, 4  ;;  %v5971_v37 = vld [vmem:[#allocation3 + $0x18] sm:$0xff] }
 0x2c8   : > { %2845 = vrot.lane.b32.xlu0 %v2382_v44, %s6795_s14  ;;  %2886 = vrot.lane.b32.xlu1 %v2382_v44, %s6797_s11 }
 0x2c9   : > { %4140 = vmatprep.subr.bf16.mxu0 %v4551_v14  ;;  %v2487_v54 = vsel %vm333_vm1, %v2482_v53, %v2483_v60 }
 0x2ca   : > { %v2514_v58 = vpop.permute.xlu0 %2513  ;;  %4141 = vmatpush1.bf16.msra.mxu0 %v4550_v45  ;;  %v2555_v25 = vpop.permute.xlu1 %2554  ;;  %v2488_v24 = vsel %vm419_vm4, %v2473_v39, %v2487_v54 }
 0x2cb   : > { %v2523_v41 = vrot.slane %v2514_v58, 4  ;;  %v2564_v13 = vrot.slane %v2555_v25, 4 }
 0x2cc   : > { %2935 = vrot.lane.b32.xlu0 %v5754_v63, %s6798_s12  ;;  %2976 = vrot.lane.b32.xlu1 %v5754_v63, %s6783_s29 }
 0x2cd   : > { %v2528_v10 = vsel %vm333_vm1, %v2523_v41, %v2524_v43  ;;  %v2384_v41 = vld [vmem:[#allocation3 + $0x20] sm:$0xf] }
 0x2ce   : > { %v2529_v9 = vsel %vm461_vm5, %v2514_v58, %v2528_v10  ;;  %v5914_v55 = vpop.permute.xlu0 %2556  ;;  %v5916_v59 = vpop.permute.xlu1 %2597 }
 0x2cf   : > { %v4558_v42 = vcombine.low %v2488_v24, %v2529_v9  ;;  %v2565_v50 = vrot.slane %v5914_v55, 4  ;;  %v4559_v11 = vcombine.high %v2488_v24, %v2529_v9  ;;  %v2606_v1 = vrot.slane %v5916_v59, 4 }
 0x2d0   : > { %3017 = vrot.lane.b32.xlu0 %v5754_v63, %s6784_s30  ;;  %3058 = vrot.lane.b32.xlu1 %v5754_v63, %s6785_s24 }
 0x2d1   : > { %4142 = vmatprep.subr.bf16.mxu0 %v4559_v11  ;;  %v2569_v61 = vsel %vm333_vm1, %v2564_v13, %v2565_v50 }
 0x2d2   : > { %v2596_v26 = vpop.permute.xlu0 %2595  ;;  %4143 = vmatpush1.bf16.msra.mxu0 %v4558_v42  ;;  %v2637_v12 = vpop.permute.xlu1 %2636  ;;  %v2570_v3 = vsel %vm503_vm6, %v2555_v25, %v2569_v61 }
 0x2d3   : > { %v2605_v5 = vrot.slane %v2596_v26, 4  ;;  %v2646_v23 = vrot.slane %v2637_v12, 4 }
 0x2d4   : > { %3099 = vrot.lane.b32.xlu0 %v5754_v63, %s6786_s23  ;;  %3140 = vrot.lane.b32.xlu1 %v5754_v63, %s6787_s21 }
 0x2d5   : > { %v2610_v47 = vsel %vm333_vm1, %v2605_v5, %v2606_v1 }
 0x2d6   : > { %v2611_v2 = vsel %vm545_vm7, %v2596_v26, %v2610_v47  ;;  %v5936_v15 = vpop.permute.xlu0 %2638  ;;  %v5938_v36 = vpop.permute.xlu1 %2679  ;;  %v2425_v26 = vld [vmem:[#allocation3 + $0x20] sm:$0xf] }
 0x2d7   : > { %v4566_v48 = vcombine.low %v2570_v3, %v2611_v2  ;;  %v2647_v0 = vrot.slane %v5936_v15, 4  ;;  %v4567_v27 = vcombine.high %v2570_v3, %v2611_v2  ;;  %v2688_v46 = vrot.slane %v5938_v36, 4 }
 0x2d8   : > { %3181 = vrot.lane.b32.xlu0 %v5754_v63, %s6788_s22  ;;  %3222 = vrot.lane.b32.xlu1 %v5754_v63, %s6789_s19 }
 0x2d9   : > { %4144 = vmatprep.subr.bf16.mxu0 %v4567_v27  ;;  %v2651_v56 = vsel %vm333_vm1, %v2646_v23, %v2647_v0  ;;  %v2466_v23 = vld [vmem:[#allocation3 + $0x20] sm:$0xf] }
 0x2da   : > { %v2678_v51 = vpop.permute.xlu0 %2677  ;;  %4145 = vmatpush1.bf16.msra.mxu0 %v4566_v48  ;;  %v2719_v7 = vpop.permute.xlu1 %2718  ;;  %v2652_v18 = vsel %vm587_vm8, %v2637_v12, %v2651_v56 }
 0x2db   : > { %v2687_v21 = vrot.slane %v2678_v51, 4  ;;  %v2728_v17 = vrot.slane %v2719_v7, 4 }
 0x2dc   : > { %3263 = vrot.lane.b32.xlu0 %v5754_v63, %s6790_s20  ;;  %3304 = vrot.lane.b32.xlu1 %v5754_v63, %s6791_s17 }
 0x2dd   : > { %v2692_v28 = vsel %vm333_vm1, %v2687_v21, %v2688_v46 }
 0x2de   : > { %v2693_v52 = vsel %vm6870_vm9, %v2678_v51, %v2692_v28  ;;  %v5958_v31 = vpop.permute.xlu0 %2720  ;;  %v5960_v6 = vpop.permute.xlu1 %2761  ;;  %vm6874_vm9 = vcmask 72704  }
 0x2df   : > { %v4574_v19 = vcombine.low %v2652_v18, %v2693_v52  ;;  %v2729_v44 = vrot.slane %v5958_v31, 4  ;;  %v4575_v22 = vcombine.high %v2652_v18, %v2693_v52  ;;  %v2770_v29 = vrot.slane %v5960_v6, 4  ;;  %v2507_v52 = vld [vmem:[#allocation3 + $0x20] sm:$0xf] }
 0x2e0   : > { %3345 = vrot.lane.b32.xlu0 %v5754_v63, %s6867_s3  ;;  %3386 = vrot.lane.b32.xlu1 %v5754_v63, %s6868_s7 }
 0x2e1   : > { %4146 = vmatprep.subr.bf16.mxu0 %v4575_v22  ;;  %v2733_v20 = vsel %vm333_vm1, %v2728_v17, %v2729_v44 }
 0x2e2   : > { %v2760_v16 = vpop.permute.xlu0 %2759  ;;  %4147 = vmatpush1.bf16.msra.mxu0 %v4574_v19  ;;  %v2801_v39 = vpop.permute.xlu1 %2800  ;;  %v2734_v45 = vsel %vm6871_vm12, %v2719_v7, %v2733_v20  ;;  %vm6875_vm12 = vcmask 7168  }
 0x2e3   : > { %v2769_v34 = vrot.slane %v2760_v16, 4  ;;  %v2810_v10 = vrot.slane %v2801_v39, 4 }
 0x2e4   : > { %3427 = vrot.lane.b32.xlu0 %v5754_v63, %s6869_s27  ;;  %2396 = vrot.lane.b32.xlu1 %v5971_v37, %s6860_s25 }
 0x2e5   : > { %v2774_v32 = vsel %vm333_vm1, %v2769_v34, %v2770_v29 }
 0x2e6   : > { %v2775_v14 = vsel %vm6872_vm11, %v2760_v16, %v2774_v32  ;;  %v5982_v53 = vpop.permute.xlu0 %2802  ;;  %v5984_v58 = vpop.permute.xlu1 %2843  ;;  %v2548_v32 = vld [vmem:[#allocation3 + $0x20] sm:$0xf]  ;;  %vm6876_vm11 = vcmask 1039360  }
 0x2e7   : > { %v4582_v25 = vcombine.low %v2734_v45, %v2775_v14  ;;  %v2811_v54 = vrot.slane %v5982_v53, 4  ;;  %v4583_v63 = vcombine.high %v2734_v45, %v2775_v14  ;;  %v2852_v42 = vrot.slane %v5984_v58, 4 }
 0x2e8   : > { %2398 = vrot.lane.b32.xlu0 %v2384_v41, %s6860_s25  ;;  %2437 = vrot.lane.b32.xlu1 %v5971_v37, %s6861_s26 }
 0x2e9   : > { %4148 = vmatprep.subr.bf16.mxu0 %v4583_v63  ;;  %v2815_v11 = vsel %vm333_vm1, %v2810_v10, %v2811_v54 }
 0x2ea   : > { %v2842_v24 = vpop.permute.xlu0 %2841  ;;  %4149 = vmatpush1.bf16.msra.mxu0 %v4582_v25  ;;  %v2883_v9 = vpop.permute.xlu1 %2882  ;;  %v2816_v61 = vsel %vm6873_vm10, %v2801_v39, %v2815_v11  ;;  %vm6877_vm10 = vcmask 973824  }
 0x2eb   : > { %v2851_v13 = vrot.slane %v2842_v24, 4  ;;  %v2892_v48 = vrot.slane %v2883_v9, 4 }
 0x2ec   : > { %2439 = vrot.lane.b32.xlu0 %v2425_v26, %s6861_s26  ;;  %2478 = vrot.lane.b32.xlu1 %v5971_v37, %s6862_s9 }
 0x2ed   : > { %v2856_v12 = vsel %vm333_vm1, %v2851_v13, %v2852_v42 }
 0x2ee   : > { %v2857_v5 = vsel %vm6874_vm9, %v2842_v24, %v2856_v12  ;;  %v6002_v47 = vpop.permute.xlu0 %2884  ;;  %v6004_v3 = vpop.permute.xlu1 %2933  ;;  %v2589_v24 = vld [vmem:[#allocation3 + $0x20] sm:$0xf]  ;;  %vm6878_vm9 = vcmask 965632  }
 0x2ef   : > { %v4590_v2 = vcombine.low %v2816_v61, %v2857_v5  ;;  %v2893_v27 = vrot.slane %v6002_v47, 4  ;;  %v4591_v51 = vcombine.high %v2816_v61, %v2857_v5  ;;  %v2942_v17 = vrot.slane %v6004_v3, 4 }
 0x2f0   : > { %2480 = vrot.lane.b32.xlu0 %v2466_v23, %s6862_s9  ;;  %2519 = vrot.lane.b32.xlu1 %v5971_v37, %s6863_s0 }
 0x2f1   : > { %4150 = vmatprep.subr.bf16.mxu0 %v4591_v51  ;;  %v2897_v7 = vsel %vm333_vm1, %v2892_v48, %v2893_v27  ;;  %v2630_v48 = vld [vmem:[#allocation3 + $0x20] sm:$0xf] }
 0x2f2   : > { %v2932_v56 = vpop.permute.xlu0 %2931  ;;  %4151 = vmatpush1.bf16.msra.mxu0 %v4590_v2  ;;  %v2973_v21 = vpop.permute.xlu1 %2972  ;;  %v2898_v28 = vsel %vm6875_vm12, %v2883_v9, %v2897_v7  ;;  %vm6879_vm12 = vcmask 957440  }
 0x2f3   : > { %v2941_v18 = vrot.slane %v2932_v56, 4  ;;  %v4598_v19 = vcombine.low %v2898_v28, %v5733_v35  ;;  %v4599_v22 = vcombine.high %v2898_v28, %v5733_v35  ;;  %v2982_v34 = vrot.slane %v2973_v21, 4 }
 0x2f4   : > { %2521 = vrot.lane.b32.xlu0 %v2507_v52, %s6863_s0  ;;  %2560 = vrot.lane.b32.xlu1 %v5971_v37, %s6864_s10 }
 0x2f5   : > { %4152 = vmatprep.subr.bf16.mxu0 %v4599_v22  ;;  %v2946_v20 = vsel %vm333_vm1, %v2941_v18, %v2942_v17  ;;  %v2671_v18 = vld [vmem:[#allocation3 + $0x20] sm:$0xf] }
 0x2f6   : > { %v6020_v16 = vpop.permute.xlu0 %2974  ;;  %4153 = vmatpush1.bf16.msra.mxu0 %v4598_v19  ;;  %v6022_v39 = vpop.permute.xlu1 %3015  ;;  %v2947_v14 = vsel %vm6876_vm11, %v2932_v56, %v2946_v20  ;;  %vm6880_vm11 = vcmask 318464  }
 0x2f7   : > { %v2983_v35 = vrot.slane %v6020_v16, 4  ;;  %v3024_v13 = vrot.slane %v6022_v39, 4 }
 0x2f8   : > { %2562 = vrot.lane.b32.xlu0 %v2548_v32, %s6864_s10  ;;  %2601 = vrot.lane.b32.xlu1 %v5971_v37, %s6865_s1 }
 0x2f9   : > { %v2987_v45 = vsel %vm333_vm1, %v2982_v34, %v2983_v35 }
 0x2fa   : > { %v3014_v25 = vpop.permute.xlu0 %3013  ;;  %v3055_v41 = vpop.permute.xlu1 %3054  ;;  %v2988_v63 = vsel %vm6877_vm10, %v2973_v21, %v2987_v45  ;;  %vm6881_vm10 = vcmask 310272  }
 0x2fb   : > { %v3023_v10 = vrot.slane %v3014_v25, 4  ;;  %v4606_v9 = vcombine.low %v2947_v14, %v2988_v63  ;;  %v4607_v11 = vcombine.high %v2947_v14, %v2988_v63  ;;  %v3064_v5 = vrot.slane %v3055_v41, 4 }
 0x2fc   : > { %2603 = vrot.lane.b32.xlu0 %v2589_v24, %s6865_s1  ;;  %2642 = vrot.lane.b32.xlu1 %v5971_v37, %s6792_s16 }
 0x2fd   : > { %4154 = vmatprep.subr.bf16.mxu0 %v4607_v11  ;;  %v3028_v61 = vsel %vm333_vm1, %v3023_v10, %v3024_v13 }
 0x2fe   : > { %v6040_v26 = vpop.permute.xlu0 %3056  ;;  %4155 = vmatpush1.bf16.msra.mxu0 %v4606_v9  ;;  %v6042_v12 = vpop.permute.xlu1 %3097  ;;  %v3029_v51 = vsel %vm6878_vm9, %v3014_v25, %v3028_v61  ;;  %v2712_v25 = vld [vmem:[#allocation3 + $0x20] sm:$0xf]  ;;  %vm6882_vm9 = vcmask 302080  }
 0x2ff   : > { %v3065_v2 = vrot.slane %v6040_v26, 4  ;;  %v3106_v22 = vrot.slane %v6042_v12, 4  ;;  %v2753_v61 = vld [vmem:[#allocation3 + $0x20] sm:$0xf] }
 0x300   : > { %2644 = vrot.lane.b32.xlu0 %v2630_v48, %s6792_s16  ;;  %2683 = vrot.lane.b32.xlu1 %v5971_v37, %s6866_s2 }
 0x301   : > { %v3069_v23 = vsel %vm333_vm1, %v3064_v5, %v3065_v2 }
 0x302   : > { %v3096_v7 = vpop.permute.xlu0 %3095  ;;  %v3137_v56 = vpop.permute.xlu1 %3136  ;;  %v3070_v21 = vsel %vm6879_vm12, %v3055_v41, %v3069_v23  ;;  %vm6883_vm12 = vcmask 236544  }
 0x303   : > { %v3105_v28 = vrot.slane %v3096_v7, 4  ;;  %v4614_v52 = vcombine.low %v3029_v51, %v3070_v21  ;;  %v4615_v19 = vcombine.high %v3029_v51, %v3070_v21  ;;  %v3146_v45 = vrot.slane %v3137_v56, 4 }
 0x304   : > { %2685 = vrot.lane.b32.xlu0 %v2671_v18, %s6866_s2  ;;  %2724 = vrot.lane.b32.xlu1 %v5971_v37, %s6794_s15  ;;  %v2794_v18 = vld [vmem:[#allocation3 + $0x20] sm:$0xf] }
 0x305   : > { %4156 = vmatprep.subr.bf16.mxu0 %v4615_v19  ;;  %v3110_v32 = vsel %vm333_vm1, %v3105_v28, %v3106_v22 }
 0x306   : > { %v6060_v20 = vpop.permute.xlu0 %3138  ;;  %4157 = vmatpush1.bf16.msra.mxu0 %v4614_v52  ;;  %v6062_v34 = vpop.permute.xlu1 %3179  ;;  %v3111_v63 = vsel %vm6880_vm11, %v3096_v7, %v3110_v32  ;;  %vm6884_vm11 = vcmask 228352  }
 0x307   : > { %v3147_v14 = vrot.slane %v6060_v20, 4  ;;  %v6759_v23 = vrot.slane %v6062_v34, 4 }
 0x308   : > { %2726 = vrot.lane.b32.xlu0 %v2712_v25, %s6794_s15  ;;  %2765 = vrot.lane.b32.xlu1 %v5971_v37, %s6793_s18 }
 0x309   : > { %v3151_v41 = vsel %vm333_vm1, %v3146_v45, %v3147_v14 }
 0x30a   : > { %v3178_v10 = vpop.permute.xlu0 %3177  ;;  %v3219_v24 = vpop.permute.xlu1 %3218  ;;  %v3152_v9 = vsel %vm6881_vm10, %v3137_v56, %v3151_v41  ;;  %vm6885_vm10 = vcmask 220160  }
 0x30b   : > { %v3187_v11 = vrot.slane %v3178_v10, 4  ;;  %v4622_v5 = vcombine.low %v3111_v63, %v3152_v9  ;;  %v4623_v48 = vcombine.high %v3111_v63, %v3152_v9  ;;  %v3228_v21 = vrot.slane %v3219_v24, 4  ;;  %v2835_v63 = vld [vmem:[#allocation3 + $0x20] sm:$0xf] }
 0x30c   : > { %2767 = vrot.lane.b32.xlu0 %v2753_v61, %s6793_s18  ;;  %2806 = vrot.lane.b32.xlu1 %v5971_v37, %s6796_s13 }
 0x30d   : > { %4158 = vmatprep.subr.bf16.mxu0 %v4623_v48  ;;  %v3192_v56 = vsel %vm333_vm1, %v3187_v11, %v6759_v23 }
 0x30e   : > { %v6080_v51 = vpop.permute.xlu0 %3220  ;;  %4159 = vmatpush1.bf16.msra.mxu0 %v4622_v5  ;;  %v6082_v7 = vpop.permute.xlu1 %3261  ;;  %v3193_v19 = vsel %vm6882_vm9, %v3178_v10, %v3192_v56  ;;  %vm6886_vm9 = vcmask 736256  }
 0x30f   : > { %v6758_v28 = vrot.slane %v6080_v51, 4  ;;  %v6755_v61 = vrot.slane %v6082_v7, 4 }
 0x310   : > { %2808 = vrot.lane.b32.xlu0 %v2794_v18, %s6796_s13  ;;  %2847 = vrot.lane.b32.xlu1 %v5971_v37, %s6795_s14  ;;  %v2925_v18 = vld [vmem:[#allocation3 + $0x24] sm:$0xf] }
 0x311   : > { %v3233_v52 = vsel %vm333_vm1, %v3228_v21, %v6758_v28  ;;  %v2876_v21 = vld [vmem:[#allocation3 + $0x20] sm:$0xf] }
 0x312   : > { %v3260_v32 = vpop.permute.xlu0 %3259  ;;  %v3301_v45 = vpop.permute.xlu1 %3300  ;;  %v3234_v25 = vsel %vm6883_vm12, %v3219_v24, %v3233_v52  ;;  %vm6887_vm12 = vcmask 728064  }
 0x313   : > { %v3269_v41 = vrot.slane %v3260_v32, 4  ;;  %v4630_v9 = vcombine.low %v3193_v19, %v3234_v25  ;;  %v4631_v11 = vcombine.high %v3193_v19, %v3234_v25  ;;  %v3310_v48 = vrot.slane %v3301_v45, 4 }
 0x314   : > { %2849 = vrot.lane.b32.xlu0 %v2835_v63, %s6795_s14  ;;  %2888 = vrot.lane.b32.xlu1 %v5971_v37, %s6797_s11  ;;  %s6953_s14 = sld [smem:[#allocation12_spill]] }
 0x315   : > { %4160 = vmatprep.subr.bf16.mxu0 %v4631_v11  ;;  %v3274_v24 = vsel %vm333_vm1, %v3269_v41, %v6755_v61  ;;  %v2966_v61 = vld [vmem:[#allocation3 + $0x24] sm:$0xf] }
 0x316   : > { %v6100_v5 = vpop.permute.xlu0 %3302  ;;  %4161 = vmatpush1.bf16.msra.mxu0 %v4630_v9  ;;  %v6102_v10 = vpop.permute.xlu1 %3343  ;;  %v3275_v52 = vsel %vm6884_vm11, %v3260_v32, %v3274_v24  ;;  %vm6888_vm11 = vcmask 89088  }
 0x317   : > { %v6756_v56 = vrot.slane %v6100_v5, 4 }
 0x318   : > { %2890 = vrot.lane.b32.xlu0 %v2876_v21, %s6797_s11  ;;  %2937 = vrot.lane.b32.xlu1 %v5800_v57, %s6798_s12  ;;  %v6757_v21 = vrot.slane %v6102_v10, 4  ;;  %s4672_s11 = sshll.u32 %s6952_s28, 5 }
 0x319   : > { %v3315_v37 = vsel %vm333_vm1, %v3310_v48, %v6756_v56 }
 0x31a   : > { %v3342_v19 = vpop.permute.xlu0 %3341  ;;  %v3383_v25 = vpop.permute.xlu1 %3382  ;;  %v3316_v41 = vsel %vm6885_vm10, %v3301_v45, %v3315_v37  ;;  %vm6889_vm10 = vcmask 80896   ;;  %s6649_s15 = scalar_lea.vmem %s6953_s14, %s4672_s11 }
 0x31b   : > { %v3351_v63 = vrot.slane %v3342_v19, 4  ;;  %v4638_v9 = vcombine.low %v3275_v52, %v3316_v41  ;;  %v4639_v11 = vcombine.high %v3275_v52, %v3316_v41  ;;  %v3392_v24 = vrot.slane %v3383_v25, 4  ;;  %v3007_v52 = vld [vmem:[#allocation3 + $0x24] sm:$0xf] }
 0x31c   : > { %2939 = vrot.lane.b32.xlu0 %v2925_v18, %s6798_s12  ;;  %2978 = vrot.lane.b32.xlu1 %v5800_v57, %s6783_s29 }
 0x31d   : > { %4162 = vmatprep.subr.bf16.mxu0 %v4639_v11  ;;  %v3356_v45 = vsel %vm333_vm1, %v3351_v63, %v6757_v21 }
 0x31e   : > { %v6120_v48 = vpop.permute.xlu0 %3384  ;;  %4163 = vmatpush1.bf16.msra.mxu0 %v4638_v9  ;;  %v6122_v32 = vpop.permute.xlu1 %3425  ;;  %v3357_v41 = vsel %vm1309_vm13, %v3342_v19, %v3356_v45  ;;  %v3048_v45 = vld [vmem:[#allocation3 + $0x24] sm:$0xf] }
 0x31f   : > { %v6760_v37 = vrot.slane %v6120_v48, 4  ;;  %v3434_v9 = vrot.slane %v6122_v32, 4 }
 0x320   : > { %2980 = vrot.lane.b32.xlu0 %v2966_v61, %s6783_s29  ;;  %3019 = vrot.lane.b32.xlu1 %v5800_v57, %s6784_s30 }
 0x321   : > { %v3397_v18 = vsel %vm333_vm1, %v3392_v24, %v6760_v37 }
 0x322   : > { %v3424_v11 = vpop.permute.xlu0 %3423  ;;  %v6136_v56 = vpop.permute.xlu1 %2394  ;;  %v3398_v63 = vsel %vm1351_vm14, %v3383_v25, %v3397_v18 }
 0x323   : > { %v3433_v21 = vrot.slane %v3424_v11, 4  ;;  %v6762_v61 = vrot.slane %v6136_v56, 4  ;;  %v4646_v28 = vcombine.low %v3357_v41, %v3398_v63  ;;  %v4647_v23 = vcombine.high %v3357_v41, %v3398_v63 }
 0x324   : > { %3021 = vrot.lane.b32.xlu0 %v3007_v52, %s6784_s30  ;;  %3060 = vrot.lane.b32.xlu1 %v5800_v57, %s6785_s24 }
 0x325   : > { %v3438_v19 = vsel %vm333_vm1, %v3433_v21, %v3434_v9  ;;  %4164 = vmatprep.subr.bf16.mxu0 %v4647_v23  ;;  %v2407_v25 = vsel %vm333_vm1, %v2401_v4, %v6762_v61  ;;  %v3089_v21 = vld [vmem:[#allocation3 + $0x24] sm:$0xf] }
 0x326   : > { %v3439_v24 = vsel %vm1393_vm15, %v3424_v11, %v3438_v19  ;;  %v6152_v18 = vpop.permute.xlu0 %2435  ;;  %4165 = vmatpush1.bf16.msra.mxu0 %v4646_v28  ;;  %v6154_v52 = vpop.permute.xlu1 %2476 }
 0x327   : > { %v4654_v41 = vcombine.low %v3439_v24, %v3439_v24  ;;  %v4655_v63 = vcombine.high %v3439_v24, %v3439_v24  ;;  %v6761_v37 = vrot.slane %v6152_v18, 4  ;;  %v2484_v23 = vrot.slane %v6154_v52, 4 }
 0x328   : > { %3062 = vrot.lane.b32.xlu0 %v3048_v45, %s6785_s24  ;;  %3101 = vrot.lane.b32.xlu1 %v5800_v57, %s6786_s23  ;;  %v2408_v24 = vsel %vm335_vm2, %v5876_v38, %v2407_v25 }
 0x329   : > { %v2448_v4 = vsel %vm333_vm1, %v2442_v62, %v6761_v37  ;;  %4662 = vmatprep.subr.msk.bf16.mxu0 %vm333_vm1, %v4655_v63  ;;  %v4117_v28 = vsel %vm333_vm1, %v4654_v41, 0  ;;  %v2489_v11 = vsel %vm333_vm1, %v2483_v60, %v2484_v23 }
 0x32a   : > { %v6173_v19 = vpop.permute.xlu0 %2517  ;;  %4167 = vmatpush1.bf16.msra.mxu0 %v4117_v28  ;;  %v6175_v45 = vpop.permute.xlu1 %2558  ;;  %v2449_v62 = vsel %vm377_vm3, %v5878_v8, %v2448_v4  ;;  %v3130_v8 = vld [vmem:[#allocation3 + $0x24] sm:$0xf]  ;;  %v2490_v28 = vsel %vm419_vm4, %v5894_v40, %v2489_v11 }
 0x32b   : > { %v2525_v41 = vrot.slane %v6173_v19, 4  ;;  %v2566_v63 = vrot.slane %v6175_v45, 4  ;;  %v4552_v37 = vcombine.low %v2408_v24, %v2449_v62  ;;  %v4553_v61 = vcombine.high %v2408_v24, %v2449_v62 }
 0x32c   : > { %3103 = vrot.lane.b32.xlu0 %v3089_v21, %s6786_s23  ;;  %3142 = vrot.lane.b32.xlu1 %v5800_v57, %s6787_s21 }
 0x32d   : > { %v2530_v38 = vsel %vm333_vm1, %v2524_v43, %v2525_v41  ;;  %4173 = vmatmul.mubr.bf16.vlgmr.msra.gmra.mrb[8].mxu0 %v5857_v49  ;;  %4181 = vmatprep.subr.bf16.mxu1 %v4553_v61  ;;  %v2571_v60 = vsel %vm333_vm1, %v2565_v50, %v2566_v63 }
 0x32e   : > { %v6197_v25 = vpop.permute.xlu0 %2599  ;;  %4182 = vmatpush1.bf16.msra.mxu1 %v4552_v37  ;;  %v6199_v4 = vpop.permute.xlu1 %2640  ;;  %v2531_v43 = vsel %vm461_vm5, %v5896_v33, %v2530_v38  ;;  %4667 = vmatprep.mubr.msk.bf16.mxu0 %vm2064_vm0, %v5861_v30  ;;  %v3171_v33 = vld [vmem:[#allocation3 + $0x24] sm:$0xf]  ;;  %v2572_v62 = vsel %vm503_vm6, %v5914_v55, %v2571_v60 }
 0x32f   : > { %v2607_v49 = vrot.slane %v6197_v25, 4  ;;  %v2648_v61 = vrot.slane %v6199_v4, 4  ;;  %v4560_v21 = vcombine.low %v2490_v28, %v2531_v43  ;;  %v4561_v50 = vcombine.high %v2490_v28, %v2531_v43 }
 0x330   : > { %3144 = vrot.lane.b32.xlu0 %v3130_v8, %s6787_s21  ;;  %3183 = vrot.lane.b32.xlu1 %v5800_v57, %s6788_s22 }
 0x331   : > { %v2612_v40 = vsel %vm333_vm1, %v2606_v1, %v2607_v49  ;;  %4183 = vmatprep.subr.bf16.mxu1 %v4561_v50  ;;  %v2653_v37 = vsel %vm333_vm1, %v2647_v0, %v2648_v61  ;;  %v3212_v0 = vld [vmem:[#allocation3 + $0x24] sm:$0xf] }
 0x332   : > { %v6222_v11 = vpop.permute.xlu0 %2681  ;;  %4184 = vmatpush1.bf16.msra.mxu1 %v4560_v21  ;;  %v6224_v24 = vpop.permute.xlu1 %2722  ;;  %v2613_v38 = vsel %vm545_vm7, %v5916_v59, %v2612_v40  ;;  %v2654_v50 = vsel %vm587_vm8, %v5936_v15, %v2653_v37 }
 0x333   : > { %v2689_v1 = vrot.slane %v6222_v11, 4  ;;  %v2730_v8 = vrot.slane %v6224_v24, 4  ;;  %v4568_v28 = vcombine.low %v2572_v62, %v2613_v38  ;;  %v4569_v43 = vcombine.high %v2572_v62, %v2613_v38 }
 0x334   : > { %3185 = vrot.lane.b32.xlu0 %v3171_v33, %s6788_s22  ;;  %3224 = vrot.lane.b32.xlu1 %v5800_v57, %s6789_s19 }
 0x335   : > { %v2694_v55 = vsel %vm333_vm1, %v2688_v46, %v2689_v1  ;;  %4185 = vmatprep.subr.bf16.mxu1 %v4569_v43  ;;  %v2735_v59 = vsel %vm333_vm1, %v2729_v44, %v2730_v8  ;;  %v3253_v44 = vld [vmem:[#allocation3 + $0x24] sm:$0xf] }
 0x336   : > { %v6245_v60 = vpop.permute.xlu0 %2763  ;;  %4186 = vmatpush1.bf16.msra.mxu1 %v4568_v28  ;;  %v6247_v21 = vpop.permute.xlu1 %2804  ;;  %v2695_v40 = vsel %vm6886_vm9, %v5938_v36, %v2694_v55  ;;  %v2736_v43 = vsel %vm6887_vm12, %v5958_v31, %v2735_v59  ;;  %vm6890_vm9 = vcmask 72704   ;;  %vm6891_vm12 = vcmask 7168  }
 0x337   : > { %v2771_v46 = vrot.slane %v6245_v60, 4  ;;  %v2812_v33 = vrot.slane %v6247_v21, 4  ;;  %v4576_v62 = vcombine.low %v2654_v50, %v2695_v40  ;;  %v4577_v38 = vcombine.high %v2654_v50, %v2695_v40 }
 0x338   : > { %3226 = vrot.lane.b32.xlu0 %v3212_v0, %s6789_s19  ;;  %3265 = vrot.lane.b32.xlu1 %v5800_v57, %s6790_s20 }
 0x339   : > { %v2776_v15 = vsel %vm333_vm1, %v2770_v29, %v2771_v46  ;;  %4187 = vmatprep.subr.bf16.mxu1 %v4577_v38  ;;  %v2817_v36 = vsel %vm333_vm1, %v2811_v54, %v2812_v33  ;;  %v3294_v54 = vld [vmem:[#allocation3 + $0x24] sm:$0xf] }
 0x33a   : > { %v6268_v37 = vpop.permute.xlu0 %2845  ;;  %4188 = vmatpush1.bf16.msra.mxu1 %v4576_v62  ;;  %v6270_v28 = vpop.permute.xlu1 %2886  ;;  %v2777_v55 = vsel %vm6888_vm11, %v5960_v6, %v2776_v15  ;;  %v2818_v38 = vsel %vm6889_vm10, %v5982_v53, %v2817_v36  ;;  %v3335_v36 = vld [vmem:[#allocation3 + $0x24] sm:$0xf]  ;;  %vm6892_vm11 = vcmask 1039360   ;;  %vm6893_vm10 = vcmask 973824  }
 0x33b   : > { %v2853_v29 = vrot.slane %v6268_v37, 4  ;;  %v2894_v0 = vrot.slane %v6270_v28, 4  ;;  %v4584_v50 = vcombine.low %v2736_v43, %v2777_v55  ;;  %v4585_v40 = vcombine.high %v2736_v43, %v2777_v55 }
 0x33c   : > { %3267 = vrot.lane.b32.xlu0 %v3253_v44, %s6790_s20  ;;  %3306 = vrot.lane.b32.xlu1 %v5800_v57, %s6791_s17 }
 0x33d   : > { %v2858_v31 = vsel %vm333_vm1, %v2852_v42, %v2853_v29  ;;  %v2899_v6 = vsel %vm333_vm1, %v2893_v27, %v2894_v0  ;;  %4189 = vmatprep.subr.bf16.mxu1 %v4585_v40 }
 0x33e   : > { %v6291_v59 = vpop.permute.xlu0 %2935  ;;  %4190 = vmatpush1.bf16.msra.mxu1 %v4584_v50  ;;  %v6293_v62 = vpop.permute.xlu1 %2976  ;;  %v2859_v15 = vsel %vm6890_vm9, %v5984_v58, %v2858_v31  ;;  %v2900_v42 = vsel %vm6891_vm12, %v6002_v47, %v2899_v6  ;;  %v2914_v50 = vld [vmem:[#allocation3 + $0xc] sm:$0xff]  ;;  %vm6894_vm9 = vcmask 965632   ;;  %vm6895_vm12 = vcmask 957440  }
 0x33f   : > { %v2943_v44 = vrot.slane %v6291_v59, 4  ;;  %v2984_v27 = vrot.slane %v6293_v62, 4  ;;  %v4592_v43 = vcombine.low %v2818_v38, %v2859_v15  ;;  %v4593_v55 = vcombine.high %v2818_v38, %v2859_v15 }
 0x340   : > { %3308 = vrot.lane.b32.xlu0 %v3294_v54, %s6791_s17  ;;  %3347 = vrot.lane.b32.xlu1 %v5800_v57, %s6867_s3  ;;  %v4601_v47 = vcombine.high %v2900_v42, %v2914_v50  ;;  %v4600_v38 = vcombine.low %v2900_v42, %v2914_v50 }
 0x341   : > { %v2948_v53 = vsel %vm333_vm1, %v2942_v17, %v2943_v44  ;;  %v2989_v58 = vsel %vm333_vm1, %v2983_v35, %v2984_v27  ;;  %4191 = vmatprep.subr.bf16.mxu1 %v4593_v55  ;;  %v6326_v35 = vld [vmem:[#allocation3 + $0x1c] sm:$0xff] }
 0x342   : > { %v6316_v40 = vpop.permute.xlu0 %3017  ;;  %4192 = vmatpush1.bf16.msra.mxu1 %v4592_v43  ;;  %v6318_v57 = vpop.permute.xlu1 %3058  ;;  %v2949_v31 = vsel %vm6892_vm11, %v6004_v3, %v2948_v53  ;;  %v2990_v17 = vsel %vm6893_vm10, %v6020_v16, %v2989_v58  ;;  %v3376_v43 = vld [vmem:[#allocation3 + $0x24] sm:$0xf]  ;;  %vm6896_vm11 = vcmask 318464   ;;  %vm6897_vm10 = vcmask 310272  }
 0x343   : > { %v3025_v6 = vrot.slane %v6316_v40, 4  ;;  %v6772_v54 = vrot.slane %v6318_v57, 4  ;;  %4193 = vmatprep.subr.bf16.mxu1 %v4601_v47  ;;  %v4609_v15 = vcombine.high %v2949_v31, %v2990_v17  ;;  %v4608_v47 = vcombine.low %v2949_v31, %v2990_v17  ;;  %v4304_v31 = vld [vmem:[%s6663_s5] sm:$0xf] }
 0x344   : > { %3349 = vrot.lane.b32.xlu0 %v3335_v36, %s6867_s3  ;;  %3388 = vrot.lane.b32.xlu1 %v6326_v35, %s6868_s7  ;;  %v3417_v36 = vld [vmem:[#allocation3 + $0x24] sm:$0xf] }
 0x345   : > { %v3030_v3 = vsel %vm333_vm1, %v3024_v13, %v3025_v6  ;;  %v3071_v16 = vsel %vm333_vm1, %v3065_v2, %v6772_v54 }
 0x346   : > { %v6341_v42 = vpop.permute.xlu0 %3099  ;;  %4194 = vmatpush1.bf16.msra.mxu1 %v4600_v38  ;;  %v6343_v55 = vpop.permute.xlu1 %3140  ;;  %v3031_v50 = vsel %vm6894_vm9, %v6022_v39, %v3030_v3  ;;  %v3072_v53 = vsel %vm6895_vm12, %v6040_v26, %v3071_v16  ;;  %vm6900_vm9 = vcmask 302080   ;;  %vm6901_vm12 = vcmask 236544  }
 0x347   : > { %v6771_v13 = vrot.slane %v6341_v42, 4  ;;  %v6769_v58 = vrot.slane %v6343_v55, 4  ;;  %4195 = vmatprep.subr.bf16.mxu1 %v4609_v15  ;;  %v4617_v2 = vcombine.high %v3031_v50, %v3072_v53  ;;  %v4616_v15 = vcombine.low %v3031_v50, %v3072_v53  ;;  %v4318_v50 = vld [vmem:[%s6664_s6] sm:$0xf] }
 0x348   : > { %3390 = vrot.lane.b32.xlu0 %v3376_v43, %s6868_s7  ;;  %3429 = vrot.lane.b32.xlu1 %v6326_v35, %s6869_s27  ;;  %v6898_v43 = vrot.slane %v6062_v34, 4 }
 0x349   : > { %v3112_v39 = vsel %vm333_vm1, %v3106_v22, %v6771_v13  ;;  %v3153_v26 = vsel %vm333_vm1, %v3147_v14, %v6769_v58 }
 0x34a   : > { %v6367_v17 = vpop.permute.xlu0 %3181  ;;  %4196 = vmatpush1.bf16.msra.mxu1 %v4608_v47  ;;  %v6369_v38 = vpop.permute.xlu1 %3222  ;;  %v3113_v22 = vsel %vm6896_vm11, %v6042_v12, %v3112_v39  ;;  %v3154_v3 = vsel %vm6897_vm10, %v6060_v20, %v3153_v26  ;;  %v6899_v12 = vrot.slane %v6080_v51, 4  ;;  %vm6904_vm11 = vcmask 228352  }
 0x34b   : > { %v6764_v16 = vrot.slane %v6367_v17, 4  ;;  %v6763_v14 = vrot.slane %v6369_v38, 4  ;;  %4197 = vmatprep.subr.bf16.mxu1 %v4617_v2  ;;  %v4625_v39 = vcombine.high %v3113_v22, %v3154_v3  ;;  %vm6905_vm10 = vcmask 220160  }
 0x34c   : > { %3431 = vrot.lane.b32.xlu0 %v3417_v36, %s6869_s27  ;;  %4307 = vperm.xlu1 %4714, %v4304_v31  }
 0x34d   : > { %v3194_v47 = vsel %vm333_vm1, %v6898_v43, %v6764_v16  ;;  %v3235_v20 = vsel %vm333_vm1, %v6899_v12, %v6763_v14  ;;  %v4624_v12 = vcombine.low %v3113_v22, %v3154_v3  ;;  %v6902_v14 = vrot.slane %v6082_v7, 4 }
 0x34e   : > { %v6391_v53 = vpop.permute.xlu0 %3263  ;;  %4198 = vmatpush1.bf16.msra.mxu1 %v4616_v15  ;;  %v6393_v26 = vpop.permute.xlu1 %3304  ;;  %v3195_v2 = vsel %vm6900_vm9, %v6062_v34, %v3194_v47  ;;  %v3236_v36 = vsel %vm6901_vm12, %v6080_v51, %v3235_v20  ;;  %v6903_v34 = vrot.slane %v6100_v5, 4  ;;  %vm6918_vm9 = vcmask 7168  }
 0x34f   : > { %v6768_v31 = vrot.slane %v6391_v53, 4  ;;  %v6765_v43 = vrot.slane %v6393_v26, 4  ;;  %4199 = vmatprep.subr.bf16.mxu1 %v4625_v39  ;;  %v4633_v51 = vcombine.high %v3195_v2, %v3236_v36 }
 0x350   : > { %4321 = vperm.xlu0 %4713, %v4318_v50   ;;  %v4632_v50 = vcombine.low %v3195_v2, %v3236_v36 }
 0x351   : > { %v3276_v15 = vsel %vm333_vm1, %v6902_v14, %v6768_v31  ;;  %v3317_v47 = vsel %vm333_vm1, %v6903_v34, %v6765_v43  ;;  %v6906_v34 = vrot.slane %v6102_v10, 4  ;;  %v6907_v43 = vrot.slane %v6120_v48, 4 }
 0x352   : > { %v6411_v20 = vpop.permute.xlu0 %3345  ;;  %4200 = vmatpush1.bf16.msra.mxu1 %v4624_v12  ;;  %v6413_v16 = vpop.permute.xlu1 %3386  ;;  %v3277_v22 = vsel %vm6904_vm11, %v6082_v7, %v3276_v15  ;;  %v3318_v3 = vsel %vm6905_vm10, %v6100_v5, %v3317_v47  ;;  %vm6921_vm10 = vmmov %vm6918_vm9 }
 0x353   : > { %v6766_v14 = vrot.slane %v6411_v20, 4  ;;  %v6767_v39 = vrot.slane %v6413_v16, 4  ;;  %4201 = vmatprep.subr.bf16.mxu1 %v4633_v51  ;;  %v4641_v15 = vcombine.high %v3277_v22, %v3318_v3 }
 0x355   : > { %v3358_v12 = vsel %vm333_vm1, %v6906_v34, %v6766_v14  ;;  %v3399_v7 = vsel %vm333_vm1, %v6907_v43, %v6767_v39  ;;  %v4640_v14 = vcombine.low %v3277_v22, %v3318_v3  ;;  %v6909_v3 = vrot.slane %v6152_v18, 4 }
 0x356   : > { %v6431_v5 = vpop.permute.xlu0 %3427  ;;  %4202 = vmatpush1.bf16.msra.mxu1 %v4632_v50  ;;  %v2397_v47 = vpop.permute.xlu1 %2396  ;;  %v3359_v2 = vsel %vm1309_vm13, %v6102_v10, %v3358_v12  ;;  %v3400_v36 = vsel %vm1351_vm14, %v6120_v48, %v3399_v7  ;;  %v6908_v48 = vrot.slane %v6136_v56, 4 }
 0x357   : > { %v6770_v51 = vrot.slane %v6431_v5, 4  ;;  %v2403_v34 = vrot.slane %v2397_v47, 4  ;;  %4203 = vmatprep.subr.bf16.mxu1 %v4641_v15  ;;  %v4649_v39 = vcombine.high %v3359_v2, %v3400_v36  ;;  %v4648_v22 = vcombine.low %v3359_v2, %v3400_v36 }
 0x359   : > { %v3440_v43 = vsel %vm333_vm1, %v3434_v9, %v6770_v51  ;;  %v2409_v12 = vsel %vm333_vm1, %v6908_v48, %v2403_v34 }
 0x35a   : > { %v2399_v50 = vpop.permute.xlu0 %2398  ;;  %4204 = vmatpush1.bf16.msra.mxu1 %v4640_v14  ;;  %v2438_v31 = vpop.permute.xlu1 %2437  ;;  %v3441_v10 = vsel %vm1393_vm15, %v6122_v32, %v3440_v43  ;;  %v2410_v32 = vsel %vm335_vm2, %v6136_v56, %v2409_v12 }
 0x35b   : > { %v2404_v7 = vrot.slane %v2399_v50, 4  ;;  %v2444_v15 = vrot.slane %v2438_v31, 4  ;;  %4205 = vmatprep.subr.bf16.mxu1 %v4649_v39  ;;  %v4657_v9 = vcombine.high %v3441_v10, %v3441_v10  ;;  %v4656_v51 = vcombine.low %v3441_v10, %v3441_v10 }
 0x35d   : > { %v2450_v58 = vsel %vm333_vm1, %v6909_v3, %v2444_v15  ;;  %v2411_v14 = vsel %vm333_vm1, %v2403_v34, %v2404_v7  ;;  %v4123_v34 = vsel %vm333_vm1, %v4656_v51, 0 }
 0x35e   : > { %v2440_v13 = vpop.permute.xlu0 %2439  ;;  %4206 = vmatpush1.bf16.msra.mxu1 %v4648_v22  ;;  %v2479_v54 = vpop.permute.xlu1 %2478  ;;  %v2451_v43 = vsel %vm377_vm3, %v6152_v18, %v2450_v58  ;;  %v2412_v18 = vsel %vm335_vm2, %v2397_v47, %v2411_v14 }
 0x35f   : > { %v2445_v50 = vrot.slane %v2440_v13, 4  ;;  %v2485_v39 = vrot.slane %v2479_v54, 4  ;;  %4664 = vmatprep.subr.msk.bf16.mxu1 %vm333_vm1, %v4657_v9  ;;  %v4554_v2 = vcombine.low %v2410_v32, %v2451_v43  ;;  %v4555_v36 = vcombine.high %v2410_v32, %v2451_v43 }
 0x361   : > { %v2452_v48 = vsel %vm333_vm1, %v2444_v15, %v2445_v50  ;;  %4222 = vmatprep.subr.bf16.mxu0 %v4555_v36  ;;  %v2491_v10 = vsel %vm333_vm1, %v2484_v23, %v2485_v39  ;;  %v6470_v23 = vld.sshfl [vmem:[%s6662_s4] sm:$0x33 pattern:$0x76325410] }
 0x362   : > { %v2481_v7 = vpop.permute.xlu0 %2480  ;;  %4208 = vmatpush1.bf16.msra.mxu1 %v4123_v34  ;;  %4223 = vmatpush1.bf16.msra.mxu0 %v4554_v2  ;;  %v2520_v56 = vpop.permute.xlu1 %2519  ;;  %v2453_v13 = vsel %vm377_vm3, %v2438_v31, %v2452_v48  ;;  %v2492_v9 = vsel %vm419_vm4, %v6154_v52, %v2491_v10  ;;  %vm6912_vm3 = vcmask 728064  }
 0x363   : > { %v2486_v58 = vrot.slane %v2481_v7, 4  ;;  %v2526_v12 = vrot.slane %v2520_v56, 4  ;;  %v4556_v22 = vcombine.low %v2412_v18, %v2453_v13  ;;  %v4557_v3 = vcombine.high %v2412_v18, %v2453_v13 }
 0x365   : > { %v2532_v51 = vsel %vm333_vm1, %v2525_v41, %v2526_v12  ;;  %4214 = vmatmul.mubr.bf16.vlgmr.msra.gmra.mrb[8].mxu1 %v6470_v23  ;;  %4263 = vmatprep.subr.bf16.mxu1 %v4557_v3  ;;  %v2493_v47 = vsel %vm333_vm1, %v2485_v39, %v2486_v58 }
 0x366   : > { %v2522_v15 = vpop.permute.xlu0 %2521  ;;  %4264 = vmatpush1.bf16.msra.mxu1 %v4556_v22  ;;  %v2561_v31 = vpop.permute.xlu1 %2560  ;;  %v2533_v14 = vsel %vm461_vm5, %v6173_v19, %v2532_v51  ;;  %4669 = vmatprep.mubr.msk.bf16.mxu1 %vm2064_vm0, %v5861_v30  ;;  %v2494_v48 = vsel %vm419_vm4, %v2479_v54, %v2493_v47  ;;  %vm6910_vm0 = vcmask 736256   ;;  %vm6913_vm4 = vcmask 89088  }
 0x367   : > { %v2527_v41 = vrot.slane %v2522_v15, 4  ;;  %v2567_v32 = vrot.slane %v2561_v31, 4  ;;  %v4562_v43 = vcombine.low %v2492_v9, %v2533_v14  ;;  %v4563_v50 = vcombine.high %v2492_v9, %v2533_v14  ;;  %vm6911_vm2 = vmmov %vm6910_vm0 }
 0x369   : > { %v2534_v2 = vsel %vm333_vm1, %v2526_v12, %v2527_v41  ;;  %4224 = vmatprep.subr.bf16.mxu0 %v4563_v50  ;;  %v2573_v39 = vsel %vm333_vm1, %v2566_v63, %v2567_v32 }
 0x36a   : > { %v2563_v36 = vpop.permute.xlu0 %2562  ;;  %4225 = vmatpush1.bf16.msra.mxu0 %v4562_v43  ;;  %v2602_v52 = vpop.permute.xlu1 %2601  ;;  %v2535_v19 = vsel %vm461_vm5, %v2520_v56, %v2534_v2  ;;  %v2574_v12 = vsel %vm503_vm6, %v6175_v45, %v2573_v39  ;;  %vm6914_vm5 = vmmov %vm6912_vm3 }
 0x36b   : > { %v2568_v34 = vrot.slane %v2563_v36, 4  ;;  %v2608_v30 = vrot.slane %v2602_v52, 4  ;;  %v4564_v10 = vcombine.low %v2494_v48, %v2535_v19  ;;  %v4565_v7 = vcombine.high %v2494_v48, %v2535_v19 }
 0x36d   : > { %v2614_v18 = vsel %vm333_vm1, %v2607_v49, %v2608_v30  ;;  %4265 = vmatprep.subr.bf16.mxu1 %v4565_v7  ;;  %v2575_v13 = vsel %vm333_vm1, %v2567_v32, %v2568_v34 }
 0x36e   : > { %v2604_v58 = vpop.permute.xlu0 %2603  ;;  %4266 = vmatpush1.bf16.msra.mxu1 %v4564_v10  ;;  %v2643_v63 = vpop.permute.xlu1 %2642  ;;  %v2615_v54 = vsel %vm545_vm7, %v6197_v25, %v2614_v18  ;;  %v2576_v14 = vsel %vm503_vm6, %v2561_v31, %v2575_v13  ;;  %vm6915_vm6 = vmmov %vm6913_vm4 }
 0x36f   : > { %v2609_v56 = vrot.slane %v2604_v58, 4  ;;  %v2649_v22 = vrot.slane %v2643_v63, 4  ;;  %v4570_v3 = vcombine.low %v2574_v12, %v2615_v54  ;;  %v4571_v51 = vcombine.high %v2574_v12, %v2615_v54 }
 0x371   : > { %v2616_v47 = vsel %vm333_vm1, %v2608_v30, %v2609_v56  ;;  %4226 = vmatprep.subr.bf16.mxu0 %v4571_v51  ;;  %v2655_v49 = vsel %vm333_vm1, %v2648_v61, %v2649_v22 }
 0x372   : > { %v2645_v15 = vpop.permute.xlu0 %2644  ;;  %4227 = vmatpush1.bf16.msra.mxu0 %v4570_v3  ;;  %v2684_v9 = vpop.permute.xlu1 %2683  ;;  %v2617_v45 = vsel %vm545_vm7, %v2602_v52, %v2616_v47  ;;  %v2656_v36 = vsel %vm587_vm8, %v6199_v4, %v2655_v49  ;;  %vm6916_vm7 = vcmask 80896  }
 0x373   : > { %v2650_v41 = vrot.slane %v2645_v15, 4  ;;  %v2690_v25 = vrot.slane %v2684_v9, 4  ;;  %v4572_v32 = vcombine.low %v2576_v14, %v2617_v45  ;;  %v4573_v43 = vcombine.high %v2576_v14, %v2617_v45  ;;  %vm6919_vm12 = vmmov %vm6916_vm7 }
 0x375   : > { %v2696_v50 = vsel %vm333_vm1, %v2689_v1, %v2690_v25  ;;  %4267 = vmatprep.subr.bf16.mxu1 %v4573_v43  ;;  %v2657_v2 = vsel %vm333_vm1, %v2649_v22, %v2650_v41 }
 0x376   : > { %v2686_v39 = vpop.permute.xlu0 %2685  ;;  %4268 = vmatpush1.bf16.msra.mxu1 %v4572_v32  ;;  %v2725_v61 = vpop.permute.xlu1 %2724  ;;  %v2697_v31 = vsel %vm6910_vm0, %v6222_v11, %v2696_v50  ;;  %v2658_v18 = vsel %vm587_vm8, %v2643_v63, %v2657_v2  ;;  %vm6917_vm8 = vcmask 72704   ;;  %vm6922_vm0 = vcmask 1039360  }
 0x377   : > { %v2691_v52 = vrot.slane %v2686_v39, 4  ;;  %v2731_v48 = vrot.slane %v2725_v61, 4  ;;  %v4578_v19 = vcombine.low %v2656_v36, %v2697_v31  ;;  %v4579_v34 = vcombine.high %v2656_v36, %v2697_v31  ;;  %vm6920_vm11 = vmmov %vm6917_vm8 }
 0x379   : > { %v2698_v30 = vsel %vm333_vm1, %v2690_v25, %v2691_v52  ;;  %4228 = vmatprep.subr.bf16.mxu0 %v4579_v34  ;;  %v2737_v1 = vsel %vm333_vm1, %v2730_v8, %v2731_v48 }
 0x37a   : > { %v2727_v10 = vpop.permute.xlu0 %2726  ;;  %4229 = vmatpush1.bf16.msra.mxu0 %v4578_v19  ;;  %v2766_v7 = vpop.permute.xlu1 %2765  ;;  %v2699_v4 = vsel %vm6911_vm2, %v2684_v9, %v2698_v30  ;;  %v2738_v3 = vsel %vm6912_vm3, %v6224_v24, %v2737_v1  ;;  %vm6923_vm2 = vcmask 973824   ;;  %vm6924_vm3 = vmmov %vm6922_vm0 }
 0x37b   : > { %v2732_v13 = vrot.slane %v2727_v10, 4  ;;  %v2772_v11 = vrot.slane %v2766_v7, 4  ;;  %v4580_v58 = vcombine.low %v2658_v18, %v2699_v4  ;;  %v4581_v12 = vcombine.high %v2658_v18, %v2699_v4  ;;  %v2915_v10 = vld [vmem:[#allocation3 + $0x14] sm:$0xff] }
 0x37d   : > { %v2778_v54 = vsel %vm333_vm1, %v2771_v46, %v2772_v11  ;;  %4269 = vmatprep.subr.bf16.mxu1 %v4581_v12  ;;  %v2739_v56 = vsel %vm333_vm1, %v2731_v48, %v2732_v13 }
 0x37e   : > { %v2768_v22 = vpop.permute.xlu0 %2767  ;;  %4270 = vmatpush1.bf16.msra.mxu1 %v4580_v58  ;;  %v2807_v8 = vpop.permute.xlu1 %2806  ;;  %v2779_v63 = vsel %vm6913_vm4, %v6245_v60, %v2778_v54  ;;  %v2740_v41 = vsel %vm6914_vm5, %v2725_v61, %v2739_v56  ;;  %vm6925_vm4 = vmmov %vm6923_vm2  ;;  %vm6927_vm5 = vcmask 965632  }
 0x37f   : > { %v2773_v51 = vrot.slane %v2768_v22, 4  ;;  %v2813_v47 = vrot.slane %v2807_v8, 4  ;;  %v4586_v49 = vcombine.low %v2738_v3, %v2779_v63  ;;  %v4587_v15 = vcombine.high %v2738_v3, %v2779_v63 }
 0x381   : > { %v2780_v9 = vsel %vm333_vm1, %v2772_v11, %v2773_v51  ;;  %4230 = vmatprep.subr.bf16.mxu0 %v4587_v15  ;;  %v2819_v46 = vsel %vm333_vm1, %v2812_v33, %v2813_v47 }
 0x382   : > { %v2809_v14 = vpop.permute.xlu0 %2808  ;;  %4231 = vmatpush1.bf16.msra.mxu0 %v4586_v49  ;;  %v2848_v45 = vpop.permute.xlu1 %2847  ;;  %v2781_v24 = vsel %vm6915_vm6, %v2766_v7, %v2780_v9  ;;  %v2820_v36 = vsel %vm6916_vm7, %v6247_v21, %v2819_v46  ;;  %vm6928_vm6 = vcmask 957440   ;;  %vm6930_vm7 = vmmov %vm6927_vm5 }
 0x383   : > { %v2814_v25 = vrot.slane %v2809_v14, 4  ;;  %v2854_v60 = vrot.slane %v2848_v45, 4  ;;  %v4588_v32 = vcombine.low %v2740_v41, %v2781_v24  ;;  %v4589_v43 = vcombine.high %v2740_v41, %v2781_v24 }
 0x385   : > { %v2860_v50 = vsel %vm333_vm1, %v2853_v29, %v2854_v60  ;;  %4271 = vmatprep.subr.bf16.mxu1 %v4589_v43  ;;  %v2821_v2 = vsel %vm333_vm1, %v2813_v47, %v2814_v25 }
 0x386   : > { %v2850_v39 = vpop.permute.xlu0 %2849  ;;  %4272 = vmatpush1.bf16.msra.mxu1 %v4588_v32  ;;  %v2889_v33 = vpop.permute.xlu1 %2888  ;;  %v2861_v61 = vsel %vm6917_vm8, %v6268_v37, %v2860_v50  ;;  %v2822_v37 = vsel %vm6919_vm12, %v2807_v8, %v2821_v2  ;;  %vm6931_vm8 = vmmov %vm6928_vm6  ;;  %vm6934_vm12 = vcmask 310272  }
 0x387   : > { %v2855_v31 = vrot.slane %v2850_v39, 4  ;;  %v2895_v52 = vrot.slane %v2889_v33, 4  ;;  %v4594_v48 = vcombine.low %v2820_v36, %v2861_v61  ;;  %v4595_v19 = vcombine.high %v2820_v36, %v2861_v61 }
 0x388   : > { %v6926_v39 = vrot.slane %v6318_v57, 4 }
 0x389   : > { %v2862_v34 = vsel %vm333_vm1, %v2854_v60, %v2855_v31  ;;  %v2901_v29 = vsel %vm333_vm1, %v2894_v0, %v2895_v52  ;;  %4232 = vmatprep.subr.bf16.mxu0 %v4595_v19 }
 0x38a   : > { %v2891_v30 = vpop.permute.xlu0 %2890  ;;  %4233 = vmatpush1.bf16.msra.mxu0 %v4594_v48  ;;  %v2938_v1 = vpop.permute.xlu1 %2937  ;;  %v2902_v21 = vsel %vm6918_vm9, %v6270_v28, %v2901_v29  ;;  %v2863_v7 = vsel %vm6920_vm11, %v2848_v45, %v2862_v34  ;;  %vm6933_vm9 = vcmask 318464  }
 0x38b   : > { %v2896_v18 = vrot.slane %v2891_v30, 4  ;;  %v2944_v4 = vrot.slane %v2938_v1, 4  ;;  %v4602_v13 = vcombine.low %v2902_v21, %v2915_v10  ;;  %v4603_v11 = vcombine.high %v2902_v21, %v2915_v10  ;;  %vm6936_vm11 = vmmov %vm6933_vm9 }
 0x38c   : > { %v4596_v58 = vcombine.low %v2822_v37, %v2863_v7  ;;  %v4597_v12 = vcombine.high %v2822_v37, %v2863_v7 }
 0x38d   : > { %v2903_v0 = vsel %vm333_vm1, %v2895_v52, %v2896_v18  ;;  %4234 = vmatprep.subr.bf16.mxu0 %v4603_v11  ;;  %v2950_v54 = vsel %vm333_vm1, %v2943_v44, %v2944_v4  ;;  %v6932_v11 = vrot.slane %v6343_v55, 4 }
 0x38e   : > { %4273 = vmatprep.subr.bf16.mxu1 %v4597_v12  ;;  %v2940_v28 = vpop.permute.xlu0 %2939  ;;  %4235 = vmatpush1.bf16.msra.mxu0 %v4602_v13  ;;  %v2979_v56 = vpop.permute.xlu1 %2978  ;;  %v2904_v22 = vsel %vm6921_vm10, %v2889_v33, %v2903_v0  ;;  %v2951_v9 = vsel %vm6922_vm0, %v6291_v59, %v2950_v54  ;;  %vm6937_vm10 = vmmov %vm6934_vm12  ;;  %vm6939_vm0 = vcmask 302080  }
 0x38f   : > { %v2945_v8 = vrot.slane %v2940_v28, 4  ;;  %4274 = vmatpush1.bf16.msra.mxu1 %v4596_v58  ;;  %v2985_v3 = vrot.slane %v2979_v56, 4  ;;  %v4604_v63 = vcombine.low %v2904_v22, %v6326_v35  ;;  %v4605_v51 = vcombine.high %v2904_v22, %v6326_v35 }
 0x391   : > { %v2991_v47 = vsel %vm333_vm1, %v2984_v27, %v2985_v3  ;;  %4275 = vmatprep.subr.bf16.mxu1 %v4605_v51  ;;  %v2952_v44 = vsel %vm333_vm1, %v2944_v4, %v2945_v8 }
 0x392   : > { %v2981_v49 = vpop.permute.xlu0 %2980  ;;  %v3020_v15 = vpop.permute.xlu1 %3019  ;;  %v2992_v46 = vsel %vm6923_vm2, %v6293_v62, %v2991_v47  ;;  %v2953_v59 = vsel %vm6924_vm3, %v2938_v1, %v2952_v44  ;;  %v6929_v1 = vrot.slane %v6341_v42, 4  ;;  %v6935_v47 = vrot.slane %v6367_v17, 4  ;;  %vm6942_vm3 = vmmov %vm6939_vm0 }
 0x393   : > { %v2986_v14 = vrot.slane %v2981_v49, 4  ;;  %4276 = vmatpush1.bf16.msra.mxu1 %v4604_v63  ;;  %v3026_v45 = vrot.slane %v3020_v15, 4  ;;  %v4610_v41 = vcombine.low %v2951_v9, %v2992_v46  ;;  %v4611_v35 = vcombine.high %v2951_v9, %v2992_v46 }
 0x394   : > { %vm6940_vm2 = vcmask 236544  }
 0x395   : > { %v2993_v24 = vsel %vm333_vm1, %v2985_v3, %v2986_v14  ;;  %4236 = vmatprep.subr.bf16.mxu0 %v4611_v35  ;;  %v3032_v27 = vsel %vm333_vm1, %v3025_v6, %v3026_v45 }
 0x396   : > { %v3022_v25 = vpop.permute.xlu0 %3021  ;;  %4237 = vmatpush1.bf16.msra.mxu0 %v4610_v41  ;;  %v3061_v60 = vpop.permute.xlu1 %3060  ;;  %v2994_v32 = vsel %vm6925_vm4, %v2979_v56, %v2993_v24  ;;  %v3033_v31 = vsel %vm6927_vm5, %v6316_v40, %v3032_v27  ;;  %v6938_v41 = vrot.slane %v6369_v38, 4  ;;  %vm6943_vm4 = vmmov %vm6940_vm2  ;;  %vm6945_vm5 = vcmask 228352  }
 0x397   : > { %v3027_v62 = vrot.slane %v3022_v25, 4  ;;  %v3067_v43 = vrot.slane %v3061_v60, 4  ;;  %v4612_v50 = vcombine.low %v2953_v59, %v2994_v32  ;;  %v4613_v2 = vcombine.high %v2953_v59, %v2994_v32 }
 0x399   : > { %v3073_v33 = vsel %vm333_vm1, %v6926_v39, %v3067_v43  ;;  %4277 = vmatprep.subr.bf16.mxu1 %v4613_v2  ;;  %v3034_v36 = vsel %vm333_vm1, %v3026_v45, %v3027_v62  ;;  %v6941_v39 = vrot.slane %v6391_v53, 4 }
 0x39a   : > { %v3063_v61 = vpop.permute.xlu0 %3062  ;;  %4278 = vmatpush1.bf16.msra.mxu1 %v4612_v50  ;;  %v3102_v6 = vpop.permute.xlu1 %3101  ;;  %v3074_v52 = vsel %vm6928_vm6, %v6318_v57, %v3073_v33  ;;  %v3035_v7 = vsel %vm6930_vm7, %v3020_v15, %v3034_v36  ;;  %vm6946_vm6 = vcmask 220160   ;;  %vm6948_vm7 = vmmov %vm6945_vm5 }
 0x39b   : > { %v3068_v48 = vrot.slane %v3063_v61, 4  ;;  %v3108_v19 = vrot.slane %v3102_v6, 4  ;;  %v4618_v34 = vcombine.low %v3033_v31, %v3074_v52  ;;  %v4619_v29 = vcombine.high %v3033_v31, %v3074_v52 }
 0x39d   : > { %v3075_v30 = vsel %vm333_vm1, %v3067_v43, %v3068_v48  ;;  %4238 = vmatprep.subr.bf16.mxu0 %v4619_v29  ;;  %v3114_v21 = vsel %vm333_vm1, %v6929_v1, %v3108_v19 }
 0x39e   : > { %v3104_v10 = vpop.permute.xlu0 %3103  ;;  %4239 = vmatpush1.bf16.msra.mxu0 %v4618_v34  ;;  %v3143_v37 = vpop.permute.xlu1 %3142  ;;  %v3076_v40 = vsel %vm6931_vm8, %v3061_v60, %v3075_v30  ;;  %v3115_v28 = vsel %vm6933_vm9, %v6341_v42, %v3114_v21  ;;  %vm6949_vm8 = vmmov %vm6946_vm6 }
 0x39f   : > { %v3109_v18 = vrot.slane %v3104_v10, 4  ;;  %v3149_v57 = vrot.slane %v3143_v37, 4  ;;  %v4620_v4 = vcombine.low %v3035_v7, %v3076_v40  ;;  %v4621_v13 = vcombine.high %v3035_v7, %v3076_v40 }
 0x3a1   : > { %v3155_v58 = vsel %vm333_vm1, %v6932_v11, %v3149_v57  ;;  %4279 = vmatprep.subr.bf16.mxu1 %v4621_v13  ;;  %v3116_v12 = vsel %vm333_vm1, %v3108_v19, %v3109_v18  ;;  %v6944_v19 = vrot.slane %v6393_v26, 4 }
 0x3a2   : > { %v3145_v0 = vpop.permute.xlu0 %3144  ;;  %4280 = vmatpush1.bf16.msra.mxu1 %v4620_v4  ;;  %v3184_v54 = vpop.permute.xlu1 %3183  ;;  %v3156_v56 = vsel %vm6934_vm12, %v6343_v55, %v3155_v58  ;;  %v3117_v9 = vsel %vm6936_vm11, %v3102_v6, %v3116_v12  ;;  %v6947_v4 = vrot.slane %v6411_v20, 4 }
 0x3a3   : > { %v3150_v22 = vrot.slane %v3145_v0, 4  ;;  %v3190_v8 = vrot.slane %v3184_v54, 4  ;;  %v4626_v3 = vcombine.low %v3115_v28, %v3156_v56  ;;  %v4627_v63 = vcombine.high %v3115_v28, %v3156_v56 }
 0x3a4   : > { %v6950_v56 = vrot.slane %v6413_v16, 4 }
 0x3a5   : > { %v3157_v51 = vsel %vm333_vm1, %v3149_v57, %v3150_v22  ;;  %4240 = vmatprep.subr.bf16.mxu0 %v4627_v63  ;;  %v3196_v44 = vsel %vm333_vm1, %v6935_v47, %v3190_v8 }
 0x3a6   : > { %v3186_v49 = vpop.permute.xlu0 %3185  ;;  %4241 = vmatpush1.bf16.msra.mxu0 %v4626_v3  ;;  %v3225_v15 = vpop.permute.xlu1 %3224  ;;  %v3158_v42 = vsel %vm6937_vm10, %v3143_v37, %v3157_v51  ;;  %v3197_v60 = vsel %vm6939_vm0, %v6367_v17, %v3196_v44 }
 0x3a7   : > { %v3191_v46 = vrot.slane %v3186_v49, 4  ;;  %v3231_v55 = vrot.slane %v3225_v15, 4  ;;  %v4628_v14 = vcombine.low %v3117_v9, %v3158_v42  ;;  %v4629_v45 = vcombine.high %v3117_v9, %v3158_v42 }
 0x3a9   : > { %v3237_v35 = vsel %vm333_vm1, %v6938_v41, %v3231_v55  ;;  %4281 = vmatprep.subr.bf16.mxu1 %v4629_v45  ;;  %v3198_v24 = vsel %vm333_vm1, %v3190_v8, %v3191_v46  ;;  %v6951_v46 = vrot.slane %v6431_v5, 4 }
 0x3aa   : > { %v3227_v27 = vpop.permute.xlu0 %3226  ;;  %4282 = vmatpush1.bf16.msra.mxu1 %v4628_v14  ;;  %v3266_v25 = vpop.permute.xlu1 %3265  ;;  %v3238_v59 = vsel %vm6940_vm2, %v6369_v38, %v3237_v35  ;;  %v3199_v6 = vsel %vm6942_vm3, %v3184_v54, %v3198_v24 }
 0x3ab   : > { %v3232_v32 = vrot.slane %v3227_v27, 4  ;;  %v3272_v62 = vrot.slane %v3266_v25, 4  ;;  %v4634_v43 = vcombine.low %v3197_v60, %v3238_v59  ;;  %v4635_v50 = vcombine.high %v3197_v60, %v3238_v59 }
 0x3ad   : > { %v3239_v2 = vsel %vm333_vm1, %v3231_v55, %v3232_v32  ;;  %4242 = vmatprep.subr.bf16.mxu0 %v4635_v50  ;;  %v3278_v33 = vsel %vm333_vm1, %v6941_v39, %v3272_v62 }
 0x3ae   : > { %v3268_v36 = vpop.permute.xlu0 %3267  ;;  %4243 = vmatpush1.bf16.msra.mxu0 %v4634_v43  ;;  %v3307_v61 = vpop.permute.xlu1 %3306  ;;  %v3240_v17 = vsel %vm6943_vm4, %v3225_v15, %v3239_v2  ;;  %v3279_v21 = vsel %vm6945_vm5, %v6391_v53, %v3278_v33 }
 0x3af   : > { %v3273_v31 = vrot.slane %v3268_v36, 4  ;;  %v3313_v38 = vrot.slane %v3307_v61, 4  ;;  %v4636_v52 = vcombine.low %v3199_v6, %v3240_v17  ;;  %v4637_v48 = vcombine.high %v3199_v6, %v3240_v17 }
 0x3b1   : > { %v3319_v34 = vsel %vm333_vm1, %v6944_v19, %v3313_v38  ;;  %4283 = vmatprep.subr.bf16.mxu1 %v4637_v48  ;;  %v3280_v29 = vsel %vm333_vm1, %v3272_v62, %v3273_v31 }
 0x3b2   : > { %v3309_v30 = vpop.permute.xlu0 %3308  ;;  %4284 = vmatpush1.bf16.msra.mxu1 %v4636_v52  ;;  %v3348_v1 = vpop.permute.xlu1 %3347  ;;  %v3320_v10 = vsel %vm6946_vm6, %v6393_v26, %v3319_v34  ;;  %v3281_v12 = vsel %vm6948_vm7, %v3266_v25, %v3280_v29 }
 0x3b3   : > { %v3314_v37 = vrot.slane %v3309_v30, 4  ;;  %v3354_v7 = vrot.slane %v3348_v1, 4  ;;  %v4642_v40 = vcombine.low %v3279_v21, %v3320_v10  ;;  %v4643_v18 = vcombine.high %v3279_v21, %v3320_v10 }
 0x3b5   : > { %v3321_v57 = vsel %vm333_vm1, %v3313_v38, %v3314_v37  ;;  %4244 = vmatprep.subr.bf16.mxu0 %v4643_v18  ;;  %v3360_v13 = vsel %vm333_vm1, %v6947_v4, %v3354_v7 }
 0x3b6   : > { %v3350_v11 = vpop.permute.xlu0 %3349  ;;  %4245 = vmatpush1.bf16.msra.mxu0 %v4642_v40  ;;  %v3389_v58 = vpop.permute.xlu1 %3388  ;;  %v3322_v53 = vsel %vm6949_vm8, %v3307_v61, %v3321_v57  ;;  %v3361_v51 = vsel %vm1309_vm13, %v6411_v20, %v3360_v13 }
 0x3b7   : > { %v3355_v0 = vrot.slane %v3350_v11, 4  ;;  %v3395_v26 = vrot.slane %v3389_v58, 4  ;;  %v4644_v54 = vcombine.low %v3281_v12, %v3322_v53  ;;  %v4645_v28 = vcombine.high %v3281_v12, %v3322_v53 }
 0x3b9   : > { %v3401_v22 = vsel %vm333_vm1, %v6950_v56, %v3395_v26  ;;  %4285 = vmatprep.subr.bf16.mxu1 %v4645_v28  ;;  %v3362_v8 = vsel %vm333_vm1, %v3354_v7, %v3355_v0 }
 0x3ba   : > { %v3391_v3 = vpop.permute.xlu0 %3390  ;;  %4286 = vmatpush1.bf16.msra.mxu1 %v4644_v54  ;;  %v3430_v63 = vpop.permute.xlu1 %3429  ;;  %v3402_v47 = vsel %vm1351_vm14, %v6413_v16, %v3401_v22  ;;  %v3363_v20 = vsel %vm1309_vm13, %v3348_v1, %v3362_v8 }
 0x3bb   : > { %v3396_v44 = vrot.slane %v3391_v3, 4  ;;  %v3436_v49 = vrot.slane %v3430_v63, 4  ;;  %v4650_v15 = vcombine.low %v3361_v51, %v3402_v47  ;;  %v4651_v9 = vcombine.high %v3361_v51, %v3402_v47 }
 0x3bd   : > { %v3403_v42 = vsel %vm333_vm1, %v3395_v26, %v3396_v44  ;;  %v3442_v55 = vsel %vm333_vm1, %v6951_v46, %v3436_v49  ;;  %4246 = vmatprep.subr.bf16.mxu0 %v4651_v9 }
 0x3be   : > { %v3432_v14 = vpop.permute.xlu0 %3431  ;;  %4247 = vmatpush1.bf16.msra.mxu0 %v4650_v15  ;;  %v3443_v45 = vsel %vm1393_vm15, %v6431_v5, %v3442_v55  ;;  %v3404_v16 = vsel %vm1351_vm14, %v3389_v58, %v3403_v42 }
 0x3bf   : > { %v3437_v41 = vrot.slane %v3432_v14, 4  ;;  %v4659_v35 = vcombine.high %v3443_v45, %v3443_v45  ;;  %v4652_v24 = vcombine.low %v3363_v20, %v3404_v16  ;;  %v4653_v27 = vcombine.high %v3363_v20, %v3404_v16 }
 0x3c0   : > { %v4658_v25 = vcombine.low %v3443_v45, %v3443_v45 }
 0x3c1   : > { %v3444_v60 = vsel %vm333_vm1, %v3436_v49, %v3437_v41  ;;  %4666 = vmatprep.subr.msk.bf16.mxu0 %vm333_vm1, %v4659_v35  ;;  %4287 = vmatprep.subr.bf16.mxu1 %v4653_v27 }
 0x3c2   : > { %v3445_v59 = vsel %vm1393_vm15, %v3430_v63, %v3444_v60  ;;  %v4129_v32 = vsel %vm333_vm1, %v4658_v25, 0  ;;  %4288 = vmatpush1.bf16.msra.mxu1 %v4652_v24 }
 0x3c3   : > { %4249 = vmatpush1.bf16.msra.mxu0 %v4129_v32  ;;  %v4661_v5 = vcombine.high %v3445_v59, %v3445_v59  ;;  %v4660_v62 = vcombine.low %v3445_v59, %v3445_v59 }
 0x3c5   : > { %4668 = vmatprep.subr.msk.bf16.mxu1 %vm333_vm1, %v4661_v5  ;;  %v4135_v43 = vsel %vm333_vm1, %v4660_v62, 0 }
 0x3c6   : > { %4255 = vmatmul.mubr.bf16.vlgmr.msra.gmra.mrb[12].mxu0 %v6470_v23  ;;  %4290 = vmatpush1.bf16.msra.mxu1 %v4135_v43 }
 0x3c9   : > { %4296 = vmatmul.mubr.bf16.vlgmr.msra.gmra.mrb[12].mxu1 %v6470_v23 }
 0x3cb   : > { %v4308_v50 = vpop.permute.xlu1 %4307 }
 0x3cf   : > { %v4322_v36 = vpop.permute.xlu0 %4321 }
 0x400   : > { %v4174_v2 = vpop.f32.mrb[8].mxu0 }
 0x401   : > { %v4310_v39 = vmul.f32 %v4308_v50, %v4174_v2  ;;  %v4176_v33 = vpop.f32.mrb[9].mxu0 }
 0x402   : > { %v4311_v61 = vmul.f32 %v4308_v50, %v4176_v33  ;;  %v4178_v6 = vpop.f32.mrb[10].mxu0 }
 0x403   : > { %v4324_v17 = vadd.f32 %v4322_v36, %v4310_v39  ;;  %v4179_v31 = vpop.f32.mrb[11].mxu0 }
 0x404   : > { %v4325_v38 = vadd.f32 %v4322_v36, %v4311_v61 }
 0x405   : > { %v4332_v52 = vmax.f32 %v4324_v17, 0.0 }
 0x406   : > { %v4333_v48 = vmax.f32 %v4325_v38, 0.0 }
 0x408   : > { %v4348_v23 = vcombine.low %v4332_v52, %v4333_v48 }
 0x40a   : > { %4356 = vst [vmem:[%s6649_s15] sm:$0xff] %v4348_v23 }
 0x438   : > { %v4215_v19 = vpop.f32.mrb[8].mxu1 }
 0x439   : > { %v4312_v34 = vmul.f32 %v4308_v50, %v4215_v19  ;;  %v4217_v29 = vpop.f32.mrb[9].mxu1 }
 0x43a   : > { %v4313_v30 = vmul.f32 %v4308_v50, %v4217_v29  ;;  %v4219_v1 = vpop.f32.mrb[10].mxu1 }
 0x43b   : > { %v4326_v21 = vadd.f32 %v4322_v36, %v4312_v34  ;;  %v4220_v10 = vpop.f32.mrb[11].mxu1 }
 0x43c   : > { %v4327_v37 = vadd.f32 %v4322_v36, %v4313_v30 }
 0x43d   : > { %v4334_v7 = vmax.f32 %v4326_v21, 0.0 }
 0x43e   : > { %v4335_v40 = vmax.f32 %v4327_v37, 0.0 }
 0x440   : > { %v4349_v18 = vcombine.low %v4334_v7, %v4335_v40 }
 0x442   : > { %4357 = vst [vmem:[%s6649_s15 + $0x8] sm:$0xff] %v4349_v18 }
 0x499   : > { %v4256_v57 = vpop.f32.mrb[12].mxu0 }
 0x49a   : > { %v4314_v4 = vmul.f32 %v4308_v50, %v4256_v57  ;;  %v4258_v13 = vpop.f32.mrb[13].mxu0 }
 0x49b   : > { %v4315_v11 = vmul.f32 %v4308_v50, %v4258_v13  ;;  %v4260_v58 = vpop.f32.mrb[14].mxu0 }
 0x49c   : > { %v4328_v12 = vadd.f32 %v4322_v36, %v4314_v4  ;;  %v4261_v53 = vpop.f32.mrb[15].mxu0  ;;  %v4297_v0 = vpop.f32.mrb[12].mxu1 }
 0x49d   : > { %v4329_v26 = vadd.f32 %v4322_v36, %v4315_v11  ;;  %v4316_v54 = vmul.f32 %v4308_v50, %v4297_v0  ;;  %v4299_v28 = vpop.f32.mrb[13].mxu1 }
 0x49e   : > { %v4336_v56 = vmax.f32 %v4328_v12, 0.0  ;;  %v4317_v22 = vmul.f32 %v4308_v50, %v4299_v28  ;;  %v4301_v8 = vpop.f32.mrb[14].mxu1 }
 0x49f   : > { %v4337_v3 = vmax.f32 %v4329_v26, 0.0  ;;  %v4330_v63 = vadd.f32 %v4322_v36, %v4316_v54  ;;  %v4302_v51 = vpop.f32.mrb[15].mxu1 }
 0x4a0   : > { %v4331_v47 = vadd.f32 %v4322_v36, %v4317_v22 }
 0x4a1   : > { %v4350_v44 = vcombine.low %v4336_v56, %v4337_v3  ;;  %v4338_v49 = vmax.f32 %v4330_v63, 0.0 }
 0x4a2   : > { %v4339_v15 = vmax.f32 %v4331_v47, 0.0 }
 0x4a3   : > { %4358 = vst [vmem:[%s6649_s15 + $0x10] sm:$0xff] %v4350_v44 }
 0x4a4   : > { %v4351_v9 = vcombine.low %v4338_v49, %v4339_v15 }
 0x4a6   : > { %4359 = vst [vmem:[%s6649_s15 + $0x18] sm:$0xff] %v4351_v9 }
 0x4a7 PF: > { %s6954_s16 = sld [smem:[#allocation5_spill]] }
 0x4ad   : > { %s18_s27 = sadd.s32 1, %s6954_s16  }
 0x4ae   : > { %p15_p4 = scmp.ge.s32.totalorder %s18_s27, 4  }
 0x4b0   :  { %17 = sbr.rel (!%p15_p4) target bundleno = 7 (0x7), region = 82 }

</bundles_post_ra>
